<compile_context>
chip_gen: v5e
topology: v5e:2x2
jax: 0.10.0
libtpu: 0.0.40
codegen_flags: <defaults>
</compile_context>

<pallas_src>
import functools
import math

import jax
import jax.numpy as jnp
from jax.experimental import pallas as pl
from jax.experimental.pallas import tpu as pltpu


def _round_up(x, m):
    return ((x + m - 1) // m) * m


# ki/kj -> (parity class of the stage-1 row/col feeding this conv tap,
#           start offset inside the parity-class scratch buffer)
_TAP = ((1, 0), (0, 0), (1, 1))


# ---------------------------------------------------------------------------
# Fused kernel: conv(3x3,s2,p1)+BN+GELU -> conv(3x3,s2,p1)+BN   (one image)
# ---------------------------------------------------------------------------
def _fused_stem_kernel(xq_ref, w1_ref, s1_ref, w2_ref, s2_ref, o_ref, cls_ref,
                       *, H2, W2, Cp, C1p, C2p):
    M2 = H2 * W2
    inv_sqrt2 = jnp.float32(0.7071067811865476)
    cls_dtype = cls_ref.dtype

    # Zero the halo borders of the parity-class scratch: row 0 of odd-row
    # classes and col 0 of odd-col classes are read by stage 2 as the zero
    # padding of the stage-1 activation.
    zrow = jnp.zeros((1, W2 + 1, C1p), cls_dtype)
    zcol = jnp.zeros((H2 + 1, 1, C1p), cls_dtype)
    cls_ref[1, 0, 0:1, :, :] = zrow
    cls_ref[1, 1, 0:1, :, :] = zrow
    cls_ref[0, 1, :, 0:1, :] = zcol
    cls_ref[1, 1, :, 0:1, :] = zcol

    s1 = s1_ref[...]                                    # (1, C1p) f32

    # ---- stage 1: conv + BN + exact GELU, one output-parity class at a time.
    # Class (a, b) holds stage-1 outputs at rows 2i+a / cols 2j+b; it reads the
    # padded input at rows 4i+2a+ki / cols 4j+2b+kj, which are unit-stride
    # slices of the mod-4 packed input xq.
    for a in (0, 1):
        for b in (0, 1):
            acc = jnp.zeros((M2, C1p), jnp.float32)
            for ki in range(3):
                u = 2 * a + ki
                for kj in range(3):
                    v = 2 * b + kj
                    patch = xq_ref[u % 4,
                                   u // 4:u // 4 + H2,
                                   v // 4:v // 4 + W2,
                                   (v % 4) * Cp:(v % 4 + 1) * Cp]
                    acc = acc + jnp.dot(patch.reshape(M2, Cp),
                                        w1_ref[ki * 3 + kj],
                                        preferred_element_type=jnp.float32)
            y = acc + s1
            y = 0.5 * y * (1.0 + jax.lax.erf(y * inv_sqrt2))   # exact GELU
            cls_ref[a, b, a:a + H2, b:b + W2, :] = (
                y.reshape(H2, W2, C1p).astype(cls_dtype))

    # ---- stage 2: conv + BN on the VMEM-resident (parity-split) activation.
    acc2 = jnp.zeros((M2, C2p), jnp.float32)
    for ki in range(3):
        a, r0 = _TAP[ki]
        for kj in range(3):
            b, c0 = _TAP[kj]
            patch = cls_ref[a, b, r0:r0 + H2, c0:c0 + W2, :]
            acc2 = acc2 + jnp.dot(patch.reshape(M2, C1p),
                                  w2_ref[ki * 3 + kj],
                                  preferred_element_type=jnp.float32)
    o_ref[...] = (acc2 + s2_ref[...]).astype(o_ref.dtype)


# ---------------------------------------------------------------------------
# Wrapper
# ---------------------------------------------------------------------------
def _fold_bn(conv_bias, gamma, beta, mean, var, eps=1e-5):
    scale = gamma / jnp.sqrt(var + eps)
    shift = (conv_bias - mean) * scale + beta
    return scale.astype(jnp.float32), shift.astype(jnp.float32)


def _vmem_bytes(shape, dtype):
    s = list(shape)
    s[-1] = _round_up(s[-1], 128)
    if len(s) >= 2:
        s[-2] = _round_up(s[-2], 8)
    return math.prod(s) * jnp.dtype(dtype).itemsize


def stack_conv_patch_embed(x_nchw, params, kernel_size=3, stride=2,
                           compute_dtype=jnp.float32):
    """Fused forward of StackConvPatchEmbed.  Input/output NCHW (PyTorch)."""
    assert kernel_size == 3 and stride == 2, "fused kernel assumes k=3, s=2, p=1"
    N, Cin, H, W = x_nchw.shape
    # TODO(synk): the fused kernel requires H % 4 == 0 and W % 4 == 0 (true for
    # MogaNet's 224x224 inputs); other sizes would need a boundary path.
    assert H % 4 == 0 and W % 4 == 0, (H, W)
    H1, W1 = H // 2, W // 2
    H2, W2 = H // 4, W // 4

    w1 = params["w1"]                      # (C1, Cin, 3, 3)  PyTorch layout
    w2 = params["w2"]                      # (C2, C1, 3, 3)
    C1, C2 = w1.shape[0], w2.shape[0]
    Cp = _round_up(Cin, 8)
    C1p = _round_up(C1, 8)
    C2p = _round_up(C2, 128)               # lane-dense final store

    scale1, shift1 = _fold_bn(params["b1"], params["bn1_gamma"],
                              params["bn1_beta"], params["bn1_mean"],
                              params["bn1_var"])
    scale2, shift2 = _fold_bn(params["b2"], params["bn2_gamma"],
                              params["bn2_beta"], params["bn2_mean"],
                              params["bn2_var"])

    # Conv weights -> (9, Cin_p, Cout_p) matmul form with BN scale folded in.
    w1m = jnp.transpose(w1, (2, 3, 1, 0)) * scale1          # (3,3,Cin,C1)
    w1m = jnp.pad(w1m, ((0, 0), (0, 0), (0, Cp - Cin), (0, C1p - C1)))
    w1m = w1m.reshape(9, Cp, C1p).astype(compute_dtype)
    s1 = jnp.pad(shift1, (0, C1p - C1)).reshape(1, C1p)

    w2m = jnp.transpose(w2, (2, 3, 1, 0)) * scale2          # (3,3,C1,C2)
    w2m = jnp.pad(w2m, ((0, 0), (0, 0), (0, C1p - C1), (0, C2p - C2)))
    w2m = w2m.reshape(9, C1p, C2p).astype(compute_dtype)
    s2 = jnp.pad(shift2, (0, C2p - C2)).reshape(1, C2p)

    # NCHW -> NHWC, conv padding (1 before, 3 after so the dim is 4-divisible),
    # channel pad, then the mod-4 space-to-depth layout (N, 4, H/4+1, W/4+1, 4*Cp).
    x = jnp.transpose(x_nchw, (0, 2, 3, 1))
    x = jnp.pad(x, ((0, 0), (1, 3), (1, 3), (0, Cp - Cin)))
    xq = x.reshape(N, H2 + 1, 4, W2 + 1, 4 * Cp)
    xq = jnp.transpose(xq, (0, 2, 1, 3, 4)).astype(compute_dtype)

    kernel = functools.partial(_fused_stem_kernel, H2=H2, W2=W2,
                               Cp=Cp, C1p=C1p, C2p=C2p)

    # VMEM budget (double-buffered blocks + weights + scratch) with headroom.
    est = (2 * (_vmem_bytes((4, H2 + 1, W2 + 1, 4 * Cp), compute_dtype)
                + _vmem_bytes((H2 * W2, C2p), jnp.float32))
           + 2 * (_vmem_bytes((9, Cp, C1p), compute_dtype)
                  + _vmem_bytes((9, C1p, C2p), compute_dtype)
                  + _vmem_bytes((1, C1p), jnp.float32)
                  + _vmem_bytes((1, C2p), jnp.float32))
           + _vmem_bytes((2, 2, H2 + 1, W2 + 1, C1p), compute_dtype))
    vmem_limit = int(min(max(2 * est, 24 << 20), 48 << 20))

    flops = 2 * 9 * N * (H1 * W1 * Cp * C1p + H2 * W2 * C1p * C2p)
    bytes_accessed = (xq.size * xq.dtype.itemsize
                      + w1m.size * w1m.dtype.itemsize
                      + w2m.size * w2m.dtype.itemsize
                      + s1.size * 4 + s2.size * 4
                      + N * H2 * W2 * C2p * 4)
    cost = pl.CostEstimate(flops=flops,
                           transcendentals=N * H1 * W1 * C1p,
                           bytes_accessed=bytes_accessed)

    out = pl.pallas_call(
        kernel,
        out_shape=jax.ShapeDtypeStruct((N, H2 * W2, C2p), jnp.float32),
        grid_spec=pltpu.PrefetchScalarGridSpec(
            num_scalar_prefetch=0,
            grid=(N,),
            in_specs=[
                pl.BlockSpec((None, 4, H2 + 1, W2 + 1, 4 * Cp),
                             lambda b: (b, 0, 0, 0, 0)),
                pl.BlockSpec((9, Cp, C1p), lambda b: (0, 0, 0)),
                pl.BlockSpec((1, C1p), lambda b: (0, 0)),
                pl.BlockSpec((9, C1p, C2p), lambda b: (0, 0, 0)),
                pl.BlockSpec((1, C2p), lambda b: (0, 0)),
            ],
            out_specs=pl.BlockSpec((None, H2 * W2, C2p), lambda b: (b, 0, 0)),
            scratch_shapes=[pltpu.VMEM((2, 2, H2 + 1, W2 + 1, C1p),
                                       compute_dtype)],
        ),
        compiler_params=pltpu.CompilerParams(
            dimension_semantics=("parallel",),
            vmem_limit_bytes=vmem_limit),
        cost_estimate=cost,
    )(xq, w1m, s1, w2m, s2)

    out = out.reshape(N, H2, W2, C2p)[..., :C2]
    out = jnp.transpose(out, (0, 3, 1, 2))            # NHWC -> NCHW
    return out, (H2, W2)


# ---------------------------------------------------------------------------
# Pure-JAX reference (lax conv) for correctness checking
# ---------------------------------------------------------------------------
def _ref_forward(x_nchw, params, kernel_size=3, stride=2):
    pad = kernel_size // 2
    eps = 1e-5

    def conv(x, w, b):
        y = jax.lax.conv_general_dilated(
            x, w, window_strides=(stride, stride),
            padding=((pad, pad), (pad, pad)),
            dimension_numbers=("NCHW", "OIHW", "NCHW"))
        return y + b[None, :, None, None]

    def bn(x, g, b, m, v):
        return (x - m[None, :, None, None]) / jnp.sqrt(v[None, :, None, None] + eps) \
            * g[None, :, None, None] + b[None, :, None, None]

    y = conv(x_nchw, params["w1"], params["b1"])
    y = bn(y, params["bn1_gamma"], params["bn1_beta"], params["bn1_mean"], params["bn1_var"])
    y = 0.5 * y * (1.0 + jax.lax.erf(y / jnp.sqrt(2.0)))
    y = conv(y, params["w2"], params["b2"])
    y = bn(y, params["bn2_gamma"], params["bn2_beta"], params["bn2_mean"], params["bn2_var"])
    return y, (y.shape[2], y.shape[3])


# ---------------------------------------------------------------------------
def _init_params(key, in_channels, embed_dims, kernel_size=3):
    mid = embed_dims // 2
    ks = jax.random.split(key, 8)
    fan1 = in_channels * kernel_size * kernel_size
    fan2 = mid * kernel_size * kernel_size
    return {
        "w1": jax.random.normal(ks[0], (mid, in_channels, kernel_size, kernel_size),
                                jnp.float32) / math.sqrt(fan1),
        "b1": jax.random.normal(ks[1], (mid,), jnp.float32) * 0.02,
        "bn1_gamma": 1.0 + 0.1 * jax.random.normal(ks[2], (mid,), jnp.float32),
        "bn1_beta": 0.05 * jax.random.normal(ks[3], (mid,), jnp.float32),
        "bn1_mean": 0.1 * jax.random.normal(ks[4], (mid,), jnp.float32),
        "bn1_var": jnp.abs(1.0 + 0.1 * jax.random.normal(ks[5], (mid,), jnp.float32)),
        "w2": jax.random.normal(ks[6], (embed_dims, mid, kernel_size, kernel_size),
                                jnp.float32) / math.sqrt(fan2),
        "b2": jax.random.normal(ks[7], (embed_dims,), jnp.float32) * 0.02,
        "bn2_gamma": jnp.linspace(0.9, 1.1, embed_dims, dtype=jnp.float32),
        "bn2_beta": jnp.linspace(-0.05, 0.05, embed_dims, dtype=jnp.float32),
        "bn2_mean": jnp.linspace(-0.1, 0.1, embed_dims, dtype=jnp.float32),
        "bn2_var": jnp.linspace(0.8, 1.2, embed_dims, dtype=jnp.float32),
    }


if __name__ == "__main__":
    key = jax.random.PRNGKey(0)
    kx, kp = jax.random.split(key)

    N, Cin, H, W = 2, 4, 16, 16
    embed_dims = 32

    x = jax.random.normal(kx, (N, Cin, H, W), jnp.float32)
    params = _init_params(kp, Cin, embed_dims)

    ref, ref_size = _ref_forward(x, params)

    # f32 path: strict check against the lax.conv reference.
    out, out_size = stack_conv_patch_embed(x, params)
    out = jax.block_until_ready(out)
    assert out.shape == (N, embed_dims, H // 4, W // 4), out.shape
    assert out_size == ref_size == (H // 4, W // 4)
    assert jnp.allclose(out, ref, atol=1e-4, rtol=1e-4), \
        float(jnp.max(jnp.abs(out - ref)))

    # bf16 MXU-operand path (f32 accumulation / f32 epilogue): loose sanity check.
    out_bf16, _ = stack_conv_patch_embed(x, params, compute_dtype=jnp.bfloat16)
    out_bf16 = jax.block_until_ready(out_bf16)
    assert jnp.allclose(out_bf16, ref, atol=2.5e-1, rtol=1e-1), \
        float(jnp.max(jnp.abs(out_bf16 - ref)))

    print("KERNEL_OK")
</pallas_src>

<mosaic_0001>
module attributes {stable_mosaic.version = 11 : i64} {
  func.func @_fused_stem_kernel(%arg0: i32, %arg1: memref<1x4x5x5x32xf32, #tpu.memory_space<vmem>>, %arg2: memref<9x8x16xf32, #tpu.memory_space<vmem>>, %arg3: memref<1x16xf32, #tpu.memory_space<vmem>>, %arg4: memref<9x16x128xf32, #tpu.memory_space<vmem>>, %arg5: memref<1x128xf32, #tpu.memory_space<vmem>>, %arg6: memref<1x16x128xf32, #tpu.memory_space<vmem>>, %arg7: memref<2x2x5x5x16xf32, #tpu.memory_space<vmem>>) attributes {dimension_semantics = [#tpu.dimension_semantics<parallel>], iteration_bounds = array<i64: 2>, scalar_prefetch = 0 : i64, scratch_operands = 1 : i64, tpu.core_type = #tpu.core_type<tc>, window_params = [{transform_indices = @transform_0, window_bounds = array<i64: 1, 4, 5, 5, 32>}, {pipeline_mode = #tpu.pipeline_mode<synchronous>, transform_indices = @transform_1, window_bounds = array<i64: 9, 8, 16>}, {pipeline_mode = #tpu.pipeline_mode<synchronous>, transform_indices = @transform_2, window_bounds = array<i64: 1, 16>}, {pipeline_mode = #tpu.pipeline_mode<synchronous>, transform_indices = @transform_3, window_bounds = array<i64: 9, 16, 128>}, {pipeline_mode = #tpu.pipeline_mode<synchronous>, transform_indices = @transform_4, window_bounds = array<i64: 1, 128>}, {transform_indices = @transform_5, window_bounds = array<i64: 1, 16, 128>}]} {
    %cst = arith.constant 0.000000e+00 : f32
    %0 = vector.broadcast %cst : f32 to vector<1x5x16xf32>
    %cst_0 = arith.constant 0.000000e+00 : f32
    %1 = vector.broadcast %cst_0 : f32 to vector<5x1x16xf32>
    %c1 = arith.constant 1 : index
    %c0 = arith.constant 0 : index
    %c0_1 = arith.constant 0 : index
    %c0_2 = arith.constant 0 : index
    %c0_3 = arith.constant 0 : index
    %2 = vector.load %arg7[%c1, %c0, %c0_1, %c0_2, %c0_3] : memref<2x2x5x5x16xf32, #tpu.memory_space<vmem>>, vector<1x1x1x5x16xf32>
    %3 = vector.shape_cast %2 : vector<1x1x1x5x16xf32> to vector<1x5x16xf32>
    %4 = vector.shape_cast %0 : vector<1x5x16xf32> to vector<1x1x1x5x16xf32>
    tpu.vector_store %arg7[%c1, %c0, %c0_1, %c0_2, %c0_3], %4 {strides = array<i32>} : memref<2x2x5x5x16xf32, #tpu.memory_space<vmem>>, vector<1x1x1x5x16xf32>,
    %c1_4 = arith.constant 1 : index
    %c1_5 = arith.constant 1 : index
    %c0_6 = arith.constant 0 : index
    %c0_7 = arith.constant 0 : index
    %c0_8 = arith.constant 0 : index
    %5 = vector.load %arg7[%c1_4, %c1_5, %c0_6, %c0_7, %c0_8] : memref<2x2x5x5x16xf32, #tpu.memory_space<vmem>>, vector<1x1x1x5x16xf32>
    %6 = vector.shape_cast %5 : vector<1x1x1x5x16xf32> to vector<1x5x16xf32>
    %7 = vector.shape_cast %0 : vector<1x5x16xf32> to vector<1x1x1x5x16xf32>
    tpu.vector_store %arg7[%c1_4, %c1_5, %c0_6, %c0_7, %c0_8], %7 {strides = array<i32>} : memref<2x2x5x5x16xf32, #tpu.memory_space<vmem>>, vector<1x1x1x5x16xf32>,
    %c0_9 = arith.constant 0 : index
    %c1_10 = arith.constant 1 : index
    %c0_11 = arith.constant 0 : index
    %c0_12 = arith.constant 0 : index
    %c0_13 = arith.constant 0 : index
    %8 = vector.load %arg7[%c0_9, %c1_10, %c0_11, %c0_12, %c0_13] : memref<2x2x5x5x16xf32, #tpu.memory_space<vmem>>, vector<1x1x5x1x16xf32>
    %9 = vector.shape_cast %8 : vector<1x1x5x1x16xf32> to vector<5x1x16xf32>
    %10 = vector.shape_cast %1 : vector<5x1x16xf32> to vector<1x1x5x1x16xf32>
    tpu.vector_store %arg7[%c0_9, %c1_10, %c0_11, %c0_12, %c0_13], %10 {strides = array<i32>} : memref<2x2x5x5x16xf32, #tpu.memory_space<vmem>>, vector<1x1x5x1x16xf32>,
    %c1_14 = arith.constant 1 : index
    %c1_15 = arith.constant 1 : index
    %c0_16 = arith.constant 0 : index
    %c0_17 = arith.constant 0 : index
    %c0_18 = arith.constant 0 : index
    %11 = vector.load %arg7[%c1_14, %c1_15, %c0_16, %c0_17, %c0_18] : memref<2x2x5x5x16xf32, #tpu.memory_space<vmem>>, vector<1x1x5x1x16xf32>
    %12 = vector.shape_cast %11 : vector<1x1x5x1x16xf32> to vector<5x1x16xf32>
    %13 = vector.shape_cast %1 : vector<5x1x16xf32> to vector<1x1x5x1x16xf32>
    tpu.vector_store %arg7[%c1_14, %c1_15, %c0_16, %c0_17, %c0_18], %13 {strides = array<i32>} : memref<2x2x5x5x16xf32, #tpu.memory_space<vmem>>, vector<1x1x5x1x16xf32>,
    %c0_19 = arith.constant 0 : index
    %c0_20 = arith.constant 0 : index
    %14 = vector.load %arg3[%c0_19, %c0_20] : memref<1x16xf32, #tpu.memory_space<vmem>>, vector<1x16xf32>
    %cst_21 = arith.constant 0.000000e+00 : f32
    %15 = vector.broadcast %cst_21 : f32 to vector<16x16xf32>
    %c0_22 = arith.constant 0 : index
    %c0_23 = arith.constant 0 : index
    %c0_24 = arith.constant 0 : index
    %c0_25 = arith.constant 0 : index
    %c0_26 = arith.constant 0 : index
    %16 = vector.load %arg1[%c0_22, %c0_23, %c0_24, %c0_25, %c0_26] : memref<1x4x5x5x32xf32, #tpu.memory_space<vmem>>, vector<1x1x4x4x8xf32>
    %17 = vector.shape_cast %16 : vector<1x1x4x4x8xf32> to vector<4x4x8xf32>
    %18 = vector.shape_cast %17 : vector<4x4x8xf32> to vector<16x8xf32>
    %c0_27 = arith.constant 0 : index
    %c0_28 = arith.constant 0 : index
    %c0_29 = arith.constant 0 : index
    %19 = vector.load %arg2[%c0_27, %c0_28, %c0_29] : memref<9x8x16xf32, #tpu.memory_space<vmem>>, vector<1x8x16xf32>
    %20 = vector.shape_cast %19 : vector<1x8x16xf32> to vector<8x16xf32>
    %cst_30 = arith.constant dense<0.000000e+00> : vector<16x16xf32>
    %21 = tpu.matmul %18, %20, %cst_30 {dimension_numbers = #tpu.dot_dimension_numbers<[1], [0], [0], [1], [0, 0, 1, 1], [], []>} : vector<16x8xf32>, vector<8x16xf32>, vector<16x16xf32> -> vector<16x16xf32>
    %22 = arith.addf %15, %21 : vector<16x16xf32>
    %c0_31 = arith.constant 0 : index
    %c0_32 = arith.constant 0 : index
    %c0_33 = arith.constant 0 : index
    %c0_34 = arith.constant 0 : index
    %c8 = arith.constant 8 : index
    %23 = vector.load %arg1[%c0_31, %c0_32, %c0_33, %c0_34, %c8] : memref<1x4x5x5x32xf32, #tpu.memory_space<vmem>>, vector<1x1x4x4x8xf32>
    %24 = vector.shape_cast %23 : vector<1x1x4x4x8xf32> to vector<4x4x8xf32>
    %25 = vector.shape_cast %24 : vector<4x4x8xf32> to vector<16x8xf32>
    %c1_35 = arith.constant 1 : index
    %c0_36 = arith.constant 0 : index
    %c0_37 = arith.constant 0 : index
    %26 = vector.load %arg2[%c1_35, %c0_36, %c0_37] : memref<9x8x16xf32, #tpu.memory_space<vmem>>, vector<1x8x16xf32>
    %27 = vector.shape_cast %26 : vector<1x8x16xf32> to vector<8x16xf32>
    %cst_38 = arith.constant dense<0.000000e+00> : vector<16x16xf32>
    %28 = tpu.matmul %25, %27, %cst_38 {dimension_numbers = #tpu.dot_dimension_numbers<[1], [0], [0], [1], [0, 0, 1, 1], [], []>} : vector<16x8xf32>, vector<8x16xf32>, vector<16x16xf32> -> vector<16x16xf32>
    %29 = arith.addf %22, %28 : vector<16x16xf32>
    %c0_39 = arith.constant 0 : index
    %c0_40 = arith.constant 0 : index
    %c0_41 = arith.constant 0 : index
    %c0_42 = arith.constant 0 : index
    %c16 = arith.constant 16 : index
    %30 = vector.load %arg1[%c0_39, %c0_40, %c0_41, %c0_42, %c16] : memref<1x4x5x5x32xf32, #tpu.memory_space<vmem>>, vector<1x1x4x4x8xf32>
    %31 = vector.shape_cast %30 : vector<1x1x4x4x8xf32> to vector<4x4x8xf32>
    %32 = vector.shape_cast %31 : vector<4x4x8xf32> to vector<16x8xf32>
    %c2 = arith.constant 2 : index
    %c0_43 = arith.constant 0 : index
    %c0_44 = arith.constant 0 : index
    %33 = vector.load %arg2[%c2, %c0_43, %c0_44] : memref<9x8x16xf32, #tpu.memory_space<vmem>>, vector<1x8x16xf32>
    %34 = vector.shape_cast %33 : vector<1x8x16xf32> to vector<8x16xf32>
    %cst_45 = arith.constant dense<0.000000e+00> : vector<16x16xf32>
    %35 = tpu.matmul %32, %34, %cst_45 {dimension_numbers = #tpu.dot_dimension_numbers<[1], [0], [0], [1], [0, 0, 1, 1], [], []>} : vector<16x8xf32>, vector<8x16xf32>, vector<16x16xf32> -> vector<16x16xf32>
    %36 = arith.addf %29, %35 : vector<16x16xf32>
    %c0_46 = arith.constant 0 : index
    %c1_47 = arith.constant 1 : index
    %c0_48 = arith.constant 0 : index
    %c0_49 = arith.constant 0 : index
    %c0_50 = arith.constant 0 : index
    %37 = vector.load %arg1[%c0_46, %c1_47, %c0_48, %c0_49, %c0_50] : memref<1x4x5x5x32xf32, #tpu.memory_space<vmem>>, vector<1x1x4x4x8xf32>
    %38 = vector.shape_cast %37 : vector<1x1x4x4x8xf32> to vector<4x4x8xf32>
    %39 = vector.shape_cast %38 : vector<4x4x8xf32> to vector<16x8xf32>
    %c3 = arith.constant 3 : index
    %c0_51 = arith.constant 0 : index
    %c0_52 = arith.constant 0 : index
    %40 = vector.load %arg2[%c3, %c0_51, %c0_52] : memref<9x8x16xf32, #tpu.memory_space<vmem>>, vector<1x8x16xf32>
    %41 = vector.shape_cast %40 : vector<1x8x16xf32> to vector<8x16xf32>
    %cst_53 = arith.constant dense<0.000000e+00> : vector<16x16xf32>
    %42 = tpu.matmul %39, %41, %cst_53 {dimension_numbers = #tpu.dot_dimension_numbers<[1], [0], [0], [1], [0, 0, 1, 1], [], []>} : vector<16x8xf32>, vector<8x16xf32>, vector<16x16xf32> -> vector<16x16xf32>
    %43 = arith.addf %36, %42 : vector<16x16xf32>
    %c0_54 = arith.constant 0 : index
    %c1_55 = arith.constant 1 : index
    %c0_56 = arith.constant 0 : index
    %c0_57 = arith.constant 0 : index
    %c8_58 = arith.constant 8 : index
    %44 = vector.load %arg1[%c0_54, %c1_55, %c0_56, %c0_57, %c8_58] : memref<1x4x5x5x32xf32, #tpu.memory_space<vmem>>, vector<1x1x4x4x8xf32>
    %45 = vector.shape_cast %44 : vector<1x1x4x4x8xf32> to vector<4x4x8xf32>
    %46 = vector.shape_cast %45 : vector<4x4x8xf32> to vector<16x8xf32>
    %c4 = arith.constant 4 : index
    %c0_59 = arith.constant 0 : index
    %c0_60 = arith.constant 0 : index
    %47 = vector.load %arg2[%c4, %c0_59, %c0_60] : memref<9x8x16xf32, #tpu.memory_space<vmem>>, vector<1x8x16xf32>
    %48 = vector.shape_cast %47 : vector<1x8x16xf32> to vector<8x16xf32>
    %cst_61 = arith.constant dense<0.000000e+00> : vector<16x16xf32>
    %49 = tpu.matmul %46, %48, %cst_61 {dimension_numbers = #tpu.dot_dimension_numbers<[1], [0], [0], [1], [0, 0, 1, 1], [], []>} : vector<16x8xf32>, vector<8x16xf32>, vector<16x16xf32> -> vector<16x16xf32>
    %50 = arith.addf %43, %49 : vector<16x16xf32>
    %c0_62 = arith.constant 0 : index
    %c1_63 = arith.constant 1 : index
    %c0_64 = arith.constant 0 : index
    %c0_65 = arith.constant 0 : index
    %c16_66 = arith.constant 16 : index
    %51 = vector.load %arg1[%c0_62, %c1_63, %c0_64, %c0_65, %c16_66] : memref<1x4x5x5x32xf32, #tpu.memory_space<vmem>>, vector<1x1x4x4x8xf32>
    %52 = vector.shape_cast %51 : vector<1x1x4x4x8xf32> to vector<4x4x8xf32>
    %53 = vector.shape_cast %52 : vector<4x4x8xf32> to vector<16x8xf32>
    %c5 = arith.constant 5 : index
    %c0_67 = arith.constant 0 : index
    %c0_68 = arith.constant 0 : index
    %54 = vector.load %arg2[%c5, %c0_67, %c0_68] : memref<9x8x16xf32, #tpu.memory_space<vmem>>, vector<1x8x16xf32>
    %55 = vector.shape_cast %54 : vector<1x8x16xf32> to vector<8x16xf32>
    %cst_69 = arith.constant dense<0.000000e+00> : vector<16x16xf32>
    %56 = tpu.matmul %53, %55, %cst_69 {dimension_numbers = #tpu.dot_dimension_numbers<[1], [0], [0], [1], [0, 0, 1, 1], [], []>} : vector<16x8xf32>, vector<8x16xf32>, vector<16x16xf32> -> vector<16x16xf32>
    %57 = arith.addf %50, %56 : vector<16x16xf32>
    %c0_70 = arith.constant 0 : index
    %c2_71 = arith.constant 2 : index
    %c0_72 = arith.constant 0 : index
    %c0_73 = arith.constant 0 : index
    %c0_74 = arith.constant 0 : index
    %58 = vector.load %arg1[%c0_70, %c2_71, %c0_72, %c0_73, %c0_74] : memref<1x4x5x5x32xf32, #tpu.memory_space<vmem>>, vector<1x1x4x4x8xf32>
    %59 = vector.shape_cast %58 : vector<1x1x4x4x8xf32> to vector<4x4x8xf32>
    %60 = vector.shape_cast %59 : vector<4x4x8xf32> to vector<16x8xf32>
    %c6 = arith.constant 6 : index
    %c0_75 = arith.constant 0 : index
    %c0_76 = arith.constant 0 : index
    %61 = vector.load %arg2[%c6, %c0_75, %c0_76] : memref<9x8x16xf32, #tpu.memory_space<vmem>>, vector<1x8x16xf32>
    %62 = vector.shape_cast %61 : vector<1x8x16xf32> to vector<8x16xf32>
    %cst_77 = arith.constant dense<0.000000e+00> : vector<16x16xf32>
    %63 = tpu.matmul %60, %62, %cst_77 {dimension_numbers = #tpu.dot_dimension_numbers<[1], [0], [0], [1], [0, 0, 1, 1], [], []>} : vector<16x8xf32>, vector<8x16xf32>, vector<16x16xf32> -> vector<16x16xf32>
    %64 = arith.addf %57, %63 : vector<16x16xf32>
    %c0_78 = arith.constant 0 : index
    %c2_79 = arith.constant 2 : index
    %c0_80 = arith.constant 0 : index
    %c0_81 = arith.constant 0 : index
    %c8_82 = arith.constant 8 : index
    %65 = vector.load %arg1[%c0_78, %c2_79, %c0_80, %c0_81, %c8_82] : memref<1x4x5x5x32xf32, #tpu.memory_space<vmem>>, vector<1x1x4x4x8xf32>
    %66 = vector.shape_cast %65 : vector<1x1x4x4x8xf32> to vector<4x4x8xf32>
    %67 = vector.shape_cast %66 : vector<4x4x8xf32> to vector<16x8xf32>
    %c7 = arith.constant 7 : index
    %c0_83 = arith.constant 0 : index
    %c0_84 = arith.constant 0 : index
    %68 = vector.load %arg2[%c7, %c0_83, %c0_84] : memref<9x8x16xf32, #tpu.memory_space<vmem>>, vector<1x8x16xf32>
    %69 = vector.shape_cast %68 : vector<1x8x16xf32> to vector<8x16xf32>
    %cst_85 = arith.constant dense<0.000000e+00> : vector<16x16xf32>
    %70 = tpu.matmul %67, %69, %cst_85 {dimension_numbers = #tpu.dot_dimension_numbers<[1], [0], [0], [1], [0, 0, 1, 1], [], []>} : vector<16x8xf32>, vector<8x16xf32>, vector<16x16xf32> -> vector<16x16xf32>
    %71 = arith.addf %64, %70 : vector<16x16xf32>
    %c0_86 = arith.constant 0 : index
    %c2_87 = arith.constant 2 : index
    %c0_88 = arith.constant 0 : index
    %c0_89 = arith.constant 0 : index
    %c16_90 = arith.constant 16 : index
    %72 = vector.load %arg1[%c0_86, %c2_87, %c0_88, %c0_89, %c16_90] : memref<1x4x5x5x32xf32, #tpu.memory_space<vmem>>, vector<1x1x4x4x8xf32>
    %73 = vector.shape_cast %72 : vector<1x1x4x4x8xf32> to vector<4x4x8xf32>
    %74 = vector.shape_cast %73 : vector<4x4x8xf32> to vector<16x8xf32>
    %c8_91 = arith.constant 8 : index
    %c0_92 = arith.constant 0 : index
    %c0_93 = arith.constant 0 : index
    %75 = vector.load %arg2[%c8_91, %c0_92, %c0_93] : memref<9x8x16xf32, #tpu.memory_space<vmem>>, vector<1x8x16xf32>
    %76 = vector.shape_cast %75 : vector<1x8x16xf32> to vector<8x16xf32>
    %cst_94 = arith.constant dense<0.000000e+00> : vector<16x16xf32>
    %77 = tpu.matmul %74, %76, %cst_94 {dimension_numbers = #tpu.dot_dimension_numbers<[1], [0], [0], [1], [0, 0, 1, 1], [], []>} : vector<16x8xf32>, vector<8x16xf32>, vector<16x16xf32> -> vector<16x16xf32>
    %78 = arith.addf %71, %77 : vector<16x16xf32>
    %79 = vector.broadcast %14 : vector<1x16xf32> to vector<16x16xf32>
    %80 = arith.addf %78, %79 : vector<16x16xf32>
    %cst_95 = arith.constant 5.000000e-01 : f32
    %81 = vector.broadcast %cst_95 : f32 to vector<16x16xf32>
    %82 = arith.mulf %81, %80 : vector<16x16xf32>
    %cst_96 = arith.constant 0.707106769 : f32
    %83 = vector.broadcast %cst_96 : f32 to vector<16x16xf32>
    %84 = arith.mulf %80, %83 : vector<16x16xf32>
    %85 = math.erf %84 : vector<16x16xf32>
    %cst_97 = arith.constant 1.000000e+00 : f32
    %86 = vector.broadcast %cst_97 : f32 to vector<16x16xf32>
    %87 = arith.addf %86, %85 : vector<16x16xf32>
    %88 = arith.mulf %82, %87 : vector<16x16xf32>
    %89 = vector.shape_cast %88 : vector<16x16xf32> to vector<4x4x16xf32>
    %c0_98 = arith.constant 0 : index
    %c0_99 = arith.constant 0 : index
    %c0_100 = arith.constant 0 : index
    %c0_101 = arith.constant 0 : index
    %c0_102 = arith.constant 0 : index
    %90 = vector.load %arg7[%c0_98, %c0_99, %c0_100, %c0_101, %c0_102] : memref<2x2x5x5x16xf32, #tpu.memory_space<vmem>>, vector<1x1x4x4x16xf32>
    %91 = vector.shape_cast %90 : vector<1x1x4x4x16xf32> to vector<4x4x16xf32>
    %92 = vector.shape_cast %89 : vector<4x4x16xf32> to vector<1x1x4x4x16xf32>
    tpu.vector_store %arg7[%c0_98, %c0_99, %c0_100, %c0_101, %c0_102], %92 {strides = array<i32>} : memref<2x2x5x5x16xf32, #tpu.memory_space<vmem>>, vector<1x1x4x4x16xf32>,
    %cst_103 = arith.constant 0.000000e+00 : f32
    %93 = vector.broadcast %cst_103 : f32 to vector<16x16xf32>
    %c0_104 = arith.constant 0 : index
    %c0_105 = arith.constant 0 : index
    %c0_106 = arith.constant 0 : index
    %c0_107 = arith.constant 0 : index
    %c16_108 = arith.constant 16 : index
    %94 = vector.load %arg1[%c0_104, %c0_105, %c0_106, %c0_107, %c16_108] : memref<1x4x5x5x32xf32, #tpu.memory_space<vmem>>, vector<1x1x4x4x8xf32>
    %95 = vector.shape_cast %94 : vector<1x1x4x4x8xf32> to vector<4x4x8xf32>
    %96 = vector.shape_cast %95 : vector<4x4x8xf32> to vector<16x8xf32>
    %c0_109 = arith.constant 0 : index
    %c0_110 = arith.constant 0 : index
    %c0_111 = arith.constant 0 : index
    %97 = vector.load %arg2[%c0_109, %c0_110, %c0_111] : memref<9x8x16xf32, #tpu.memory_space<vmem>>, vector<1x8x16xf32>
    %98 = vector.shape_cast %97 : vector<1x8x16xf32> to vector<8x16xf32>
    %cst_112 = arith.constant dense<0.000000e+00> : vector<16x16xf32>
    %99 = tpu.matmul %96, %98, %cst_112 {dimension_numbers = #tpu.dot_dimension_numbers<[1], [0], [0], [1], [0, 0, 1, 1], [], []>} : vector<16x8xf32>, vector<8x16xf32>, vector<16x16xf32> -> vector<16x16xf32>
    %100 = arith.addf %93, %99 : vector<16x16xf32>
    %c0_113 = arith.constant 0 : index
    %c0_114 = arith.constant 0 : index
    %c0_115 = arith.constant 0 : index
    %c0_116 = arith.constant 0 : index
    %c24 = arith.constant 24 : index
    %101 = vector.load %arg1[%c0_113, %c0_114, %c0_115, %c0_116, %c24] : memref<1x4x5x5x32xf32, #tpu.memory_space<vmem>>, vector<1x1x4x4x8xf32>
    %102 = vector.shape_cast %101 : vector<1x1x4x4x8xf32> to vector<4x4x8xf32>
    %103 = vector.shape_cast %102 : vector<4x4x8xf32> to vector<16x8xf32>
    %c1_117 = arith.constant 1 : index
    %c0_118 = arith.constant 0 : index
    %c0_119 = arith.constant 0 : index
    %104 = vector.load %arg2[%c1_117, %c0_118, %c0_119] : memref<9x8x16xf32, #tpu.memory_space<vmem>>, vector<1x8x16xf32>
    %105 = vector.shape_cast %104 : vector<1x8x16xf32> to vector<8x16xf32>
    %cst_120 = arith.constant dense<0.000000e+00> : vector<16x16xf32>
    %106 = tpu.matmul %103, %105, %cst_120 {dimension_numbers = #tpu.dot_dimension_numbers<[1], [0], [0], [1], [0, 0, 1, 1], [], []>} : vector<16x8xf32>, vector<8x16xf32>, vector<16x16xf32> -> vector<16x16xf32>
    %107 = arith.addf %100, %106 : vector<16x16xf32>
    %c0_121 = arith.constant 0 : index
    %c0_122 = arith.constant 0 : index
    %c0_123 = arith.constant 0 : index
    %c1_124 = arith.constant 1 : index
    %c0_125 = arith.constant 0 : index
    %108 = vector.load %arg1[%c0_121, %c0_122, %c0_123, %c1_124, %c0_125] : memref<1x4x5x5x32xf32, #tpu.memory_space<vmem>>, vector<1x1x4x4x8xf32>
    %109 = vector.shape_cast %108 : vector<1x1x4x4x8xf32> to vector<4x4x8xf32>
    %110 = vector.shape_cast %109 : vector<4x4x8xf32> to vector<16x8xf32>
    %c2_126 = arith.constant 2 : index
    %c0_127 = arith.constant 0 : index
    %c0_128 = arith.constant 0 : index
    %111 = vector.load %arg2[%c2_126, %c0_127, %c0_128] : memref<9x8x16xf32, #tpu.memory_space<vmem>>, vector<1x8x16xf32>
    %112 = vector.shape_cast %111 : vector<1x8x16xf32> to vector<8x16xf32>
    %cst_129 = arith.constant dense<0.000000e+00> : vector<16x16xf32>
    %113 = tpu.matmul %110, %112, %cst_129 {dimension_numbers = #tpu.dot_dimension_numbers<[1], [0], [0], [1], [0, 0, 1, 1], [], []>} : vector<16x8xf32>, vector<8x16xf32>, vector<16x16xf32> -> vector<16x16xf32>
    %114 = arith.addf %107, %113 : vector<16x16xf32>
    %c0_130 = arith.constant 0 : index
    %c1_131 = arith.constant 1 : index
    %c0_132 = arith.constant 0 : index
    %c0_133 = arith.constant 0 : index
    %c16_134 = arith.constant 16 : index
    %115 = vector.load %arg1[%c0_130, %c1_131, %c0_132, %c0_133, %c16_134] : memref<1x4x5x5x32xf32, #tpu.memory_space<vmem>>, vector<1x1x4x4x8xf32>
    %116 = vector.shape_cast %115 : vector<1x1x4x4x8xf32> to vector<4x4x8xf32>
    %117 = vector.shape_cast %116 : vector<4x4x8xf32> to vector<16x8xf32>
    %c3_135 = arith.constant 3 : index
    %c0_136 = arith.constant 0 : index
    %c0_137 = arith.constant 0 : index
    %118 = vector.load %arg2[%c3_135, %c0_136, %c0_137] : memref<9x8x16xf32, #tpu.memory_space<vmem>>, vector<1x8x16xf32>
    %119 = vector.shape_cast %118 : vector<1x8x16xf32> to vector<8x16xf32>
    %cst_138 = arith.constant dense<0.000000e+00> : vector<16x16xf32>
    %120 = tpu.matmul %117, %119, %cst_138 {dimension_numbers = #tpu.dot_dimension_numbers<[1], [0], [0], [1], [0, 0, 1, 1], [], []>} : vector<16x8xf32>, vector<8x16xf32>, vector<16x16xf32> -> vector<16x16xf32>
    %121 = arith.addf %114, %120 : vector<16x16xf32>
    %c0_139 = arith.constant 0 : index
    %c1_140 = arith.constant 1 : index
    %c0_141 = arith.constant 0 : index
    %c0_142 = arith.constant 0 : index
    %c24_143 = arith.constant 24 : index
    %122 = vector.load %arg1[%c0_139, %c1_140, %c0_141, %c0_142, %c24_143] : memref<1x4x5x5x32xf32, #tpu.memory_space<vmem>>, vector<1x1x4x4x8xf32>
    %123 = vector.shape_cast %122 : vector<1x1x4x4x8xf32> to vector<4x4x8xf32>
    %124 = vector.shape_cast %123 : vector<4x4x8xf32> to vector<16x8xf32>
    %c4_144 = arith.constant 4 : index
    %c0_145 = arith.constant 0 : index
    %c0_146 = arith.constant 0 : index
    %125 = vector.load %arg2[%c4_144, %c0_145, %c0_146] : memref<9x8x16xf32, #tpu.memory_space<vmem>>, vector<1x8x16xf32>
    %126 = vector.shape_cast %125 : vector<1x8x16xf32> to vector<8x16xf32>
    %cst_147 = arith.constant dense<0.000000e+00> : vector<16x16xf32>
    %127 = tpu.matmul %124, %126, %cst_147 {dimension_numbers = #tpu.dot_dimension_numbers<[1], [0], [0], [1], [0, 0, 1, 1], [], []>} : vector<16x8xf32>, vector<8x16xf32>, vector<16x16xf32> -> vector<16x16xf32>
    %128 = arith.addf %121, %127 : vector<16x16xf32>
    %c0_148 = arith.constant 0 : index
    %c1_149 = arith.constant 1 : index
    %c0_150 = arith.constant 0 : index
    %c1_151 = arith.constant 1 : index
    %c0_152 = arith.constant 0 : index
    %129 = vector.load %arg1[%c0_148, %c1_149, %c0_150, %c1_151, %c0_152] : memref<1x4x5x5x32xf32, #tpu.memory_space<vmem>>, vector<1x1x4x4x8xf32>
    %130 = vector.shape_cast %129 : vector<1x1x4x4x8xf32> to vector<4x4x8xf32>
    %131 = vector.shape_cast %130 : vector<4x4x8xf32> to vector<16x8xf32>
    %c5_153 = arith.constant 5 : index
    %c0_154 = arith.constant 0 : index
    %c0_155 = arith.constant 0 : index
    %132 = vector.load %arg2[%c5_153, %c0_154, %c0_155] : memref<9x8x16xf32, #tpu.memory_space<vmem>>, vector<1x8x16xf32>
    %133 = vector.shape_cast %132 : vector<1x8x16xf32> to vector<8x16xf32>
    %cst_156 = arith.constant dense<0.000000e+00> : vector<16x16xf32>
    %134 = tpu.matmul %131, %133, %cst_156 {dimension_numbers = #tpu.dot_dimension_numbers<[1], [0], [0], [1], [0, 0, 1, 1], [], []>} : vector<16x8xf32>, vector<8x16xf32>, vector<16x16xf32> -> vector<16x16xf32>
    %135 = arith.addf %128, %134 : vector<16x16xf32>
    %c0_157 = arith.constant 0 : index
    %c2_158 = arith.constant 2 : index
    %c0_159 = arith.constant 0 : index
    %c0_160 = arith.constant 0 : index
    %c16_161 = arith.constant 16 : index
    %136 = vector.load %arg1[%c0_157, %c2_158, %c0_159, %c0_160, %c16_161] : memref<1x4x5x5x32xf32, #tpu.memory_space<vmem>>, vector<1x1x4x4x8xf32>
    %137 = vector.shape_cast %136 : vector<1x1x4x4x8xf32> to vector<4x4x8xf32>
    %138 = vector.shape_cast %137 : vector<4x4x8xf32> to vector<16x8xf32>
    %c6_162 = arith.constant 6 : index
    %c0_163 = arith.constant 0 : index
    %c0_164 = arith.constant 0 : index
    %139 = vector.load %arg2[%c6_162, %c0_163, %c0_164] : memref<9x8x16xf32, #tpu.memory_space<vmem>>, vector<1x8x16xf32>
    %140 = vector.shape_cast %139 : vector<1x8x16xf32> to vector<8x16xf32>
    %cst_165 = arith.constant dense<0.000000e+00> : vector<16x16xf32>
    %141 = tpu.matmul %138, %140, %cst_165 {dimension_numbers = #tpu.dot_dimension_numbers<[1], [0], [0], [1], [0, 0, 1, 1], [], []>} : vector<16x8xf32>, vector<8x16xf32>, vector<16x16xf32> -> vector<16x16xf32>
    %142 = arith.addf %135, %141 : vector<16x16xf32>
    %c0_166 = arith.constant 0 : index
    %c2_167 = arith.constant 2 : index
    %c0_168 = arith.constant 0 : index
    %c0_169 = arith.constant 0 : index
    %c24_170 = arith.constant 24 : index
    %143 = vector.load %arg1[%c0_166, %c2_167, %c0_168, %c0_169, %c24_170] : memref<1x4x5x5x32xf32, #tpu.memory_space<vmem>>, vector<1x1x4x4x8xf32>
    %144 = vector.shape_cast %143 : vector<1x1x4x4x8xf32> to vector<4x4x8xf32>
    %145 = vector.shape_cast %144 : vector<4x4x8xf32> to vector<16x8xf32>
    %c7_171 = arith.constant 7 : index
    %c0_172 = arith.constant 0 : index
    %c0_173 = arith.constant 0 : index
    %146 = vector.load %arg2[%c7_171, %c0_172, %c0_173] : memref<9x8x16xf32, #tpu.memory_space<vmem>>, vector<1x8x16xf32>
    %147 = vector.shape_cast %146 : vector<1x8x16xf32> to vector<8x16xf32>
    %cst_174 = arith.constant dense<0.000000e+00> : vector<16x16xf32>
    %148 = tpu.matmul %145, %147, %cst_174 {dimension_numbers = #tpu.dot_dimension_numbers<[1], [0], [0], [1], [0, 0, 1, 1], [], []>} : vector<16x8xf32>, vector<8x16xf32>, vector<16x16xf32> -> vector<16x16xf32>
    %149 = arith.addf %142, %148 : vector<16x16xf32>
    %c0_175 = arith.constant 0 : index
    %c2_176 = arith.constant 2 : index
    %c0_177 = arith.constant 0 : index
    %c1_178 = arith.constant 1 : index
    %c0_179 = arith.constant 0 : index
    %150 = vector.load %arg1[%c0_175, %c2_176, %c0_177, %c1_178, %c0_179] : memref<1x4x5x5x32xf32, #tpu.memory_space<vmem>>, vector<1x1x4x4x8xf32>
    %151 = vector.shape_cast %150 : vector<1x1x4x4x8xf32> to vector<4x4x8xf32>
    %152 = vector.shape_cast %151 : vector<4x4x8xf32> to vector<16x8xf32>
    %c8_180 = arith.constant 8 : index
    %c0_181 = arith.constant 0 : index
    %c0_182 = arith.constant 0 : index
    %153 = vector.load %arg2[%c8_180, %c0_181, %c0_182] : memref<9x8x16xf32, #tpu.memory_space<vmem>>, vector<1x8x16xf32>
    %154 = vector.shape_cast %153 : vector<1x8x16xf32> to vector<8x16xf32>
    %cst_183 = arith.constant dense<0.000000e+00> : vector<16x16xf32>
    %155 = tpu.matmul %152, %154, %cst_183 {dimension_numbers = #tpu.dot_dimension_numbers<[1], [0], [0], [1], [0, 0, 1, 1], [], []>} : vector<16x8xf32>, vector<8x16xf32>, vector<16x16xf32> -> vector<16x16xf32>
    %156 = arith.addf %149, %155 : vector<16x16xf32>
    %157 = vector.broadcast %14 : vector<1x16xf32> to vector<16x16xf32>
    %158 = arith.addf %156, %157 : vector<16x16xf32>
    %cst_184 = arith.constant 5.000000e-01 : f32
    %159 = vector.broadcast %cst_184 : f32 to vector<16x16xf32>
    %160 = arith.mulf %159, %158 : vector<16x16xf32>
    %cst_185 = arith.constant 0.707106769 : f32
    %161 = vector.broadcast %cst_185 : f32 to vector<16x16xf32>
    %162 = arith.mulf %158, %161 : vector<16x16xf32>
    %163 = math.erf %162 : vector<16x16xf32>
    %cst_186 = arith.constant 1.000000e+00 : f32
    %164 = vector.broadcast %cst_186 : f32 to vector<16x16xf32>
    %165 = arith.addf %164, %163 : vector<16x16xf32>
    %166 = arith.mulf %160, %165 : vector<16x16xf32>
    %167 = vector.shape_cast %166 : vector<16x16xf32> to vector<4x4x16xf32>
    %c0_187 = arith.constant 0 : index
    %c1_188 = arith.constant 1 : index
    %c0_189 = arith.constant 0 : index
    %c1_190 = arith.constant 1 : index
    %c0_191 = arith.constant 0 : index
    %168 = vector.load %arg7[%c0_187, %c1_188, %c0_189, %c1_190, %c0_191] : memref<2x2x5x5x16xf32, #tpu.memory_space<vmem>>, vector<1x1x4x4x16xf32>
    %169 = vector.shape_cast %168 : vector<1x1x4x4x16xf32> to vector<4x4x16xf32>
    %170 = vector.shape_cast %167 : vector<4x4x16xf32> to vector<1x1x4x4x16xf32>
    tpu.vector_store %arg7[%c0_187, %c1_188, %c0_189, %c1_190, %c0_191], %170 {strides = array<i32>} : memref<2x2x5x5x16xf32, #tpu.memory_space<vmem>>, vector<1x1x4x4x16xf32>,
    %cst_192 = arith.constant 0.000000e+00 : f32
    %171 = vector.broadcast %cst_192 : f32 to vector<16x16xf32>
    %c0_193 = arith.constant 0 : index
    %c2_194 = arith.constant 2 : index
    %c0_195 = arith.constant 0 : index
    %c0_196 = arith.constant 0 : index
    %c0_197 = arith.constant 0 : index
    %172 = vector.load %arg1[%c0_193, %c2_194, %c0_195, %c0_196, %c0_197] : memref<1x4x5x5x32xf32, #tpu.memory_space<vmem>>, vector<1x1x4x4x8xf32>
    %173 = vector.shape_cast %172 : vector<1x1x4x4x8xf32> to vector<4x4x8xf32>
    %174 = vector.shape_cast %173 : vector<4x4x8xf32> to vector<16x8xf32>
    %c0_198 = arith.constant 0 : index
    %c0_199 = arith.constant 0 : index
    %c0_200 = arith.constant 0 : index
    %175 = vector.load %arg2[%c0_198, %c0_199, %c0_200] : memref<9x8x16xf32, #tpu.memory_space<vmem>>, vector<1x8x16xf32>
    %176 = vector.shape_cast %175 : vector<1x8x16xf32> to vector<8x16xf32>
    %cst_201 = arith.constant dense<0.000000e+00> : vector<16x16xf32>
    %177 = tpu.matmul %174, %176, %cst_201 {dimension_numbers = #tpu.dot_dimension_numbers<[1], [0], [0], [1], [0, 0, 1, 1], [], []>} : vector<16x8xf32>, vector<8x16xf32>, vector<16x16xf32> -> vector<16x16xf32>
    %178 = arith.addf %171, %177 : vector<16x16xf32>
    %c0_202 = arith.constant 0 : index
    %c2_203 = arith.constant 2 : index
    %c0_204 = arith.constant 0 : index
    %c0_205 = arith.constant 0 : index
    %c8_206 = arith.constant 8 : index
    %179 = vector.load %arg1[%c0_202, %c2_203, %c0_204, %c0_205, %c8_206] : memref<1x4x5x5x32xf32, #tpu.memory_space<vmem>>, vector<1x1x4x4x8xf32>
    %180 = vector.shape_cast %179 : vector<1x1x4x4x8xf32> to vector<4x4x8xf32>
    %181 = vector.shape_cast %180 : vector<4x4x8xf32> to vector<16x8xf32>
    %c1_207 = arith.constant 1 : index
    %c0_208 = arith.constant 0 : index
    %c0_209 = arith.constant 0 : index
    %182 = vector.load %arg2[%c1_207, %c0_208, %c0_209] : memref<9x8x16xf32, #tpu.memory_space<vmem>>, vector<1x8x16xf32>
    %183 = vector.shape_cast %182 : vector<1x8x16xf32> to vector<8x16xf32>
    %cst_210 = arith.constant dense<0.000000e+00> : vector<16x16xf32>
    %184 = tpu.matmul %181, %183, %cst_210 {dimension_numbers = #tpu.dot_dimension_numbers<[1], [0], [0], [1], [0, 0, 1, 1], [], []>} : vector<16x8xf32>, vector<8x16xf32>, vector<16x16xf32> -> vector<16x16xf32>
    %185 = arith.addf %178, %184 : vector<16x16xf32>
    %c0_211 = arith.constant 0 : index
    %c2_212 = arith.constant 2 : index
    %c0_213 = arith.constant 0 : index
    %c0_214 = arith.constant 0 : index
    %c16_215 = arith.constant 16 : index
    %186 = vector.load %arg1[%c0_211, %c2_212, %c0_213, %c0_214, %c16_215] : memref<1x4x5x5x32xf32, #tpu.memory_space<vmem>>, vector<1x1x4x4x8xf32>
    %187 = vector.shape_cast %186 : vector<1x1x4x4x8xf32> to vector<4x4x8xf32>
    %188 = vector.shape_cast %187 : vector<4x4x8xf32> to vector<16x8xf32>
    %c2_216 = arith.constant 2 : index
    %c0_217 = arith.constant 0 : index
    %c0_218 = arith.constant 0 : index
    %189 = vector.load %arg2[%c2_216, %c0_217, %c0_218] : memref<9x8x16xf32, #tpu.memory_space<vmem>>, vector<1x8x16xf32>
    %190 = vector.shape_cast %189 : vector<1x8x16xf32> to vector<8x16xf32>
    %cst_219 = arith.constant dense<0.000000e+00> : vector<16x16xf32>
    %191 = tpu.matmul %188, %190, %cst_219 {dimension_numbers = #tpu.dot_dimension_numbers<[1], [0], [0], [1], [0, 0, 1, 1], [], []>} : vector<16x8xf32>, vector<8x16xf32>, vector<16x16xf32> -> vector<16x16xf32>
    %192 = arith.addf %185, %191 : vector<16x16xf32>
    %c0_220 = arith.constant 0 : index
    %c3_221 = arith.constant 3 : index
    %c0_222 = arith.constant 0 : index
    %c0_223 = arith.constant 0 : index
    %c0_224 = arith.constant 0 : index
    %193 = vector.load %arg1[%c0_220, %c3_221, %c0_222, %c0_223, %c0_224] : memref<1x4x5x5x32xf32, #tpu.memory_space<vmem>>, vector<1x1x4x4x8xf32>
    %194 = vector.shape_cast %193 : vector<1x1x4x4x8xf32> to vector<4x4x8xf32>
    %195 = vector.shape_cast %194 : vector<4x4x8xf32> to vector<16x8xf32>
    %c3_225 = arith.constant 3 : index
    %c0_226 = arith.constant 0 : index
    %c0_227 = arith.constant 0 : index
    %196 = vector.load %arg2[%c3_225, %c0_226, %c0_227] : memref<9x8x16xf32, #tpu.memory_space<vmem>>, vector<1x8x16xf32>
    %197 = vector.shape_cast %196 : vector<1x8x16xf32> to vector<8x16xf32>
    %cst_228 = arith.constant dense<0.000000e+00> : vector<16x16xf32>
    %198 = tpu.matmul %195, %197, %cst_228 {dimension_numbers = #tpu.dot_dimension_numbers<[1], [0], [0], [1], [0, 0, 1, 1], [], []>} : vector<16x8xf32>, vector<8x16xf32>, vector<16x16xf32> -> vector<16x16xf32>
    %199 = arith.addf %192, %198 : vector<16x16xf32>
    %c0_229 = arith.constant 0 : index
    %c3_230 = arith.constant 3 : index
    %c0_231 = arith.constant 0 : index
    %c0_232 = arith.constant 0 : index
    %c8_233 = arith.constant 8 : index
    %200 = vector.load %arg1[%c0_229, %c3_230, %c0_231, %c0_232, %c8_233] : memref<1x4x5x5x32xf32, #tpu.memory_space<vmem>>, vector<1x1x4x4x8xf32>
    %201 = vector.shape_cast %200 : vector<1x1x4x4x8xf32> to vector<4x4x8xf32>
    %202 = vector.shape_cast %201 : vector<4x4x8xf32> to vector<16x8xf32>
    %c4_234 = arith.constant 4 : index
    %c0_235 = arith.constant 0 : index
    %c0_236 = arith.constant 0 : index
    %203 = vector.load %arg2[%c4_234, %c0_235, %c0_236] : memref<9x8x16xf32, #tpu.memory_space<vmem>>, vector<1x8x16xf32>
    %204 = vector.shape_cast %203 : vector<1x8x16xf32> to vector<8x16xf32>
    %cst_237 = arith.constant dense<0.000000e+00> : vector<16x16xf32>
    %205 = tpu.matmul %202, %204, %cst_237 {dimension_numbers = #tpu.dot_dimension_numbers<[1], [0], [0], [1], [0, 0, 1, 1], [], []>} : vector<16x8xf32>, vector<8x16xf32>, vector<16x16xf32> -> vector<16x16xf32>
    %206 = arith.addf %199, %205 : vector<16x16xf32>
    %c0_238 = arith.constant 0 : index
    %c3_239 = arith.constant 3 : index
    %c0_240 = arith.constant 0 : index
    %c0_241 = arith.constant 0 : index
    %c16_242 = arith.constant 16 : index
    %207 = vector.load %arg1[%c0_238, %c3_239, %c0_240, %c0_241, %c16_242] : memref<1x4x5x5x32xf32, #tpu.memory_space<vmem>>, vector<1x1x4x4x8xf32>
    %208 = vector.shape_cast %207 : vector<1x1x4x4x8xf32> to vector<4x4x8xf32>
    %209 = vector.shape_cast %208 : vector<4x4x8xf32> to vector<16x8xf32>
    %c5_243 = arith.constant 5 : index
    %c0_244 = arith.constant 0 : index
    %c0_245 = arith.constant 0 : index
    %210 = vector.load %arg2[%c5_243, %c0_244, %c0_245] : memref<9x8x16xf32, #tpu.memory_space<vmem>>, vector<1x8x16xf32>
    %211 = vector.shape_cast %210 : vector<1x8x16xf32> to vector<8x16xf32>
    %cst_246 = arith.constant dense<0.000000e+00> : vector<16x16xf32>
    %212 = tpu.matmul %209, %211, %cst_246 {dimension_numbers = #tpu.dot_dimension_numbers<[1], [0], [0], [1], [0, 0, 1, 1], [], []>} : vector<16x8xf32>, vector<8x16xf32>, vector<16x16xf32> -> vector<16x16xf32>
    %213 = arith.addf %206, %212 : vector<16x16xf32>
    %c0_247 = arith.constant 0 : index
    %c0_248 = arith.constant 0 : index
    %c1_249 = arith.constant 1 : index
    %c0_250 = arith.constant 0 : index
    %c0_251 = arith.constant 0 : index
    %214 = vector.load %arg1[%c0_247, %c0_248, %c1_249, %c0_250, %c0_251] : memref<1x4x5x5x32xf32, #tpu.memory_space<vmem>>, vector<1x1x4x4x8xf32>
    %215 = vector.shape_cast %214 : vector<1x1x4x4x8xf32> to vector<4x4x8xf32>
    %216 = vector.shape_cast %215 : vector<4x4x8xf32> to vector<16x8xf32>
    %c6_252 = arith.constant 6 : index
    %c0_253 = arith.constant 0 : index
    %c0_254 = arith.constant 0 : index
    %217 = vector.load %arg2[%c6_252, %c0_253, %c0_254] : memref<9x8x16xf32, #tpu.memory_space<vmem>>, vector<1x8x16xf32>
    %218 = vector.shape_cast %217 : vector<1x8x16xf32> to vector<8x16xf32>
    %cst_255 = arith.constant dense<0.000000e+00> : vector<16x16xf32>
    %219 = tpu.matmul %216, %218, %cst_255 {dimension_numbers = #tpu.dot_dimension_numbers<[1], [0], [0], [1], [0, 0, 1, 1], [], []>} : vector<16x8xf32>, vector<8x16xf32>, vector<16x16xf32> -> vector<16x16xf32>
    %220 = arith.addf %213, %219 : vector<16x16xf32>
    %c0_256 = arith.constant 0 : index
    %c0_257 = arith.constant 0 : index
    %c1_258 = arith.constant 1 : index
    %c0_259 = arith.constant 0 : index
    %c8_260 = arith.constant 8 : index
    %221 = vector.load %arg1[%c0_256, %c0_257, %c1_258, %c0_259, %c8_260] : memref<1x4x5x5x32xf32, #tpu.memory_space<vmem>>, vector<1x1x4x4x8xf32>
    %222 = vector.shape_cast %221 : vector<1x1x4x4x8xf32> to vector<4x4x8xf32>
    %223 = vector.shape_cast %222 : vector<4x4x8xf32> to vector<16x8xf32>
    %c7_261 = arith.constant 7 : index
    %c0_262 = arith.constant 0 : index
    %c0_263 = arith.constant 0 : index
    %224 = vector.load %arg2[%c7_261, %c0_262, %c0_263] : memref<9x8x16xf32, #tpu.memory_space<vmem>>, vector<1x8x16xf32>
    %225 = vector.shape_cast %224 : vector<1x8x16xf32> to vector<8x16xf32>
    %cst_264 = arith.constant dense<0.000000e+00> : vector<16x16xf32>
    %226 = tpu.matmul %223, %225, %cst_264 {dimension_numbers = #tpu.dot_dimension_numbers<[1], [0], [0], [1], [0, 0, 1, 1], [], []>} : vector<16x8xf32>, vector<8x16xf32>, vector<16x16xf32> -> vector<16x16xf32>
    %227 = arith.addf %220, %226 : vector<16x16xf32>
    %c0_265 = arith.constant 0 : index
    %c0_266 = arith.constant 0 : index
    %c1_267 = arith.constant 1 : index
    %c0_268 = arith.constant 0 : index
    %c16_269 = arith.constant 16 : index
    %228 = vector.load %arg1[%c0_265, %c0_266, %c1_267, %c0_268, %c16_269] : memref<1x4x5x5x32xf32, #tpu.memory_space<vmem>>, vector<1x1x4x4x8xf32>
    %229 = vector.shape_cast %228 : vector<1x1x4x4x8xf32> to vector<4x4x8xf32>
    %230 = vector.shape_cast %229 : vector<4x4x8xf32> to vector<16x8xf32>
    %c8_270 = arith.constant 8 : index
    %c0_271 = arith.constant 0 : index
    %c0_272 = arith.constant 0 : index
    %231 = vector.load %arg2[%c8_270, %c0_271, %c0_272] : memref<9x8x16xf32, #tpu.memory_space<vmem>>, vector<1x8x16xf32>
    %232 = vector.shape_cast %231 : vector<1x8x16xf32> to vector<8x16xf32>
    %cst_273 = arith.constant dense<0.000000e+00> : vector<16x16xf32>
    %233 = tpu.matmul %230, %232, %cst_273 {dimension_numbers = #tpu.dot_dimension_numbers<[1], [0], [0], [1], [0, 0, 1, 1], [], []>} : vector<16x8xf32>, vector<8x16xf32>, vector<16x16xf32> -> vector<16x16xf32>
    %234 = arith.addf %227, %233 : vector<16x16xf32>
    %235 = vector.broadcast %14 : vector<1x16xf32> to vector<16x16xf32>
    %236 = arith.addf %234, %235 : vector<16x16xf32>
    %cst_274 = arith.constant 5.000000e-01 : f32
    %237 = vector.broadcast %cst_274 : f32 to vector<16x16xf32>
    %238 = arith.mulf %237, %236 : vector<16x16xf32>
    %cst_275 = arith.constant 0.707106769 : f32
    %239 = vector.broadcast %cst_275 : f32 to vector<16x16xf32>
    %240 = arith.mulf %236, %239 : vector<16x16xf32>
    %241 = math.erf %240 : vector<16x16xf32>
    %cst_276 = arith.constant 1.000000e+00 : f32
    %242 = vector.broadcast %cst_276 : f32 to vector<16x16xf32>
    %243 = arith.addf %242, %241 : vector<16x16xf32>
    %244 = arith.mulf %238, %243 : vector<16x16xf32>
    %245 = vector.shape_cast %244 : vector<16x16xf32> to vector<4x4x16xf32>
    %c1_277 = arith.constant 1 : index
    %c0_278 = arith.constant 0 : index
    %c1_279 = arith.constant 1 : index
    %c0_280 = arith.constant 0 : index
    %c0_281 = arith.constant 0 : index
    %246 = vector.load %arg7[%c1_277, %c0_278, %c1_279, %c0_280, %c0_281] : memref<2x2x5x5x16xf32, #tpu.memory_space<vmem>>, vector<1x1x4x4x16xf32>
    %247 = vector.shape_cast %246 : vector<1x1x4x4x16xf32> to vector<4x4x16xf32>
    %248 = vector.shape_cast %245 : vector<4x4x16xf32> to vector<1x1x4x4x16xf32>
    tpu.vector_store %arg7[%c1_277, %c0_278, %c1_279, %c0_280, %c0_281], %248 {strides = array<i32>} : memref<2x2x5x5x16xf32, #tpu.memory_space<vmem>>, vector<1x1x4x4x16xf32>,
    %cst_282 = arith.constant 0.000000e+00 : f32
    %249 = vector.broadcast %cst_282 : f32 to vector<16x16xf32>
    %c0_283 = arith.constant 0 : index
    %c2_284 = arith.constant 2 : index
    %c0_285 = arith.constant 0 : index
    %c0_286 = arith.constant 0 : index
    %c16_287 = arith.constant 16 : index
    %250 = vector.load %arg1[%c0_283, %c2_284, %c0_285, %c0_286, %c16_287] : memref<1x4x5x5x32xf32, #tpu.memory_space<vmem>>, vector<1x1x4x4x8xf32>
    %251 = vector.shape_cast %250 : vector<1x1x4x4x8xf32> to vector<4x4x8xf32>
    %252 = vector.shape_cast %251 : vector<4x4x8xf32> to vector<16x8xf32>
    %c0_288 = arith.constant 0 : index
    %c0_289 = arith.constant 0 : index
    %c0_290 = arith.constant 0 : index
    %253 = vector.load %arg2[%c0_288, %c0_289, %c0_290] : memref<9x8x16xf32, #tpu.memory_space<vmem>>, vector<1x8x16xf32>
    %254 = vector.shape_cast %253 : vector<1x8x16xf32> to vector<8x16xf32>
    %cst_291 = arith.constant dense<0.000000e+00> : vector<16x16xf32>
    %255 = tpu.matmul %252, %254, %cst_291 {dimension_numbers = #tpu.dot_dimension_numbers<[1], [0], [0], [1], [0, 0, 1, 1], [], []>} : vector<16x8xf32>, vector<8x16xf32>, vector<16x16xf32> -> vector<16x16xf32>
    %256 = arith.addf %249, %255 : vector<16x16xf32>
    %c0_292 = arith.constant 0 : index
    %c2_293 = arith.constant 2 : index
    %c0_294 = arith.constant 0 : index
    %c0_295 = arith.constant 0 : index
    %c24_296 = arith.constant 24 : index
    %257 = vector.load %arg1[%c0_292, %c2_293, %c0_294, %c0_295, %c24_296] : memref<1x4x5x5x32xf32, #tpu.memory_space<vmem>>, vector<1x1x4x4x8xf32>
    %258 = vector.shape_cast %257 : vector<1x1x4x4x8xf32> to vector<4x4x8xf32>
    %259 = vector.shape_cast %258 : vector<4x4x8xf32> to vector<16x8xf32>
    %c1_297 = arith.constant 1 : index
    %c0_298 = arith.constant 0 : index
    %c0_299 = arith.constant 0 : index
    %260 = vector.load %arg2[%c1_297, %c0_298, %c0_299] : memref<9x8x16xf32, #tpu.memory_space<vmem>>, vector<1x8x16xf32>
    %261 = vector.shape_cast %260 : vector<1x8x16xf32> to vector<8x16xf32>
    %cst_300 = arith.constant dense<0.000000e+00> : vector<16x16xf32>
    %262 = tpu.matmul %259, %261, %cst_300 {dimension_numbers = #tpu.dot_dimension_numbers<[1], [0], [0], [1], [0, 0, 1, 1], [], []>} : vector<16x8xf32>, vector<8x16xf32>, vector<16x16xf32> -> vector<16x16xf32>
    %263 = arith.addf %256, %262 : vector<16x16xf32>
    %c0_301 = arith.constant 0 : index
    %c2_302 = arith.constant 2 : index
    %c0_303 = arith.constant 0 : index
    %c1_304 = arith.constant 1 : index
    %c0_305 = arith.constant 0 : index
    %264 = vector.load %arg1[%c0_301, %c2_302, %c0_303, %c1_304, %c0_305] : memref<1x4x5x5x32xf32, #tpu.memory_space<vmem>>, vector<1x1x4x4x8xf32>
    %265 = vector.shape_cast %264 : vector<1x1x4x4x8xf32> to vector<4x4x8xf32>
    %266 = vector.shape_cast %265 : vector<4x4x8xf32> to vector<16x8xf32>
    %c2_306 = arith.constant 2 : index
    %c0_307 = arith.constant 0 : index
    %c0_308 = arith.constant 0 : index
    %267 = vector.load %arg2[%c2_306, %c0_307, %c0_308] : memref<9x8x16xf32, #tpu.memory_space<vmem>>, vector<1x8x16xf32>
    %268 = vector.shape_cast %267 : vector<1x8x16xf32> to vector<8x16xf32>
    %cst_309 = arith.constant dense<0.000000e+00> : vector<16x16xf32>
    %269 = tpu.matmul %266, %268, %cst_309 {dimension_numbers = #tpu.dot_dimension_numbers<[1], [0], [0], [1], [0, 0, 1, 1], [], []>} : vector<16x8xf32>, vector<8x16xf32>, vector<16x16xf32> -> vector<16x16xf32>
    %270 = arith.addf %263, %269 : vector<16x16xf32>
    %c0_310 = arith.constant 0 : index
    %c3_311 = arith.constant 3 : index
    %c0_312 = arith.constant 0 : index
    %c0_313 = arith.constant 0 : index
    %c16_314 = arith.constant 16 : index
    %271 = vector.load %arg1[%c0_310, %c3_311, %c0_312, %c0_313, %c16_314] : memref<1x4x5x5x32xf32, #tpu.memory_space<vmem>>, vector<1x1x4x4x8xf32>
    %272 = vector.shape_cast %271 : vector<1x1x4x4x8xf32> to vector<4x4x8xf32>
    %273 = vector.shape_cast %272 : vector<4x4x8xf32> to vector<16x8xf32>
    %c3_315 = arith.constant 3 : index
    %c0_316 = arith.constant 0 : index
    %c0_317 = arith.constant 0 : index
    %274 = vector.load %arg2[%c3_315, %c0_316, %c0_317] : memref<9x8x16xf32, #tpu.memory_space<vmem>>, vector<1x8x16xf32>
    %275 = vector.shape_cast %274 : vector<1x8x16xf32> to vector<8x16xf32>
    %cst_318 = arith.constant dense<0.000000e+00> : vector<16x16xf32>
    %276 = tpu.matmul %273, %275, %cst_318 {dimension_numbers = #tpu.dot_dimension_numbers<[1], [0], [0], [1], [0, 0, 1, 1], [], []>} : vector<16x8xf32>, vector<8x16xf32>, vector<16x16xf32> -> vector<16x16xf32>
    %277 = arith.addf %270, %276 : vector<16x16xf32>
    %c0_319 = arith.constant 0 : index
    %c3_320 = arith.constant 3 : index
    %c0_321 = arith.constant 0 : index
    %c0_322 = arith.constant 0 : index
    %c24_323 = arith.constant 24 : index
    %278 = vector.load %arg1[%c0_319, %c3_320, %c0_321, %c0_322, %c24_323] : memref<1x4x5x5x32xf32, #tpu.memory_space<vmem>>, vector<1x1x4x4x8xf32>
    %279 = vector.shape_cast %278 : vector<1x1x4x4x8xf32> to vector<4x4x8xf32>
    %280 = vector.shape_cast %279 : vector<4x4x8xf32> to vector<16x8xf32>
    %c4_324 = arith.constant 4 : index
    %c0_325 = arith.constant 0 : index
    %c0_326 = arith.constant 0 : index
    %281 = vector.load %arg2[%c4_324, %c0_325, %c0_326] : memref<9x8x16xf32, #tpu.memory_space<vmem>>, vector<1x8x16xf32>
    %282 = vector.shape_cast %281 : vector<1x8x16xf32> to vector<8x16xf32>
    %cst_327 = arith.constant dense<0.000000e+00> : vector<16x16xf32>
    %283 = tpu.matmul %280, %282, %cst_327 {dimension_numbers = #tpu.dot_dimension_numbers<[1], [0], [0], [1], [0, 0, 1, 1], [], []>} : vector<16x8xf32>, vector<8x16xf32>, vector<16x16xf32> -> vector<16x16xf32>
    %284 = arith.addf %277, %283 : vector<16x16xf32>
    %c0_328 = arith.constant 0 : index
    %c3_329 = arith.constant 3 : index
    %c0_330 = arith.constant 0 : index
    %c1_331 = arith.constant 1 : index
    %c0_332 = arith.constant 0 : index
    %285 = vector.load %arg1[%c0_328, %c3_329, %c0_330, %c1_331, %c0_332] : memref<1x4x5x5x32xf32, #tpu.memory_space<vmem>>, vector<1x1x4x4x8xf32>
    %286 = vector.shape_cast %285 : vector<1x1x4x4x8xf32> to vector<4x4x8xf32>
    %287 = vector.shape_cast %286 : vector<4x4x8xf32> to vector<16x8xf32>
    %c5_333 = arith.constant 5 : index
    %c0_334 = arith.constant 0 : index
    %c0_335 = arith.constant 0 : index
    %288 = vector.load %arg2[%c5_333, %c0_334, %c0_335] : memref<9x8x16xf32, #tpu.memory_space<vmem>>, vector<1x8x16xf32>
    %289 = vector.shape_cast %288 : vector<1x8x16xf32> to vector<8x16xf32>
    %cst_336 = arith.constant dense<0.000000e+00> : vector<16x16xf32>
    %290 = tpu.matmul %287, %289, %cst_336 {dimension_numbers = #tpu.dot_dimension_numbers<[1], [0], [0], [1], [0, 0, 1, 1], [], []>} : vector<16x8xf32>, vector<8x16xf32>, vector<16x16xf32> -> vector<16x16xf32>
    %291 = arith.addf %284, %290 : vector<16x16xf32>
    %c0_337 = arith.constant 0 : index
    %c0_338 = arith.constant 0 : index
    %c1_339 = arith.constant 1 : index
    %c0_340 = arith.constant 0 : index
    %c16_341 = arith.constant 16 : index
    %292 = vector.load %arg1[%c0_337, %c0_338, %c1_339, %c0_340, %c16_341] : memref<1x4x5x5x32xf32, #tpu.memory_space<vmem>>, vector<1x1x4x4x8xf32>
    %293 = vector.shape_cast %292 : vector<1x1x4x4x8xf32> to vector<4x4x8xf32>
    %294 = vector.shape_cast %293 : vector<4x4x8xf32> to vector<16x8xf32>
    %c6_342 = arith.constant 6 : index
    %c0_343 = arith.constant 0 : index
    %c0_344 = arith.constant 0 : index
    %295 = vector.load %arg2[%c6_342, %c0_343, %c0_344] : memref<9x8x16xf32, #tpu.memory_space<vmem>>, vector<1x8x16xf32>
    %296 = vector.shape_cast %295 : vector<1x8x16xf32> to vector<8x16xf32>
    %cst_345 = arith.constant dense<0.000000e+00> : vector<16x16xf32>
    %297 = tpu.matmul %294, %296, %cst_345 {dimension_numbers = #tpu.dot_dimension_numbers<[1], [0], [0], [1], [0, 0, 1, 1], [], []>} : vector<16x8xf32>, vector<8x16xf32>, vector<16x16xf32> -> vector<16x16xf32>
    %298 = arith.addf %291, %297 : vector<16x16xf32>
    %c0_346 = arith.constant 0 : index
    %c0_347 = arith.constant 0 : index
    %c1_348 = arith.constant 1 : index
    %c0_349 = arith.constant 0 : index
    %c24_350 = arith.constant 24 : index
    %299 = vector.load %arg1[%c0_346, %c0_347, %c1_348, %c0_349, %c24_350] : memref<1x4x5x5x32xf32, #tpu.memory_space<vmem>>, vector<1x1x4x4x8xf32>
    %300 = vector.shape_cast %299 : vector<1x1x4x4x8xf32> to vector<4x4x8xf32>
    %301 = vector.shape_cast %300 : vector<4x4x8xf32> to vector<16x8xf32>
    %c7_351 = arith.constant 7 : index
    %c0_352 = arith.constant 0 : index
    %c0_353 = arith.constant 0 : index
    %302 = vector.load %arg2[%c7_351, %c0_352, %c0_353] : memref<9x8x16xf32, #tpu.memory_space<vmem>>, vector<1x8x16xf32>
    %303 = vector.shape_cast %302 : vector<1x8x16xf32> to vector<8x16xf32>
    %cst_354 = arith.constant dense<0.000000e+00> : vector<16x16xf32>
    %304 = tpu.matmul %301, %303, %cst_354 {dimension_numbers = #tpu.dot_dimension_numbers<[1], [0], [0], [1], [0, 0, 1, 1], [], []>} : vector<16x8xf32>, vector<8x16xf32>, vector<16x16xf32> -> vector<16x16xf32>
    %305 = arith.addf %298, %304 : vector<16x16xf32>
    %c0_355 = arith.constant 0 : index
    %c0_356 = arith.constant 0 : index
    %c1_357 = arith.constant 1 : index
    %c1_358 = arith.constant 1 : index
    %c0_359 = arith.constant 0 : index
    %306 = vector.load %arg1[%c0_355, %c0_356, %c1_357, %c1_358, %c0_359] : memref<1x4x5x5x32xf32, #tpu.memory_space<vmem>>, vector<1x1x4x4x8xf32>
    %307 = vector.shape_cast %306 : vector<1x1x4x4x8xf32> to vector<4x4x8xf32>
    %308 = vector.shape_cast %307 : vector<4x4x8xf32> to vector<16x8xf32>
    %c8_360 = arith.constant 8 : index
    %c0_361 = arith.constant 0 : index
    %c0_362 = arith.constant 0 : index
    %309 = vector.load %arg2[%c8_360, %c0_361, %c0_362] : memref<9x8x16xf32, #tpu.memory_space<vmem>>, vector<1x8x16xf32>
    %310 = vector.shape_cast %309 : vector<1x8x16xf32> to vector<8x16xf32>
    %cst_363 = arith.constant dense<0.000000e+00> : vector<16x16xf32>
    %311 = tpu.matmul %308, %310, %cst_363 {dimension_numbers = #tpu.dot_dimension_numbers<[1], [0], [0], [1], [0, 0, 1, 1], [], []>} : vector<16x8xf32>, vector<8x16xf32>, vector<16x16xf32> -> vector<16x16xf32>
    %312 = arith.addf %305, %311 : vector<16x16xf32>
    %313 = vector.broadcast %14 : vector<1x16xf32> to vector<16x16xf32>
    %314 = arith.addf %312, %313 : vector<16x16xf32>
    %cst_364 = arith.constant 5.000000e-01 : f32
    %315 = vector.broadcast %cst_364 : f32 to vector<16x16xf32>
    %316 = arith.mulf %315, %314 : vector<16x16xf32>
    %cst_365 = arith.constant 0.707106769 : f32
    %317 = vector.broadcast %cst_365 : f32 to vector<16x16xf32>
    %318 = arith.mulf %314, %317 : vector<16x16xf32>
    %319 = math.erf %318 : vector<16x16xf32>
    %cst_366 = arith.constant 1.000000e+00 : f32
    %320 = vector.broadcast %cst_366 : f32 to vector<16x16xf32>
    %321 = arith.addf %320, %319 : vector<16x16xf32>
    %322 = arith.mulf %316, %321 : vector<16x16xf32>
    %323 = vector.shape_cast %322 : vector<16x16xf32> to vector<4x4x16xf32>
    %c1_367 = arith.constant 1 : index
    %c1_368 = arith.constant 1 : index
    %c1_369 = arith.constant 1 : index
    %c1_370 = arith.constant 1 : index
    %c0_371 = arith.constant 0 : index
    %324 = vector.load %arg7[%c1_367, %c1_368, %c1_369, %c1_370, %c0_371] : memref<2x2x5x5x16xf32, #tpu.memory_space<vmem>>, vector<1x1x4x4x16xf32>
    %325 = vector.shape_cast %324 : vector<1x1x4x4x16xf32> to vector<4x4x16xf32>
    %326 = vector.shape_cast %323 : vector<4x4x16xf32> to vector<1x1x4x4x16xf32>
    tpu.vector_store %arg7[%c1_367, %c1_368, %c1_369, %c1_370, %c0_371], %326 {strides = array<i32>} : memref<2x2x5x5x16xf32, #tpu.memory_space<vmem>>, vector<1x1x4x4x16xf32>,
    %cst_372 = arith.constant 0.000000e+00 : f32
    %327 = vector.broadcast %cst_372 : f32 to vector<16x128xf32>
    %c1_373 = arith.constant 1 : index
    %c1_374 = arith.constant 1 : index
    %c0_375 = arith.constant 0 : index
    %c0_376 = arith.constant 0 : index
    %c0_377 = arith.constant 0 : index
    %328 = vector.load %arg7[%c1_373, %c1_374, %c0_375, %c0_376, %c0_377] : memref<2x2x5x5x16xf32, #tpu.memory_space<vmem>>, vector<1x1x4x4x16xf32>
    %329 = vector.shape_cast %328 : vector<1x1x4x4x16xf32> to vector<4x4x16xf32>
    %330 = vector.shape_cast %329 : vector<4x4x16xf32> to vector<16x16xf32>
    %c0_378 = arith.constant 0 : index
    %c0_379 = arith.constant 0 : index
    %c0_380 = arith.constant 0 : index
    %331 = vector.load %arg4[%c0_378, %c0_379, %c0_380] : memref<9x16x128xf32, #tpu.memory_space<vmem>>, vector<1x16x128xf32>
    %332 = vector.shape_cast %331 : vector<1x16x128xf32> to vector<16x128xf32>
    %cst_381 = arith.constant dense<0.000000e+00> : vector<16x128xf32>
    %333 = tpu.matmul %330, %332, %cst_381 {dimension_numbers = #tpu.dot_dimension_numbers<[1], [0], [0], [1], [0, 0, 1, 1], [], []>} : vector<16x16xf32>, vector<16x128xf32>, vector<16x128xf32> -> vector<16x128xf32>
    %334 = arith.addf %327, %333 : vector<16x128xf32>
    %c1_382 = arith.constant 1 : index
    %c0_383 = arith.constant 0 : index
    %c0_384 = arith.constant 0 : index
    %c0_385 = arith.constant 0 : index
    %c0_386 = arith.constant 0 : index
    %335 = vector.load %arg7[%c1_382, %c0_383, %c0_384, %c0_385, %c0_386] : memref<2x2x5x5x16xf32, #tpu.memory_space<vmem>>, vector<1x1x4x4x16xf32>
    %336 = vector.shape_cast %335 : vector<1x1x4x4x16xf32> to vector<4x4x16xf32>
    %337 = vector.shape_cast %336 : vector<4x4x16xf32> to vector<16x16xf32>
    %c1_387 = arith.constant 1 : index
    %c0_388 = arith.constant 0 : index
    %c0_389 = arith.constant 0 : index
    %338 = vector.load %arg4[%c1_387, %c0_388, %c0_389] : memref<9x16x128xf32, #tpu.memory_space<vmem>>, vector<1x16x128xf32>
    %339 = vector.shape_cast %338 : vector<1x16x128xf32> to vector<16x128xf32>
    %cst_390 = arith.constant dense<0.000000e+00> : vector<16x128xf32>
    %340 = tpu.matmul %337, %339, %cst_390 {dimension_numbers = #tpu.dot_dimension_numbers<[1], [0], [0], [1], [0, 0, 1, 1], [], []>} : vector<16x16xf32>, vector<16x128xf32>, vector<16x128xf32> -> vector<16x128xf32>
    %341 = arith.addf %334, %340 : vector<16x128xf32>
    %c1_391 = arith.constant 1 : index
    %c1_392 = arith.constant 1 : index
    %c0_393 = arith.constant 0 : index
    %c1_394 = arith.constant 1 : index
    %c0_395 = arith.constant 0 : index
    %342 = vector.load %arg7[%c1_391, %c1_392, %c0_393, %c1_394, %c0_395] : memref<2x2x5x5x16xf32, #tpu.memory_space<vmem>>, vector<1x1x4x4x16xf32>
    %343 = vector.shape_cast %342 : vector<1x1x4x4x16xf32> to vector<4x4x16xf32>
    %344 = vector.shape_cast %343 : vector<4x4x16xf32> to vector<16x16xf32>
    %c2_396 = arith.constant 2 : index
    %c0_397 = arith.constant 0 : index
    %c0_398 = arith.constant 0 : index
    %345 = vector.load %arg4[%c2_396, %c0_397, %c0_398] : memref<9x16x128xf32, #tpu.memory_space<vmem>>, vector<1x16x128xf32>
    %346 = vector.shape_cast %345 : vector<1x16x128xf32> to vector<16x128xf32>
    %cst_399 = arith.constant dense<0.000000e+00> : vector<16x128xf32>
    %347 = tpu.matmul %344, %346, %cst_399 {dimension_numbers = #tpu.dot_dimension_numbers<[1], [0], [0], [1], [0, 0, 1, 1], [], []>} : vector<16x16xf32>, vector<16x128xf32>, vector<16x128xf32> -> vector<16x128xf32>
    %348 = arith.addf %341, %347 : vector<16x128xf32>
    %c0_400 = arith.constant 0 : index
    %c1_401 = arith.constant 1 : index
    %c0_402 = arith.constant 0 : index
    %c0_403 = arith.constant 0 : index
    %c0_404 = arith.constant 0 : index
    %349 = vector.load %arg7[%c0_400, %c1_401, %c0_402, %c0_403, %c0_404] : memref<2x2x5x5x16xf32, #tpu.memory_space<vmem>>, vector<1x1x4x4x16xf32>
    %350 = vector.shape_cast %349 : vector<1x1x4x4x16xf32> to vector<4x4x16xf32>
    %351 = vector.shape_cast %350 : vector<4x4x16xf32> to vector<16x16xf32>
    %c3_405 = arith.constant 3 : index
    %c0_406 = arith.constant 0 : index
    %c0_407 = arith.constant 0 : index
    %352 = vector.load %arg4[%c3_405, %c0_406, %c0_407] : memref<9x16x128xf32, #tpu.memory_space<vmem>>, vector<1x16x128xf32>
    %353 = vector.shape_cast %352 : vector<1x16x128xf32> to vector<16x128xf32>
    %cst_408 = arith.constant dense<0.000000e+00> : vector<16x128xf32>
    %354 = tpu.matmul %351, %353, %cst_408 {dimension_numbers = #tpu.dot_dimension_numbers<[1], [0], [0], [1], [0, 0, 1, 1], [], []>} : vector<16x16xf32>, vector<16x128xf32>, vector<16x128xf32> -> vector<16x128xf32>
    %355 = arith.addf %348, %354 : vector<16x128xf32>
    %c0_409 = arith.constant 0 : index
    %c0_410 = arith.constant 0 : index
    %c0_411 = arith.constant 0 : index
    %c0_412 = arith.constant 0 : index
    %c0_413 = arith.constant 0 : index
    %356 = vector.load %arg7[%c0_409, %c0_410, %c0_411, %c0_412, %c0_413] : memref<2x2x5x5x16xf32, #tpu.memory_space<vmem>>, vector<1x1x4x4x16xf32>
    %357 = vector.shape_cast %356 : vector<1x1x4x4x16xf32> to vector<4x4x16xf32>
    %358 = vector.shape_cast %357 : vector<4x4x16xf32> to vector<16x16xf32>
    %c4_414 = arith.constant 4 : index
    %c0_415 = arith.constant 0 : index
    %c0_416 = arith.constant 0 : index
    %359 = vector.load %arg4[%c4_414, %c0_415, %c0_416] : memref<9x16x128xf32, #tpu.memory_space<vmem>>, vector<1x16x128xf32>
    %360 = vector.shape_cast %359 : vector<1x16x128xf32> to vector<16x128xf32>
    %cst_417 = arith.constant dense<0.000000e+00> : vector<16x128xf32>
    %361 = tpu.matmul %358, %360, %cst_417 {dimension_numbers = #tpu.dot_dimension_numbers<[1], [0], [0], [1], [0, 0, 1, 1], [], []>} : vector<16x16xf32>, vector<16x128xf32>, vector<16x128xf32> -> vector<16x128xf32>
    %362 = arith.addf %355, %361 : vector<16x128xf32>
    %c0_418 = arith.constant 0 : index
    %c1_419 = arith.constant 1 : index
    %c0_420 = arith.constant 0 : index
    %c1_421 = arith.constant 1 : index
    %c0_422 = arith.constant 0 : index
    %363 = vector.load %arg7[%c0_418, %c1_419, %c0_420, %c1_421, %c0_422] : memref<2x2x5x5x16xf32, #tpu.memory_space<vmem>>, vector<1x1x4x4x16xf32>
    %364 = vector.shape_cast %363 : vector<1x1x4x4x16xf32> to vector<4x4x16xf32>
    %365 = vector.shape_cast %364 : vector<4x4x16xf32> to vector<16x16xf32>
    %c5_423 = arith.constant 5 : index
    %c0_424 = arith.constant 0 : index
    %c0_425 = arith.constant 0 : index
    %366 = vector.load %arg4[%c5_423, %c0_424, %c0_425] : memref<9x16x128xf32, #tpu.memory_space<vmem>>, vector<1x16x128xf32>
    %367 = vector.shape_cast %366 : vector<1x16x128xf32> to vector<16x128xf32>
    %cst_426 = arith.constant dense<0.000000e+00> : vector<16x128xf32>
    %368 = tpu.matmul %365, %367, %cst_426 {dimension_numbers = #tpu.dot_dimension_numbers<[1], [0], [0], [1], [0, 0, 1, 1], [], []>} : vector<16x16xf32>, vector<16x128xf32>, vector<16x128xf32> -> vector<16x128xf32>
    %369 = arith.addf %362, %368 : vector<16x128xf32>
    %c1_427 = arith.constant 1 : index
    %c1_428 = arith.constant 1 : index
    %c1_429 = arith.constant 1 : index
    %c0_430 = arith.constant 0 : index
    %c0_431 = arith.constant 0 : index
    %370 = vector.load %arg7[%c1_427, %c1_428, %c1_429, %c0_430, %c0_431] : memref<2x2x5x5x16xf32, #tpu.memory_space<vmem>>, vector<1x1x4x4x16xf32>
    %371 = vector.shape_cast %370 : vector<1x1x4x4x16xf32> to vector<4x4x16xf32>
    %372 = vector.shape_cast %371 : vector<4x4x16xf32> to vector<16x16xf32>
    %c6_432 = arith.constant 6 : index
    %c0_433 = arith.constant 0 : index
    %c0_434 = arith.constant 0 : index
    %373 = vector.load %arg4[%c6_432, %c0_433, %c0_434] : memref<9x16x128xf32, #tpu.memory_space<vmem>>, vector<1x16x128xf32>
    %374 = vector.shape_cast %373 : vector<1x16x128xf32> to vector<16x128xf32>
    %cst_435 = arith.constant dense<0.000000e+00> : vector<16x128xf32>
    %375 = tpu.matmul %372, %374, %cst_435 {dimension_numbers = #tpu.dot_dimension_numbers<[1], [0], [0], [1], [0, 0, 1, 1], [], []>} : vector<16x16xf32>, vector<16x128xf32>, vector<16x128xf32> -> vector<16x128xf32>
    %376 = arith.addf %369, %375 : vector<16x128xf32>
    %c1_436 = arith.constant 1 : index
    %c0_437 = arith.constant 0 : index
    %c1_438 = arith.constant 1 : index
    %c0_439 = arith.constant 0 : index
    %c0_440 = arith.constant 0 : index
    %377 = vector.load %arg7[%c1_436, %c0_437, %c1_438, %c0_439, %c0_440] : memref<2x2x5x5x16xf32, #tpu.memory_space<vmem>>, vector<1x1x4x4x16xf32>
    %378 = vector.shape_cast %377 : vector<1x1x4x4x16xf32> to vector<4x4x16xf32>
    %379 = vector.shape_cast %378 : vector<4x4x16xf32> to vector<16x16xf32>
    %c7_441 = arith.constant 7 : index
    %c0_442 = arith.constant 0 : index
    %c0_443 = arith.constant 0 : index
    %380 = vector.load %arg4[%c7_441, %c0_442, %c0_443] : memref<9x16x128xf32, #tpu.memory_space<vmem>>, vector<1x16x128xf32>
    %381 = vector.shape_cast %380 : vector<1x16x128xf32> to vector<16x128xf32>
    %cst_444 = arith.constant dense<0.000000e+00> : vector<16x128xf32>
    %382 = tpu.matmul %379, %381, %cst_444 {dimension_numbers = #tpu.dot_dimension_numbers<[1], [0], [0], [1], [0, 0, 1, 1], [], []>} : vector<16x16xf32>, vector<16x128xf32>, vector<16x128xf32> -> vector<16x128xf32>
    %383 = arith.addf %376, %382 : vector<16x128xf32>
    %c1_445 = arith.constant 1 : index
    %c1_446 = arith.constant 1 : index
    %c1_447 = arith.constant 1 : index
    %c1_448 = arith.constant 1 : index
    %c0_449 = arith.constant 0 : index
    %384 = vector.load %arg7[%c1_445, %c1_446, %c1_447, %c1_448, %c0_449] : memref<2x2x5x5x16xf32, #tpu.memory_space<vmem>>, vector<1x1x4x4x16xf32>
    %385 = vector.shape_cast %384 : vector<1x1x4x4x16xf32> to vector<4x4x16xf32>
    %386 = vector.shape_cast %385 : vector<4x4x16xf32> to vector<16x16xf32>
    %c8_450 = arith.constant 8 : index
    %c0_451 = arith.constant 0 : index
    %c0_452 = arith.constant 0 : index
    %387 = vector.load %arg4[%c8_450, %c0_451, %c0_452] : memref<9x16x128xf32, #tpu.memory_space<vmem>>, vector<1x16x128xf32>
    %388 = vector.shape_cast %387 : vector<1x16x128xf32> to vector<16x128xf32>
    %cst_453 = arith.constant dense<0.000000e+00> : vector<16x128xf32>
    %389 = tpu.matmul %386, %388, %cst_453 {dimension_numbers = #tpu.dot_dimension_numbers<[1], [0], [0], [1], [0, 0, 1, 1], [], []>} : vector<16x16xf32>, vector<16x128xf32>, vector<16x128xf32> -> vector<16x128xf32>
    %390 = arith.addf %383, %389 : vector<16x128xf32>
    %c0_454 = arith.constant 0 : index
    %c0_455 = arith.constant 0 : index
    %391 = vector.load %arg5[%c0_454, %c0_455] : memref<1x128xf32, #tpu.memory_space<vmem>>, vector<1x128xf32>
    %392 = vector.broadcast %391 : vector<1x128xf32> to vector<16x128xf32>
    %393 = arith.addf %390, %392 : vector<16x128xf32>
    %c0_456 = arith.constant 0 : index
    %c0_457 = arith.constant 0 : index
    %c0_458 = arith.constant 0 : index
    %394 = vector.load %arg6[%c0_456, %c0_457, %c0_458] : memref<1x16x128xf32, #tpu.memory_space<vmem>>, vector<1x16x128xf32>
    %395 = vector.shape_cast %394 : vector<1x16x128xf32> to vector<16x128xf32>
    %396 = vector.shape_cast %393 : vector<16x128xf32> to vector<1x16x128xf32>
    tpu.vector_store %arg6[%c0_456, %c0_457, %c0_458], %396 {strides = array<i32>} : memref<1x16x128xf32, #tpu.memory_space<vmem>>, vector<1x16x128xf32>,
    return
  }
  func.func @transform_0(%arg0: i32) -> (i32, i32, i32, i32, i32) {
    %c0_i32 = arith.constant 0 : i32
    %c0_i32_0 = arith.constant 0 : i32
    %c0_i32_1 = arith.constant 0 : i32
    %c0_i32_2 = arith.constant 0 : i32
    %c0_i32_3 = arith.constant 0 : i32
    return %arg0, %c0_i32, %c0_i32_0, %c0_i32_1, %c0_i32_2 : i32, i32, i32, i32, i32
  }
  func.func @transform_1(%arg0: i32) -> (i32, i32, i32) {
    %c0_i32 = arith.constant 0 : i32
    %c0_i32_0 = arith.constant 0 : i32
    %c0_i32_1 = arith.constant 0 : i32
    %c0_i32_2 = arith.constant 0 : i32
    return %c0_i32, %c0_i32_0, %c0_i32_1 : i32, i32, i32
  }
  func.func @transform_2(%arg0: i32) -> (i32, i32) {
    %c0_i32 = arith.constant 0 : i32
    %c0_i32_0 = arith.constant 0 : i32
    %c0_i32_1 = arith.constant 0 : i32
    return %c0_i32, %c0_i32_0 : i32, i32
  }
  func.func @transform_3(%arg0: i32) -> (i32, i32, i32) {
    %c0_i32 = arith.constant 0 : i32
    %c0_i32_0 = arith.constant 0 : i32
    %c0_i32_1 = arith.constant 0 : i32
    %c0_i32_2 = arith.constant 0 : i32
    return %c0_i32, %c0_i32_0, %c0_i32_1 : i32, i32, i32
  }
  func.func @transform_4(%arg0: i32) -> (i32, i32) {
    %c0_i32 = arith.constant 0 : i32
    %c0_i32_0 = arith.constant 0 : i32
    %c0_i32_1 = arith.constant 0 : i32
    return %c0_i32, %c0_i32_0 : i32, i32
  }
  func.func @transform_5(%arg0: i32) -> (i32, i32, i32) {
    %c0_i32 = arith.constant 0 : i32
    %c0_i32_0 = arith.constant 0 : i32
    %c0_i32_1 = arith.constant 0 : i32
    return %arg0, %c0_i32, %c0_i32_0 : i32, i32, i32
  }
}

</mosaic_0001>

<bundles_post_ra>
// kernel: tpu_custom_call.1
= control target key start
LH: loop header
LB: loop body
LE: loop exit
PB: predicated region body
PF: predicated region fallthrough
CT: control target
= control target key end

     0   :  { %10 = vsyncpa [#allocation4], 0  ;;  %s4066_s0 = inlined_call_operand.vmem [shape: f32[2,4,5,5,32], index: 0, kind: input, shape index: {}]   ;;  %s4067_s1 = inlined_call_operand.vmem [shape: f32[9,8,16], index: 1, kind: input, shape index: {}]   ;;  %s4068_s2 = inlined_call_operand.vmem [shape: f32[1,16], index: 2, kind: input, shape index: {}]   ;;  %s4069_s3 = inlined_call_operand.vmem [shape: f32[9,16,128], index: 3, kind: input, shape index: {}]   ;;  %s4070_s4 = inlined_call_operand.vmem [shape: f32[1,128], index: 4, kind: input, shape index: {}]   ;;  %s4071_s5 = inlined_call_operand.hbm [shape: f32[2,16,128], index: 5, kind: output, shape index: {}]  }
   0x1   :  { %12 = vsyncpa [#allocation4 + $0x1], 0  ;;  %s3358_s18 = smov 0   ;;  %s3360_s19 = smov 0  }
   0x2   :  { %s3362_s20 = smov 0   ;;  %s3364_s21 = smov 0  }
   0x3 LB: > { %s3379_s22 = sadd.s32 4294967295, %s3320_s21   ;;  %s2923_s23 = sadd.s32 4294967294, %s3320_s21   ;;  %s3320_s21 = sphi %s3364_s21, %s4081_s21   ;;  %s3316_s20 = sphi %s3362_s20, %s4080_s20   ;;  %s3312_s19 = sphi %s3360_s19, %s4079_s19   ;;  %s3308_s18 = sphi %s3358_s18, %s4078_s18  }
   0x4   : > { %s3383_s24 = sadd.s32 1, %s3320_s21   ;;  %s135_s25 = sadd.s32 1, %s3316_s20 }
   0x5   : > { %s132_s26 = ssub.s32 %s3320_s21, %s3383_s24  ;;  %p145_p0 = scmp.ne.s32.totalorder %s3316_s20, %s3312_s19 }
   0x6   : > { %p133_p1 = scmp.eq.s32.totalorder %s132_s26, 0  ;;  %p146_p2 = scmp.eq.s32.totalorder %s3379_s22, 1 }
   0x7   : > { %p151_p3 = scmp.ne.s32.totalorder %s3312_s19, %s3308_s18  ;;  %p152_p4 = scmp.eq.s32.totalorder %s2923_s23, 1 }
   0x8   : > { %s3394_s27 = scalar_select %p133_p1, %s3316_s20, %s135_s25  }
   0x9   : > { %p3396_p5 = por %p146_p2, %p145_p0  ;;  %p3400_p6 = por %p152_p4, %p151_p3 }
   0xa   : > { %p2926_p7 = scmp.ge.s32.totalorder %s3320_s21, 1  ;;  %p190_p8 = scmp.lt.s32.totalorder %s3320_s21, 3 }
   0xc   : > { %p191_p9 = pnand %p2926_p7, %p190_p8 }
   0xd   : > { %p218_p10 = scmp.lt.s32.totalorder (!%p191_p9), %s3379_s22, 1  ;;  %s3322_s10 = smov (!%p191_p9), 120  }
   0xe   : > { %194 = sbr.rel (%p191_p9) target bundleno = 857 (0x359), region = 40  ;;  %s3323_s11 = smov (!%p191_p9), 112  }
   0xf   : > { %s3324_s12 = smov (!%p191_p9), 104   ;;  %s3192_s14 = sshll.u32 (!%p191_p9), %s3379_s22, 4 }
  0x10   : > { %s2857_s17 = scalar_lea.hbm (!%p191_p9), %s4071_s5, %s3192_s14  ;;  %s3278_s26 = scalar_lea.hbm (!%p191_p9), %s4071_s5, 32 }
  0x13   : > { %s219_s30 = scalar_select %p218_p10, %s3379_s22, 1  ;;  %vm265_vm0 = vcmask 64512   ;;  %vm786_vm5 = vcmask 125952   ;;  %vm224_vm8 = vcmask 126976   ;;  %vm229_vm10 = vcmask 122880  }
  0x15   : > { %s3194_s6 = smul.u32 160, %s219_s30  ;;  %s215_s30 = sand.u32 1, %s3312_s19  }
  0x17   : > { %s3411_s9 = scalar_lea.vmem %s4066_s0, %s3194_s6  ;;  %s2927_s6 = sshll.u32 %s215_s30, 4 }
  0x18   : > { %v243_v0 = vld [vmem:[%s3411_s9 + $0x10] sm:$0xf]  ;;  %v244_v1 = vld [vmem:[%s3411_s9 + $0x18] sm:$0xf]  ;;  %v241_v2 = vld [vmem:[%s3411_s9] sm:$0xf] }
  0x19   : > { %256 = vst [vmem:[#allocation1 + $0x10] ss:$2 sm:$0xff] %v243_v0  ;;  %v242_v3 = vld [vmem:[%s3411_s9 + $0x8] sm:$0xf]  ;;  %v331_v6 = vld [vmem:[%s3411_s9 + $0x10] sm:$0xf] }
  0x1a   : > { %258 = vst [vmem:[#allocation1 + $0x11] ss:$2 sm:$0xff] %v244_v1  ;;  %v332_v7 = vld [vmem:[%s3411_s9 + $0x18] sm:$0xf]  ;;  %v329_v9 = vld [vmem:[%s3411_s9] sm:$0xf] }
  0x1b   : > { %252 = vst [vmem:[#allocation1] ss:$2 sm:$0xff] %v241_v2  ;;  %v330_v10 = vld [vmem:[%s3411_s9 + $0x8] sm:$0xf]  ;;  %v2939_v12 = vld [vmem:[%s3411_s9 + $0x38] sm:$0xf] }
  0x1c   : > { %254 = vst [vmem:[#allocation1 + $0x1] ss:$2 sm:$0xff] %v242_v3  ;;  %v2940_v13 = vld [vmem:[%s3411_s9 + $0x40] sm:$0xf]  ;;  %v2937_v15 = vld [vmem:[%s3411_s9 + $0x28] sm:$0xf] }
  0x1d   : > { %v2938_v16 = vld [vmem:[%s3411_s9 + $0x30] sm:$0xf]  ;;  %v2946_v18 = vld [vmem:[%s3411_s9 + $0x38] sm:$0xf]  ;;  %v2947_v19 = vld [vmem:[%s3411_s9 + $0x40] sm:$0xf] }
  0x1e   : > { %v2944_v21 = vld [vmem:[%s3411_s9 + $0x28] sm:$0xf]  ;;  %v2945_v22 = vld [vmem:[%s3411_s9 + $0x30] sm:$0xf]  ;;  %v2953_v24 = vld [vmem:[%s3411_s9 + $0x38] sm:$0xf] }
  0x1f   : > { %v2954_v25 = vld [vmem:[%s3411_s9 + $0x40] sm:$0xf]  ;;  %v2951_v27 = vld [vmem:[%s3411_s9 + $0x28] sm:$0xf]  ;;  %v2952_v28 = vld [vmem:[%s3411_s9 + $0x30] sm:$0xf] }
  0x20   : > { %v2960_v30 = vld [vmem:[%s3411_s9 + $0x60] sm:$0xf]  ;;  %v2961_v31 = vld [vmem:[%s3411_s9 + $0x68] sm:$0xf]  ;;  %v2958_v33 = vld [vmem:[%s3411_s9 + $0x50] sm:$0xf] }
  0x21   : > { %v260_v4 = vld.sshfl [vmem:[#allocation1 + $0x10] sm:$0xff pattern:$0x75316420]  ;;  %v2959_v34 = vld [vmem:[%s3411_s9 + $0x58] sm:$0xf]  ;;  %s217_s13 = scalar_lea.vmem [#allocation3], %s2927_s6 }
  0x22   : > { %263 = vrot.lane.b32.xlu0 %v260_v4, %s3322_s10  ;;  %297 = vst [vmem:[#allocation1 + $0x10] ss:$2 sm:$0xff] %v243_v0  ;;  %v2967_v36 = vld [vmem:[%s3411_s9 + $0x60] sm:$0xf]  ;;  %v2968_v37 = vld [vmem:[%s3411_s9 + $0x68] sm:$0xf] }
  0x23   : > { %299 = vst [vmem:[#allocation1 + $0x11] ss:$2 sm:$0xff] %v244_v1  ;;  %v259_v5 = vld.sshfl [vmem:[#allocation1] sm:$0xff pattern:$0x75316420]  ;;  %s2858_s23 = sshll.u32 %s217_s13, 4  ;;  %s2859_s23 = int_to_ptr.vmem [resolvable:$true] %s2858_s23 }
  0x24   : > { %293 = vst [vmem:[#allocation1] ss:$2 sm:$0xff] %v241_v2  ;;  %v2965_v38 = vld [vmem:[%s3411_s9 + $0x50] sm:$0xf]  ;;  %v2966_v40 = vld [vmem:[%s3411_s9 + $0x58] sm:$0xf] }
  0x25   : > { %295 = vst [vmem:[#allocation1 + $0x1] ss:$2 sm:$0xff] %v242_v3  ;;  %v2974_v42 = vld [vmem:[%s3411_s9 + $0x60] sm:$0xf]  ;;  %v2975_v43 = vld [vmem:[%s3411_s9 + $0x68] sm:$0xf] }
  0x26   : > { %v2972_v45 = vld [vmem:[%s3411_s9 + $0x50] sm:$0xf]  ;;  %v2973_v46 = vld [vmem:[%s3411_s9 + $0x58] sm:$0xf]  ;;  %v791_v50 = vld [vmem:[%s3411_s9] sm:$0xf] }
  0x27   : > { %v793_v48 = vld [vmem:[%s3411_s9 + $0x10] sm:$0xf]  ;;  %v794_v49 = vld [vmem:[%s3411_s9 + $0x18] sm:$0xf]  ;;  %v792_v52 = vld [vmem:[%s3411_s9 + $0x8] sm:$0xf] }
  0x28   : > { %v883_v56 = vld [vmem:[%s3411_s9 + $0x11] sm:$0xf]  ;;  %v884_v57 = vld [vmem:[%s3411_s9 + $0x19] sm:$0xf]  ;;  %v881_v59 = vld [vmem:[%s3411_s9 + $0x1] sm:$0xf] }
  0x29   : > { %v882_v60 = vld [vmem:[%s3411_s9 + $0x9] sm:$0xf]  ;;  %v2991_v62 = vld [vmem:[%s3411_s9 + $0x38] sm:$0xf]  ;;  %v2992_v63 = vld [vmem:[%s3411_s9 + $0x40] sm:$0xf] }
  0x2a   : > { %v3420_v8 = vld.sshfl [vmem:[#allocation1 + $0x10] sm:$0xff pattern:$0x75316420]  ;;  %v2989_v0 = vld [vmem:[%s3411_s9 + $0x28] sm:$0xf] }
  0x2b   : > { %343 = vst [vmem:[#allocation1 + $0x10] ss:$2 sm:$0xff] %v331_v6  ;;  %v2990_v2 = vld [vmem:[%s3411_s9 + $0x30] sm:$0xf]  ;;  %v2998_v4 = vld [vmem:[%s3411_s9 + $0x38] sm:$0xf] }
  0x2c   : > { %345 = vst [vmem:[#allocation1 + $0x11] ss:$2 sm:$0xff] %v332_v7  ;;  %v3424_v11 = vld.sshfl [vmem:[#allocation1] sm:$0xff pattern:$0x75316420] }
  0x2d   : > { %339 = vst [vmem:[#allocation1] ss:$2 sm:$0xff] %v329_v9  ;;  %v2996_v6 = vld [vmem:[%s3411_s9 + $0x28] sm:$0xf]  ;;  %v2997_v9 = vld [vmem:[%s3411_s9 + $0x30] sm:$0xf] }
  0x2e   : > { %341 = vst [vmem:[#allocation1 + $0x1] ss:$2 sm:$0xff] %v330_v10 }
  0x33   : > { %v347_v14 = vld.sshfl [vmem:[#allocation1 + $0x10] sm:$0xff pattern:$0x75316420] }
  0x34   : > { %350 = vrot.lane.b32.xlu1 %v347_v14, %s3323_s11  ;;  %396 = vst [vmem:[#allocation1 + $0x10] ss:$2 sm:$0xff] %v2939_v12  ;;  %v3005_v12 = vld [vmem:[%s3411_s9 + $0x39] sm:$0xf] }
  0x35   : > { %v346_v17 = vld.sshfl [vmem:[#allocation1] sm:$0xff pattern:$0x75316420]  ;;  %398 = vst [vmem:[#allocation1 + $0x11] ss:$2 sm:$0xff] %v2940_v13 }
  0x36   : > { %348 = vrot.lane.b32.xlu0 %v346_v17, %s3323_s11  ;;  %392 = vst [vmem:[#allocation1] ss:$2 sm:$0xff] %v2937_v15  ;;  %v3006_v13 = vld [vmem:[%s3411_s9 + $0x41] sm:$0xf]  ;;  %v3003_v15 = vld [vmem:[%s3411_s9 + $0x29] sm:$0xf] }
  0x37   : > { %394 = vst [vmem:[#allocation1 + $0x1] ss:$2 sm:$0xff] %v2938_v16  ;;  %v3004_v16 = vld [vmem:[%s3411_s9 + $0x31] sm:$0xf] }
  0x3c   : > { %261 = vrot.lane.b32.xlu1 %v259_v5, %s3322_s10  ;;  %v3435_v20 = vld.sshfl [vmem:[#allocation1 + $0x10] sm:$0xff pattern:$0x75316420]  ;;  %v2999_v5 = vld [vmem:[%s3411_s9 + $0x40] sm:$0xf] }
  0x3d   : > { %444 = vst [vmem:[#allocation1 + $0x10] ss:$2 sm:$0xff] %v2946_v18  ;;  %v3012_v18 = vld [vmem:[%s3411_s9 + $0x60] sm:$0xf] }
  0x3e   : > { %446 = vst [vmem:[#allocation1 + $0x11] ss:$2 sm:$0xff] %v2947_v19  ;;  %v3439_v23 = vld.sshfl [vmem:[#allocation1] sm:$0xff pattern:$0x75316420] }
  0x3f   : > { %440 = vst [vmem:[#allocation1] ss:$2 sm:$0xff] %v2944_v21  ;;  %v3013_v19 = vld [vmem:[%s3411_s9 + $0x68] sm:$0xf]  ;;  %v3010_v21 = vld [vmem:[%s3411_s9 + $0x50] sm:$0xf] }
  0x40   : > { %442 = vst [vmem:[#allocation1 + $0x1] ss:$2 sm:$0xff] %v2945_v22 }
  0x45   : > { %v448_v26 = vld.sshfl [vmem:[#allocation1 + $0x10] sm:$0xff pattern:$0x75316420] }
  0x46   : > { %451 = vrot.lane.b32.xlu1 %v448_v26, %s3322_s10  ;;  %496 = vst [vmem:[#allocation1 + $0x10] ss:$2 sm:$0xff] %v2953_v24  ;;  %v3011_v24 = vld [vmem:[%s3411_s9 + $0x58] sm:$0xf]  ;;  %v3019_v26 = vld [vmem:[%s3411_s9 + $0x60] sm:$0xf] }
  0x47   : > { %v447_v29 = vld.sshfl [vmem:[#allocation1] sm:$0xff pattern:$0x75316420]  ;;  %498 = vst [vmem:[#allocation1 + $0x11] ss:$2 sm:$0xff] %v2954_v25 }
  0x48   : > { %492 = vst [vmem:[#allocation1] ss:$2 sm:$0xff] %v2951_v27  ;;  %449 = vrot.lane.b32.xlu2 %v447_v29, %s3322_s10  ;;  %v3020_v27 = vld [vmem:[%s3411_s9 + $0x68] sm:$0xf] }
  0x49   : > { %494 = vst [vmem:[#allocation1 + $0x1] ss:$2 sm:$0xff] %v2952_v28  ;;  %v3017_v28 = vld [vmem:[%s3411_s9 + $0x50] sm:$0xf] }
  0x4e   : > { %v500_v32 = vld.sshfl [vmem:[#allocation1 + $0x10] sm:$0xff pattern:$0x75316420] }
  0x4f   : > { %549 = vst [vmem:[#allocation1 + $0x10] ss:$2 sm:$0xff] %v2960_v30  ;;  %v3018_v30 = vld [vmem:[%s3411_s9 + $0x58] sm:$0xf] }
  0x50   : > { %v499_v35 = vld.sshfl [vmem:[#allocation1] sm:$0xff pattern:$0x75316420]  ;;  %551 = vst [vmem:[#allocation1 + $0x11] ss:$2 sm:$0xff] %v2961_v31 }
  0x51   : > { %501 = vrot.lane.b32.xlu0 %v499_v35, %s3323_s11  ;;  %545 = vst [vmem:[#allocation1] ss:$2 sm:$0xff] %v2958_v33  ;;  %v3522_v35 = vld [vmem:[%s4067_s1 + $0x10] sm:$0xff] }
  0x52   : > { %547 = vst [vmem:[#allocation1 + $0x1] ss:$2 sm:$0xff] %v2959_v34  ;;  %v3517_v34 = vld [vmem:[%s4067_s1 + $0x8] sm:$0xff]  ;;  %371 = vmatpush.msra.mxu2 %v3522_v35 }
  0x53   : > { %3193 = vmatpush.msra.mxu1 %v3517_v34  ;;  %285 = vmatpush.msra.mxu0 %v3517_v34 }
  0x57   : > { %v3455_v39 = vld.sshfl [vmem:[#allocation1 + $0x10] sm:$0xff pattern:$0x75316420] }
  0x58   : > { %597 = vst [vmem:[#allocation1 + $0x10] ss:$2 sm:$0xff] %v2967_v36  ;;  %v3527_v36 = vld [vmem:[%s4067_s1 + $0x18] sm:$0xff] }
  0x59   : > { %503 = vrot.lane.b32.xlu0 %v500_v32, %s3323_s11  ;;  %v3459_v41 = vld.sshfl [vmem:[#allocation1] sm:$0xff pattern:$0x75316420]  ;;  %599 = vst [vmem:[#allocation1 + $0x11] ss:$2 sm:$0xff] %v2968_v37  ;;  %420 = vmatpush.msra.mxu3 %v3527_v36 }
  0x5a   : > { %593 = vst [vmem:[#allocation1] ss:$2 sm:$0xff] %v2965_v38  ;;  %v3026_v37 = vld [vmem:[%s3411_s9 + $0x61] sm:$0xf]  ;;  %2942 = vmatmul.msk.f32.vlgmr.msra.gmra.mxu3 %vm265_vm0, %v3439_v23 }
  0x5b   : > { %595 = vst [vmem:[#allocation1 + $0x1] ss:$2 sm:$0xff] %v2966_v40  ;;  %v3535_v38 = vld [vmem:[%s4067_s1] sm:$0xff]  ;;  %v3027_v40 = vld [vmem:[%s3411_s9 + $0x69] sm:$0xf] }
  0x5c   : > { %321 = vmatpush.msrb.mxu1 %v3535_v38 }
  0x60   : > { %v601_v44 = vld.sshfl [vmem:[#allocation1 + $0x10] sm:$0xff pattern:$0x75316420] }
  0x61   : > { %649 = vst [vmem:[#allocation1 + $0x10] ss:$2 sm:$0xff] %v2974_v42  ;;  %v3024_v42 = vld [vmem:[%s3411_s9 + $0x51] sm:$0xf] }
  0x62   : > { %v600_v47 = vld.sshfl [vmem:[#allocation1] sm:$0xff pattern:$0x75316420]  ;;  %651 = vst [vmem:[#allocation1 + $0x11] ss:$2 sm:$0xff] %v2975_v43  ;;  %2943 = vmatmul.msk.f32.gmra.mxu3 %vm265_vm0, %v3435_v20 }
  0x63   : > { %602 = vrot.lane.b32.xlu2 %v600_v47, %s3322_s10  ;;  %645 = vst [vmem:[#allocation1] ss:$2 sm:$0xff] %v2972_v45 }
  0x64   : > { %647 = vst [vmem:[#allocation1 + $0x1] ss:$2 sm:$0xff] %v2973_v46 }
  0x69   : > { %v653_v51 = vld.sshfl [vmem:[#allocation1 + $0x10] sm:$0xff pattern:$0x75316420] }
  0x6a   : > { %805 = vst [vmem:[#allocation1 + $0x10] ss:$2 sm:$0xff] %v793_v48 }
  0x6b   : > { %604 = vrot.lane.b32.xlu2 %v601_v44, %s3322_s10  ;;  %v652_v53 = vld.sshfl [vmem:[#allocation1] sm:$0xff pattern:$0x75316420]  ;;  %807 = vst [vmem:[#allocation1 + $0x11] ss:$2 sm:$0xff] %v794_v49 }
  0x6c   : > { %801 = vst [vmem:[#allocation1] ss:$2 sm:$0xff] %v791_v50  ;;  %v3025_v44 = vld [vmem:[%s3411_s9 + $0x59] sm:$0xf] }
  0x6d   : > { %803 = vst [vmem:[#allocation1 + $0x1] ss:$2 sm:$0xff] %v792_v52 }
  0x72   : > { %v809_v54 = vld.sshfl [vmem:[#allocation1 + $0x10] sm:$0xff pattern:$0x75316420] }
  0x73   : > { %654 = vrot.lane.b32.xlu2 %v652_v53, %s3323_s11  ;;  %845 = vst [vmem:[#allocation1 + $0x10] ss:$2 sm:$0xff] %v793_v48  ;;  %v3035_v48 = vld [vmem:[%s3411_s9 + $0x60] sm:$0xf] }
  0x74   : > { %v808_v55 = vld.sshfl [vmem:[#allocation1] sm:$0xff pattern:$0x75316420]  ;;  %847 = vst [vmem:[#allocation1 + $0x11] ss:$2 sm:$0xff] %v794_v49 }
  0x75   : > { %841 = vst [vmem:[#allocation1] ss:$2 sm:$0xff] %v791_v50  ;;  %810 = vrot.lane.b32.xlu0 %v808_v55, %s3324_s12  ;;  %v3036_v49 = vld [vmem:[%s3411_s9 + $0x68] sm:$0xf]  ;;  %v3033_v50 = vld [vmem:[%s3411_s9 + $0x50] sm:$0xf] }
  0x76   : > { %843 = vst [vmem:[#allocation1 + $0x1] ss:$2 sm:$0xff] %v792_v52  ;;  %v3045_v55 = vld [vmem:[%s3411_s9 + $0x68] sm:$0xf] }
  0x7b   : > { %v849_v58 = vld.sshfl [vmem:[#allocation1 + $0x10] sm:$0xff pattern:$0x75316420]  ;;  %656 = vrot.lane.b32.xlu2 %v653_v51, %s3323_s11  ;;  %v3034_v51 = vld [vmem:[%s3411_s9 + $0x58] sm:$0xf] }
  0x7c   : > { %894 = vst [vmem:[#allocation1 + $0x10] ss:$2 sm:$0xff] %v883_v56  ;;  %v3042_v56 = vld [vmem:[%s3411_s9 + $0x50] sm:$0xf] }
  0x7d   : > { %v848_v61 = vld.sshfl [vmem:[#allocation1] sm:$0xff pattern:$0x75316420]  ;;  %812 = vrot.lane.b32.xlu0 %v809_v54, %s3324_s12  ;;  %896 = vst [vmem:[#allocation1 + $0x11] ss:$2 sm:$0xff] %v884_v57 }
  0x7e   : > { %850 = vrot.lane.b32.xlu1 %v848_v61, %s3323_s11  ;;  %890 = vst [vmem:[#allocation1] ss:$2 sm:$0xff] %v881_v59  ;;  %v3044_v54 = vld [vmem:[%s3411_s9 + $0x60] sm:$0xf]  ;;  %v3051_v61 = vld [vmem:[%s3411_s9 + $0x88] sm:$0xf] }
  0x7f   : > { %892 = vst [vmem:[#allocation1 + $0x1] ss:$2 sm:$0xff] %v882_v60  ;;  %v3579_v59 = vld [vmem:[%s4067_s1 + $0x20] sm:$0xff] }
  0x80   : > { %472 = vmatpush.msrb.mxu0 %v3579_v59 }
  0x84   : > { %v3483_v1 = vld.sshfl [vmem:[#allocation1 + $0x10] sm:$0xff pattern:$0x75316420] }
  0x85   : > { %941 = vst [vmem:[#allocation1 + $0x10] ss:$2 sm:$0xff] %v2991_v62  ;;  %v3585_v62 = vld [vmem:[%s4067_s1 + $0x30] sm:$0xff] }
  0x86   : > { %852 = vrot.lane.b32.xlu1 %v849_v58, %s3323_s11  ;;  %v3487_v3 = vld.sshfl [vmem:[#allocation1] sm:$0xff pattern:$0x75316420]  ;;  %943 = vst [vmem:[#allocation1 + $0x11] ss:$2 sm:$0xff] %v2992_v63  ;;  %573 = vmatpush.msrb.mxu2 %v3585_v62 }
  0x87   : > { %937 = vst [vmem:[#allocation1] ss:$2 sm:$0xff] %v2989_v0  ;;  %v3052_v63 = vld [vmem:[%s3411_s9 + $0x90] sm:$0xf]  ;;  %v3049_v0 = vld [vmem:[%s3411_s9 + $0x78] sm:$0xf] }
  0x88   : > { %939 = vst [vmem:[#allocation1 + $0x1] ss:$2 sm:$0xff] %v2990_v2 }
  0x8d   : > { %v945_v7 = vld.sshfl [vmem:[#allocation1 + $0x10] sm:$0xff pattern:$0x75316420] }
  0x8e   : > { %992 = vst [vmem:[#allocation1 + $0x10] ss:$2 sm:$0xff] %v2998_v4  ;;  %v3050_v4 = vld [vmem:[%s3411_s9 + $0x80] sm:$0xf] }
  0x8f   : > { %v944_v10 = vld.sshfl [vmem:[#allocation1] sm:$0xff pattern:$0x75316420]  ;;  %994 = vst [vmem:[#allocation1 + $0x11] ss:$2 sm:$0xff] %v2999_v5 }
  0x90   : > { %946 = vrot.lane.b32.xlu1 %v944_v10, %s3323_s11  ;;  %988 = vst [vmem:[#allocation1] ss:$2 sm:$0xff] %v2996_v6  ;;  %v3600_v6 = vld [vmem:[%s4067_s1 + $0x38] sm:$0xff]  ;;  %v3058_v10 = vld [vmem:[%s3411_s9 + $0x88] sm:$0xf] }
  0x91   : > { %990 = vst [vmem:[#allocation1 + $0x1] ss:$2 sm:$0xff] %v2997_v9  ;;  %v3605_v9 = vld [vmem:[%s4067_s1 + $0x28] sm:$0xff]  ;;  %625 = vmatpush.msrb.mxu3 %v3600_v6 }
  0x93   : > { %918 = vmatpush.msra.mxu3 %v3522_v35 }
  0x94   : > { %v264_v32 = vpop.permute.xlu0 %263 }
  0x95   : > { %2931 = vmatmul.msk.f32.vlgmr.msra.gmra.mxu1 %vm265_vm0, %v264_v32 }
  0x96   : > { %v996_v14 = vld.sshfl [vmem:[#allocation1 + $0x10] sm:$0xff pattern:$0x75316420]  ;;  %524 = vmatpush.msra.mxu1 %v3605_v9 }
  0x97   : > { %1043 = vst [vmem:[#allocation1 + $0x10] ss:$2 sm:$0xff] %v3005_v12 }
  0x98   : > { %v995_v17 = vld.sshfl [vmem:[#allocation1] sm:$0xff pattern:$0x75316420]  ;;  %948 = vrot.lane.b32.xlu1 %v945_v7, %s3323_s11  ;;  %1045 = vst [vmem:[#allocation1 + $0x11] ss:$2 sm:$0xff] %v3006_v13 }
  0x99   : > { %997 = vrot.lane.b32.xlu0 %v995_v17, %s3324_s12  ;;  %1039 = vst [vmem:[#allocation1] ss:$2 sm:$0xff] %v3003_v15  ;;  %v3059_v13 = vld [vmem:[%s3411_s9 + $0x90] sm:$0xf] }
  0x9a   : > { %1041 = vst [vmem:[#allocation1 + $0x1] ss:$2 sm:$0xff] %v3004_v16  ;;  %v3057_v16 = vld [vmem:[%s3411_s9 + $0x80] sm:$0xf] }
  0x9d   : > { %2932 = vmatmul.msk.f32.vlgmr.msrb.gmra.mxu1 %vm265_vm0, %v3424_v11 }
  0x9e   : > { %833 = vmatpush.msrb.mxu1 %v3517_v34 }
  0x9f   : > { %v3503_v22 = vld.sshfl [vmem:[#allocation1 + $0x10] sm:$0xff pattern:$0x75316420] }
  0xa0   : > { %1090 = vst [vmem:[#allocation1 + $0x10] ss:$2 sm:$0xff] %v3012_v18  ;;  %v3632_v18 = vld [vmem:[%s4067_s1 + $0x40] sm:$0xff] }
  0xa1   : > { %999 = vrot.lane.b32.xlu0 %v996_v14, %s3324_s12  ;;  %v3507_v25 = vld.sshfl [vmem:[#allocation1] sm:$0xff pattern:$0x75316420]  ;;  %1092 = vst [vmem:[#allocation1 + $0x11] ss:$2 sm:$0xff] %v3013_v19 }
  0xa2   : > { %1086 = vst [vmem:[#allocation1] ss:$2 sm:$0xff] %v3010_v21  ;;  %v450_v53 = vpop.permute.xlu2 %449  ;;  %v3056_v14 = vld [vmem:[%s3411_s9 + $0x78] sm:$0xf] }
  0xa3   : > { %1088 = vst [vmem:[#allocation1 + $0x1] ss:$2 sm:$0xff] %v3011_v24  ;;  %v3066_v24 = vld [vmem:[%s3411_s9 + $0x90] sm:$0xf] }
  0xa5   : > { %2933 = vmatmul.msk.f32.gmra.mxu1 %vm265_vm0, %v3420_v8  ;;  %v3043_v8 = vld [vmem:[%s3411_s9 + $0x58] sm:$0xf] }
  0xa6   : > { %v351_v33 = vpop.permute.xlu1 %350 }
  0xa8   : > { %v1094_v29 = vld.sshfl [vmem:[#allocation1 + $0x10] sm:$0xff pattern:$0x75316420]  ;;  %v349_v46 = vpop.permute.xlu0 %348 }
  0xa9   : > { %1141 = vst [vmem:[#allocation1 + $0x10] ss:$2 sm:$0xff] %v3019_v26  ;;  %2935 = vmatmul.msk.f32.vlgmr.msra.gmra.mxu2 %vm265_vm0, %v349_v46  ;;  %v3063_v26 = vld [vmem:[%s3411_s9 + $0x78] sm:$0xf] }
  0xaa   : > { %v1093_v31 = vld.sshfl [vmem:[#allocation1] sm:$0xff pattern:$0x75316420]  ;;  %1143 = vst [vmem:[#allocation1 + $0x11] ss:$2 sm:$0xff] %v3020_v27  ;;  %873 = vmatpush.msra.mxu2 %v3535_v38 }
  0xab   : > { %1137 = vst [vmem:[#allocation1] ss:$2 sm:$0xff] %v3017_v28  ;;  %1095 = vrot.lane.b32.xlu2 %v1093_v31, %s3323_s11  ;;  %v3064_v28 = vld [vmem:[%s3411_s9 + $0x80] sm:$0xf]  ;;  %v3072_v31 = vld [vmem:[%s3411_s9 + $0x18] sm:$0xf] }
  0xac   : > { %1139 = vst [vmem:[#allocation1 + $0x1] ss:$2 sm:$0xff] %v3018_v30 }
  0xae   : > { %v262_v47 = vpop.permute.xlu1 %261 }
  0xaf   : > { %2930 = vmatmul.msk.f32.vlgmr.msra.gmra.mxu0 %vm265_vm0, %v262_v47 }
  0xb0   : > { %677 = vmatpush.msra.mxu0 %v3632_v18 }
  0xb1   : > { %v1145_v43 = vld.sshfl [vmem:[#allocation1 + $0x10] sm:$0xff pattern:$0x75316420]  ;;  %2936 = vmatmul.msk.f32.gmra.mxu2 %vm265_vm0, %v351_v33  ;;  %v3073_v33 = vld [vmem:[%s3411_s9 + $0x20] sm:$0xf] }
  0xb2   : > { %1192 = vst [vmem:[#allocation1 + $0x10] ss:$2 sm:$0xff] %v3026_v37 }
  0xb3   : > { %v1144_v45 = vld.sshfl [vmem:[#allocation1] sm:$0xff pattern:$0x75316420]  ;;  %1097 = vrot.lane.b32.xlu2 %v1094_v29, %s3323_s11  ;;  %1194 = vst [vmem:[#allocation1 + $0x11] ss:$2 sm:$0xff] %v3027_v40 }
  0xb4   : > { %1188 = vst [vmem:[#allocation1] ss:$2 sm:$0xff] %v3024_v42  ;;  %v3070_v40 = vld [vmem:[%s3411_s9 + $0x8] sm:$0xf] }
  0xb5   : > { %1190 = vst [vmem:[#allocation1 + $0x1] ss:$2 sm:$0xff] %v3025_v44  ;;  %v3079_v44 = vld [vmem:[%s3411_s9 + $0x18] sm:$0xf] }
  0xb7   : > { %2949 = vmatmul.msk.f32.vlgmr.msrb.gmra.mxu0 %vm265_vm0, %v450_v53  ;;  %v3084_v53 = vld [vmem:[%s3411_s9 + $0x8] sm:$0xf] }
  0xb8   : > { %v452_v7 = vpop.permute.xlu1 %451  ;;  %969 = vmatpush.msrb.mxu0 %v3527_v36 }
  0xb9   : > { %2963 = vmatmul.msk.f32.vlgmr.msrb.gmra.mxu2 %vm265_vm0, %v3459_v41 }
  0xba   : > { %v3554_v23 = vld.sshfl [vmem:[#allocation1 + $0x10] sm:$0xff pattern:$0x75316420]  ;;  %1067 = vmatpush.msrb.mxu2 %v3605_v9 }
  0xbb   : > { %1146 = vrot.lane.b32.xlu2 %v1144_v45, %s3324_s12  ;;  %1340 = vst [vmem:[#allocation1 + $0x10] ss:$2 sm:$0xff] %v3035_v48  ;;  %v3080_v45 = vld [vmem:[%s3411_s9 + $0x20] sm:$0xf] }
  0xbc   : > { %v3560_v52 = vld.sshfl [vmem:[#allocation1] sm:$0xff pattern:$0x75316420]  ;;  %1342 = vst [vmem:[#allocation1 + $0x11] ss:$2 sm:$0xff] %v3036_v49 }
  0xbd   : > { %1336 = vst [vmem:[#allocation1] ss:$2 sm:$0xff] %v3033_v50  ;;  %v603_v60 = vpop.permute.xlu2 %602 }
  0xbe   : > { %1338 = vst [vmem:[#allocation1 + $0x1] ss:$2 sm:$0xff] %v3034_v51  ;;  %2970 = vmatmul.msk.f32.vlgmr.msrb.gmra.mxu3 %vm265_vm0, %v603_v60  ;;  %v3096_v60 = vld [vmem:[%s3411_s9 + $0x68] sm:$0xf] }
  0xbf   : > { %2950 = vmatmul.msk.f32.gmra.mxu0 %vm265_vm0, %v452_v7  ;;  %1118 = vmatpush.msrb.mxu3 %v3585_v62 }
  0xc1   : > { %2964 = vmatmul.msk.f32.gmra.mxu2 %vm265_vm0, %v3455_v39  ;;  %v3065_v39 = vld [vmem:[%s3411_s9 + $0x88] sm:$0xf] }
  0xc3   : > { %v1344_v11 = vld.sshfl [vmem:[#allocation1 + $0x10] sm:$0xff pattern:$0x75316420]  ;;  %v502_v12 = vpop.permute.xlu0 %501 }
  0xc4   : > { %1347 = vrot.lane.b32.xlu0 %v1344_v11, %s3322_s10  ;;  %1380 = vst [vmem:[#allocation1 + $0x10] ss:$2 sm:$0xff] %v3035_v48  ;;  %2956 = vmatmul.msk.f32.vlgmr.msra.gmra.mxu1 %vm265_vm0, %v502_v12  ;;  %v3077_v48 = vld [vmem:[%s3411_s9 + $0x8] sm:$0xf]  ;;  %v3087_v11 = vld [vmem:[%s3411_s9 + $0x20] sm:$0xf] }
  0xc5   : > { %v1343_v20 = vld.sshfl [vmem:[#allocation1] sm:$0xff pattern:$0x75316420]  ;;  %1382 = vst [vmem:[#allocation1 + $0x11] ss:$2 sm:$0xff] %v3036_v49  ;;  %v605_v41 = vpop.permute.xlu2 %604  ;;  %1020 = vmatpush.msra.mxu1 %v3579_v59 }
  0xc6   : > { %1345 = vrot.lane.b32.xlu1 %v1343_v20, %s3322_s10  ;;  %1376 = vst [vmem:[#allocation1] ss:$2 sm:$0xff] %v3033_v50  ;;  %2971 = vmatmul.msk.f32.gmra.mxu3 %vm265_vm0, %v605_v41  ;;  %v3078_v50 = vld [vmem:[%s3411_s9 + $0x10] sm:$0xf] }
  0xc7   : > { %1378 = vst [vmem:[#allocation1 + $0x1] ss:$2 sm:$0xff] %v3034_v51  ;;  %v3086_v51 = vld [vmem:[%s3411_s9 + $0x18] sm:$0xf] }
  0xcb   : > { %v504_v21 = vpop.permute.xlu0 %503 }
  0xcc   : > { %v3570_v57 = vld.sshfl [vmem:[#allocation1 + $0x10] sm:$0xff pattern:$0x75316420]  ;;  %2957 = vmatmul.msk.f32.gmra.mxu1 %vm265_vm0, %v504_v21  ;;  %v3109_v21 = vld [vmem:[%s3411_s9 + $0x78] sm:$0xf] }
  0xcd   : > { %1425 = vst [vmem:[#allocation1 + $0x10] ss:$2 sm:$0xff] %v3044_v54  ;;  %v655_v19 = vpop.permute.xlu2 %654 }
  0xce   : > { %1148 = vrot.lane.b32.xlu1 %v1145_v43, %s3324_s12  ;;  %v3574_v58 = vld.sshfl [vmem:[#allocation1] sm:$0xff pattern:$0x75316420]  ;;  %1427 = vst [vmem:[#allocation1 + $0x11] ss:$2 sm:$0xff] %v3045_v55  ;;  %2977 = vmatmul.msk.f32.vlgmr.msra.gmra.mxu0 %vm265_vm0, %v655_v19 }
  0xcf   : > { %1421 = vst [vmem:[#allocation1] ss:$2 sm:$0xff] %v3042_v56  ;;  %1169 = vmatpush.msra.mxu0 %v3600_v6  ;;  %2987 = vmatmul.msk.f32.vlgmr.msra.gmra.mxu3 %vm265_vm0, %v3487_v3  ;;  %v3071_v43 = vld [vmem:[%s3411_s9 + $0x10] sm:$0xf] }
  0xd0   : > { %1423 = vst [vmem:[#allocation1 + $0x1] ss:$2 sm:$0xff] %v3043_v8  ;;  %1404 = vmatpush.msra.mxu3 %v3535_v38  ;;  %v3085_v55 = vld [vmem:[%s3411_s9 + $0x10] sm:$0xf]  ;;  %v3095_v8 = vld [vmem:[%s3411_s9 + $0x60] sm:$0xf] }
  0xd1   : > { %v3112_v19 = vld [vmem:[%s3411_s9 + $0x90] sm:$0xf] }
  0xd5   : > { %v1429_v2 = vld.sshfl [vmem:[#allocation1 + $0x10] sm:$0xff pattern:$0x75316420]  ;;  %v657_v30 = vpop.permute.xlu2 %656 }
  0xd6   : > { %1477 = vst [vmem:[#allocation1 + $0x10] ss:$2 sm:$0xff] %v3051_v61  ;;  %2978 = vmatmul.msk.f32.gmra.mxu0 %vm265_vm0, %v657_v30  ;;  %v3117_v30 = vld [vmem:[%s3411_s9 + $0x80] sm:$0xf] }
  0xd7   : > { %v1428_v5 = vld.sshfl [vmem:[#allocation1] sm:$0xff pattern:$0x75316420]  ;;  %1479 = vst [vmem:[#allocation1 + $0x11] ss:$2 sm:$0xff] %v3052_v63  ;;  %2988 = vmatmul.msk.f32.gmra.mxu3 %vm265_vm0, %v3483_v1 }
  0xd8   : > { %1430 = vrot.lane.b32.xlu0 %v1428_v5, %s3323_s11  ;;  %1473 = vst [vmem:[#allocation1] ss:$2 sm:$0xff] %v3049_v0  ;;  %v3093_v63 = vld [vmem:[%s3411_s9 + $0x50] sm:$0xf] }
  0xd9   : > { %1475 = vst [vmem:[#allocation1 + $0x1] ss:$2 sm:$0xff] %v3050_v4  ;;  %v3094_v4 = vld [vmem:[%s3411_s9 + $0x58] sm:$0xf] }
  0xde   : > { %v3614_v15 = vld.sshfl [vmem:[#allocation1 + $0x10] sm:$0xff pattern:$0x75316420] }
  0xdf   : > { %1524 = vst [vmem:[#allocation1 + $0x10] ss:$2 sm:$0xff] %v3058_v10 }
  0xe0   : > { %v3622_v17 = vld.sshfl [vmem:[#allocation1] sm:$0xff pattern:$0x75316420]  ;;  %1432 = vrot.lane.b32.xlu0 %v1429_v2, %s3323_s11  ;;  %1526 = vst [vmem:[#allocation1 + $0x11] ss:$2 sm:$0xff] %v3059_v13 }
  0xe1   : > { %1520 = vst [vmem:[#allocation1] ss:$2 sm:$0xff] %v3056_v14  ;;  %v3104_v13 = vld [vmem:[%s3411_s9 + $0x61] sm:$0xf]  ;;  %v3105_v14 = vld [vmem:[%s3411_s9 + $0x69] sm:$0xf] }
  0xe2   : > { %1522 = vst [vmem:[#allocation1 + $0x1] ss:$2 sm:$0xff] %v3057_v16 }
  0xe7   : > { %v1528_v27 = vld.sshfl [vmem:[#allocation1 + $0x10] sm:$0xff pattern:$0x75316420]  ;;  %v811_v32 = vpop.permute.xlu0 %810 }
  0xe8   : > { %1575 = vst [vmem:[#allocation1 + $0x10] ss:$2 sm:$0xff] %v3065_v39  ;;  %2982 = vmatmul.msk.f32.vlgmr.msrb.gmra.mxu1 %vm265_vm0, %v811_v32  ;;  %v3102_v39 = vld [vmem:[%s3411_s9 + $0x51] sm:$0xf] }
  0xe9   : > { %v1527_v29 = vld.sshfl [vmem:[#allocation1] sm:$0xff pattern:$0x75316420]  ;;  %1577 = vst [vmem:[#allocation1 + $0x11] ss:$2 sm:$0xff] %v3066_v24  ;;  %1216 = vmatpush.msrb.mxu1 %v3632_v18 }
  0xea   : > { %1571 = vst [vmem:[#allocation1] ss:$2 sm:$0xff] %v3063_v26  ;;  %1529 = vrot.lane.b32.xlu2 %v1527_v29, %s3322_s10 }
  0xeb   : > { %1573 = vst [vmem:[#allocation1 + $0x1] ss:$2 sm:$0xff] %v3064_v28  ;;  %v3116_v28 = vld [vmem:[%s3411_s9 + $0x78] sm:$0xf] }
  0xef   : > { %v813_v47 = vpop.permute.xlu0 %812 }
  0xf0   : > { %v1579_v37 = vld.sshfl [vmem:[#allocation1 + $0x10] sm:$0xff pattern:$0x75316420]  ;;  %v851_v42 = vpop.permute.xlu1 %850  ;;  %2983 = vmatmul.msk.f32.gmra.mxu1 %vm265_vm0, %v813_v47 }
  0xf1   : > { %1627 = vst [vmem:[#allocation1 + $0x10] ss:$2 sm:$0xff] %v3072_v31  ;;  %2984 = vmatmul.msk.f32.vlgmr.msra.gmra.mxu2 %vm265_vm0, %v851_v42 }
  0xf2   : > { %v1578_v3 = vld.sshfl [vmem:[#allocation1] sm:$0xff pattern:$0x75316420]  ;;  %1629 = vst [vmem:[#allocation1 + $0x11] ss:$2 sm:$0xff] %v3073_v33  ;;  %1531 = vrot.lane.b32.xlu2 %v1528_v27, %s3322_s10  ;;  %1368 = vmatpush.msra.mxu2 %v3517_v34 }
  0xf3   : > { %1580 = vrot.lane.b32.xlu1 %v1578_v3, %s3323_s11  ;;  %1623 = vst [vmem:[#allocation1] ss:$2 sm:$0xff] %v3070_v40  ;;  %v3119_v27 = vld [vmem:[%s3411_s9 + $0x90] sm:$0xf]  ;;  %v3124_v40 = vld [vmem:[%s3411_s9 + $0x81] sm:$0xf] }
  0xf4   : > { %1625 = vst [vmem:[#allocation1 + $0x1] ss:$2 sm:$0xff] %v3071_v43  ;;  %v3132_v3 = vld [vmem:[%s3411_s9 + $0x18] sm:$0xf] }
  0xf8   : > { %v853_v46 = vpop.permute.xlu1 %852 }
  0xf9   : > { %v3663_v49 = vld.sshfl [vmem:[#allocation1 + $0x10] sm:$0xff pattern:$0x75316420]  ;;  %2985 = vmatmul.msk.f32.gmra.mxu2 %vm265_vm0, %v853_v46  ;;  %v3130_v46 = vld [vmem:[%s3411_s9 + $0x8] sm:$0xf] }
  0xfa   : > { %1674 = vst [vmem:[#allocation1 + $0x10] ss:$2 sm:$0xff] %v3079_v44 }
  0xfb   : > { %1582 = vrot.lane.b32.xlu1 %v1579_v37, %s3323_s11  ;;  %v3669_v1 = vld.sshfl [vmem:[#allocation1] sm:$0xff pattern:$0x75316420]  ;;  %1676 = vst [vmem:[#allocation1 + $0x11] ss:$2 sm:$0xff] %v3080_v45 }
  0xfc   : > { %1670 = vst [vmem:[#allocation1] ss:$2 sm:$0xff] %v3077_v48  ;;  %v3123_v37 = vld [vmem:[%s3411_s9 + $0x79] sm:$0xf]  ;;  %v3133_v45 = vld [vmem:[%s3411_s9 + $0x20] sm:$0xf] }
  0xfd   : > { %1672 = vst [vmem:[#allocation1 + $0x1] ss:$2 sm:$0xff] %v3078_v50  ;;  %v3131_v48 = vld [vmem:[%s3411_s9 + $0x10] sm:$0xf] }
 0x101   : > { %3008 = vmatmul.msk.f32.vlgmr.msrb.gmra.mxu2 %vm265_vm0, %v3507_v25 }
 0x102   : > { %v1678_v20 = vld.sshfl [vmem:[#allocation1 + $0x10] sm:$0xff pattern:$0x75316420]  ;;  %v947_v54 = vpop.permute.xlu1 %946  ;;  %1552 = vmatpush.msrb.mxu2 %v3579_v59 }
 0x103   : > { %1725 = vst [vmem:[#allocation1 + $0x10] ss:$2 sm:$0xff] %v3086_v51  ;;  %2994 = vmatmul.msk.f32.vlgmr.msrb.gmra.mxu0 %vm265_vm0, %v947_v54  ;;  %v3140_v54 = vld [vmem:[%s3411_s9 + $0x20] sm:$0xf] }
 0x104   : > { %v1677_v56 = vld.sshfl [vmem:[#allocation1] sm:$0xff pattern:$0x75316420]  ;;  %1727 = vst [vmem:[#allocation1 + $0x11] ss:$2 sm:$0xff] %v3087_v11  ;;  %1453 = vmatpush.msrb.mxu0 %v3522_v35 }
 0x105   : > { %1679 = vrot.lane.b32.xlu1 %v1677_v56, %s3322_s10  ;;  %1721 = vst [vmem:[#allocation1] ss:$2 sm:$0xff] %v3084_v53  ;;  %v1096_v25 = vpop.permute.xlu2 %1095  ;;  %v3137_v56 = vld [vmem:[%s3411_s9 + $0x8] sm:$0xf] }
 0x106   : > { %1723 = vst [vmem:[#allocation1 + $0x1] ss:$2 sm:$0xff] %v3085_v55  ;;  %3015 = vmatmul.msk.f32.vlgmr.msrb.gmra.mxu3 %vm265_vm0, %v1096_v25 }
 0x107   : > { %1603 = vmatpush.msrb.mxu3 %v3605_v9 }
 0x109   : > { %3009 = vmatmul.msk.f32.gmra.mxu2 %vm265_vm0, %v3503_v22 }
 0x10a   : > { %v949_v61 = vpop.permute.xlu1 %948 }
 0x10b   : > { %v1729_v0 = vld.sshfl [vmem:[#allocation1 + $0x10] sm:$0xff pattern:$0x75316420]  ;;  %v998_v2 = vpop.permute.xlu0 %997  ;;  %2995 = vmatmul.msk.f32.gmra.mxu0 %vm265_vm0, %v949_v61 }
 0x10c   : > { %1878 = vst [vmem:[#allocation1 + $0x10] ss:$2 sm:$0xff] %v3095_v8  ;;  %3001 = vmatmul.msk.f32.vlgmr.msra.gmra.mxu1 %vm265_vm0, %v998_v2  ;;  %v422_v2 = vpop.f32.mrf.mxu3 }
 0x10d   : > { %1681 = vrot.lane.b32.xlu1 %v1678_v20, %s3322_s10  ;;  %v1728_v5 = vld.sshfl [vmem:[#allocation1] sm:$0xff pattern:$0x75316420]  ;;  %1880 = vst [vmem:[#allocation1 + $0x11] ss:$2 sm:$0xff] %v3096_v60  ;;  %v1098_v7 = vpop.permute.xlu2 %1097  ;;  %1501 = vmatpush.msra.mxu1 %v3527_v36  ;;  %s2860_s10 = sshll.u32 %s2857_s17, 4  ;;  %s2861_s10 = int_to_ptr.hbm [resolvable:$true] %s2860_s10 }
 0x10e   : > { %1730 = vrot.lane.b32.xlu2 %v1728_v5, %s3323_s11  ;;  %1874 = vst [vmem:[#allocation1] ss:$2 sm:$0xff] %v3093_v63  ;;  %3016 = vmatmul.msk.f32.gmra.mxu3 %vm265_vm0, %v1098_v7  ;;  %v3139_v20 = vld [vmem:[%s3411_s9 + $0x18] sm:$0xf] }
 0x10f   : > { %1876 = vst [vmem:[#allocation1 + $0x1] ss:$2 sm:$0xff] %v3094_v4 }
 0x112   : > { %v290_v43 = vpop.f32.mrf.mxu1 }
 0x113   : > { %v1000_v22 = vpop.permute.xlu0 %999 }
 0x114   : > { %v1882_v41 = vld.sshfl [vmem:[#allocation1 + $0x10] sm:$0xff pattern:$0x75316420]  ;;  %3002 = vmatmul.msk.f32.gmra.mxu1 %vm265_vm0, %v1000_v22 }
 0x115   : > { %1918 = vst [vmem:[#allocation1 + $0x10] ss:$2 sm:$0xff] %v3095_v8  ;;  %v1147_v12 = vpop.permute.xlu2 %1146  ;;  %v3138_v8 = vld [vmem:[%s3411_s9 + $0x10] sm:$0xf] }
 0x116   : > { %v1881_v10 = vld.sshfl [vmem:[#allocation1] sm:$0xff pattern:$0x75316420]  ;;  %1732 = vrot.lane.b32.xlu2 %v1729_v0, %s3323_s11  ;;  %1920 = vst [vmem:[#allocation1 + $0x11] ss:$2 sm:$0xff] %v3096_v60  ;;  %3040 = vmatmul.msk.f32.vlgmr.msra.gmra.mxu3 %vm265_vm0, %v3574_v58 }
 0x117   : > { %1883 = vrot.lane.b32.xlu0 %v1881_v10, %s3324_s12  ;;  %1914 = vst [vmem:[#allocation1] ss:$2 sm:$0xff] %v3093_v63  ;;  %1906 = vmatpush.msra.mxu3 %v3517_v34  ;;  %v3103_v34 = vld [vmem:[%s3411_s9 + $0x59] sm:$0xf] }
 0x118   : > { %1916 = vst [vmem:[#allocation1 + $0x1] ss:$2 sm:$0xff] %v3094_v4  ;;  %3022 = vmatmul.msk.f32.vlgmr.msra.gmra.mxu0 %vm265_vm0, %v1147_v12 }
 0x119   : > { %1651 = vmatpush.msra.mxu0 %v3585_v62 }
 0x11a   : > { %v323_v11 = vpop.f32.mrf.mxu1 }
 0x11c   : > { %3029 = vmatmul.msk.f32.vlgmr.msrb.gmra.mxu1 %vm265_vm0, %v3560_v52  ;;  %v3111_v52 = vld [vmem:[%s3411_s9 + $0x88] sm:$0xf] }
 0x11d   : > { %v1922_v16 = vld.sshfl [vmem:[#allocation1 + $0x10] sm:$0xff pattern:$0x75316420]  ;;  %1702 = vmatpush.msrb.mxu1 %v3600_v6 }
 0x11e   : > { %1967 = vst [vmem:[#allocation1 + $0x10] ss:$2 sm:$0xff] %v3104_v13  ;;  %3041 = vmatmul.msk.f32.gmra.mxu3 %vm265_vm0, %v3570_v57  ;;  %v3110_v57 = vld [vmem:[%s3411_s9 + $0x80] sm:$0xf]  ;;  %v425_v13 = vpop.f32.mrf.mxu3 }
 0x11f   : > { %1885 = vrot.lane.b32.xlu0 %v1882_v41, %s3324_s12  ;;  %v1921_v58 = vld.sshfl [vmem:[#allocation1] sm:$0xff pattern:$0x75316420]  ;;  %1969 = vst [vmem:[#allocation1 + $0x11] ss:$2 sm:$0xff] %v3105_v14 }
 0x120   : > { %1963 = vst [vmem:[#allocation1] ss:$2 sm:$0xff] %v3102_v39 }
 0x121   : > { %1965 = vst [vmem:[#allocation1 + $0x1] ss:$2 sm:$0xff] %v3103_v34 }
 0x124   : > { %3030 = vmatmul.msk.f32.gmra.mxu1 %vm265_vm0, %v3554_v23  ;;  %v3118_v23 = vld [vmem:[%s3411_s9 + $0x88] sm:$0xf] }
 0x126   : > { %v3718_v24 = vld.sshfl [vmem:[#allocation1 + $0x10] sm:$0xff pattern:$0x75316420] }
 0x127   : > { %1923 = vrot.lane.b32.xlu0 %v1921_v58, %s3323_s11  ;;  %2014 = vst [vmem:[#allocation1 + $0x10] ss:$2 sm:$0xff] %v3111_v52 }
 0x128   : > { %v3722_v26 = vld.sshfl [vmem:[#allocation1] sm:$0xff pattern:$0x75316420]  ;;  %2016 = vst [vmem:[#allocation1 + $0x11] ss:$2 sm:$0xff] %v3112_v19 }
 0x129   : > { %2010 = vst [vmem:[#allocation1] ss:$2 sm:$0xff] %v3109_v21 }
 0x12a   : > { %2012 = vst [vmem:[#allocation1 + $0x1] ss:$2 sm:$0xff] %v3110_v57 }
 0x12c   : > { %3054 = vmatmul.msk.f32.vlgmr.msra.gmra.mxu1 %vm265_vm0, %v3622_v17  ;;  %v3125_v17 = vld [vmem:[%s3411_s9 + $0x89] sm:$0xf]  ;;  %v287_v53 = vpop.f32.mrf.mxu0  ;;  %v373_v63 = vpop.f32.mrf.mxu2 }
 0x12d   : > { %1991 = vmatpush.msra.mxu1 %v3522_v35  ;;  %v3126_v35 = vld [vmem:[%s3411_s9 + $0x91] sm:$0xf]  ;;  %v324_v61 = vadd.f32 %v323_v11, %v287_v53 }
 0x12f   : > { %1925 = vrot.lane.b32.xlu0 %v1922_v16, %s3323_s11  ;;  %v2018_v29 = vld.sshfl [vmem:[#allocation1 + $0x10] sm:$0xff pattern:$0x75316420]  ;;  %v379_v4 = vadd.f32 %v373_v63, %v324_v61 }
 0x130   : > { %2065 = vst [vmem:[#allocation1 + $0x10] ss:$2 sm:$0xff] %v3118_v23 }
 0x131   : > { %v2017_v31 = vld.sshfl [vmem:[#allocation1] sm:$0xff pattern:$0x75316420]  ;;  %2067 = vst [vmem:[#allocation1 + $0x11] ss:$2 sm:$0xff] %v3119_v27  ;;  %v428_v41 = vadd.f32 %v422_v2, %v379_v4 }
 0x132   : > { %2061 = vst [vmem:[#allocation1] ss:$2 sm:$0xff] %v3116_v28  ;;  %2019 = vrot.lane.b32.xlu2 %v2017_v31, %s3323_s11 }
 0x133   : > { %2063 = vst [vmem:[#allocation1 + $0x1] ss:$2 sm:$0xff] %v3117_v30 }
 0x134   : > { %3055 = vmatmul.msk.f32.gmra.mxu1 %vm265_vm0, %v3614_v15  ;;  %v474_v7 = vpop.f32.mrf.mxu0  ;;  %v376_v10 = vpop.f32.mrf.mxu2 }
 0x135   : > { %v480_v12 = vadd.f32 %v474_v7, %v428_v41 }
 0x136   : > { %v1348_v15 = vpop.permute.xlu0 %1347 }
 0x138   : > { %v2069_v32 = vld.sshfl [vmem:[#allocation1 + $0x10] sm:$0xff pattern:$0x75316420]  ;;  %v1346_v33 = vpop.permute.xlu1 %1345 }
 0x139   : > { %2116 = vst [vmem:[#allocation1 + $0x10] ss:$2 sm:$0xff] %v3125_v17  ;;  %3038 = vmatmul.msk.f32.vlgmr.msra.gmra.mxu2 %vm265_vm0, %v1346_v33 }
 0x13a   : > { %v2068_v42 = vld.sshfl [vmem:[#allocation1] sm:$0xff pattern:$0x75316420]  ;;  %2118 = vst [vmem:[#allocation1 + $0x11] ss:$2 sm:$0xff] %v3126_v35  ;;  %2021 = vrot.lane.b32.xlu2 %v2018_v29, %s3323_s11  ;;  %1753 = vmatpush.msra.mxu2 %v3632_v18 }
 0x13b   : > { %2070 = vrot.lane.b32.xlu1 %v2068_v42, %s3324_s12  ;;  %2112 = vst [vmem:[#allocation1] ss:$2 sm:$0xff] %v3123_v37 }
 0x13c   : > { %2114 = vst [vmem:[#allocation1 + $0x1] ss:$2 sm:$0xff] %v3124_v40  ;;  %v477_v14 = vpop.f32.mrf.mxu0  ;;  %v575_v58 = vpop.f32.mrf.mxu2 }
 0x140   : > { %v1149_v44 = vpop.permute.xlu1 %1148 }
 0x141   : > { %3023 = vmatmul.msk.f32.gmra.mxu0 %vm265_vm0, %v1149_v44  ;;  %v3747_v47 = vld.sshfl [vmem:[#allocation1 + $0x10] sm:$0xff pattern:$0x75316420]  ;;  %3039 = vmatmul.msk.f32.gmra.mxu2 %vm265_vm0, %v1348_v15  ;;  %v627_v19 = vpop.f32.mrf.mxu3 }
 0x142   : > { %2163 = vst [vmem:[#allocation1 + $0x10] ss:$2 sm:$0xff] %v3132_v3 }
 0x143   : > { %2072 = vrot.lane.b32.xlu1 %v2069_v32, %s3324_s12  ;;  %v3752_v50 = vld.sshfl [vmem:[#allocation1] sm:$0xff pattern:$0x75316420]  ;;  %2165 = vst [vmem:[#allocation1 + $0x11] ss:$2 sm:$0xff] %v3133_v45 }
 0x144   : > { %2159 = vst [vmem:[#allocation1] ss:$2 sm:$0xff] %v3130_v46  ;;  %v1530_v51 = vpop.permute.xlu2 %1529  ;;  %v578_v15 = vpop.f32.mrf.mxu2 }
 0x145   : > { %2161 = vst [vmem:[#allocation1 + $0x1] ss:$2 sm:$0xff] %v3131_v48 }
 0x149   : > { %3061 = vmatmul.msk.f32.vlgmr.msrb.gmra.mxu2 %vm265_vm0, %v1530_v51 }
 0x14a   : > { %v2167_v55 = vld.sshfl [vmem:[#allocation1 + $0x10] sm:$0xff pattern:$0x75316420]  ;;  %v1431_v25 = vpop.permute.xlu0 %1430  ;;  %2042 = vmatpush.msrb.mxu2 %v3527_v36  ;;  %v326_v36 = vpop.f32.mrf.mxu1 }
 0x14b   : > { %2214 = vst [vmem:[#allocation1 + $0x10] ss:$2 sm:$0xff] %v3139_v20  ;;  %3047 = vmatmul.msk.f32.vlgmr.msrb.gmra.mxu0 %vm265_vm0, %v1431_v25  ;;  %v327_v34 = vadd.f32 %v326_v36, %v290_v43  ;;  %v679_v23 = vpop.f32.mrf.mxu0 }
 0x14c   : > { %v2166_v60 = vld.sshfl [vmem:[#allocation1] sm:$0xff pattern:$0x75316420]  ;;  %2216 = vst [vmem:[#allocation1 + $0x11] ss:$2 sm:$0xff] %v3140_v54  ;;  %1946 = vmatpush.msrb.mxu0 %v3535_v38  ;;  %v1532_v0 = vpop.permute.xlu2 %1531 }
 0x14d   : > { %2168 = vrot.lane.b32.xlu0 %v2166_v60, %s3323_s11  ;;  %2210 = vst [vmem:[#allocation1] ss:$2 sm:$0xff] %v3137_v56  ;;  %v380_v57 = vadd.f32 %v376_v10, %v327_v34 }
 0x14e   : > { %2212 = vst [vmem:[#allocation1 + $0x1] ss:$2 sm:$0xff] %v3138_v8 }
 0x151   : > { %3062 = vmatmul.msk.f32.gmra.mxu2 %vm265_vm0, %v1532_v0 }
 0x152   : > { %v1433_v5 = vpop.permute.xlu0 %1432  ;;  %v526_v16 = vpop.f32.mrf.mxu1 }
 0x153   : > { %v2218_v22 = vld.sshfl [vmem:[#allocation1 + $0x10] sm:$0xff pattern:$0x75316420]  ;;  %3048 = vmatmul.msk.f32.gmra.mxu0 %vm265_vm0, %v1433_v5  ;;  %v532_v39 = vadd.f32 %v526_v16, %v480_v12  ;;  %v682_v51 = vpop.f32.mrf.mxu0 }
 0x154   : > { %2221 = vrot.lane.b32.xlu1 %v2218_v22, %s3324_s12 }
 0x155   : > { %v2217_v38 = vld.sshfl [vmem:[#allocation1] sm:$0xff pattern:$0x75316420]  ;;  %v581_v52 = vadd.f32 %v575_v58, %v532_v39 }
 0x156   : > { %2219 = vrot.lane.b32.xlu2 %v2217_v38, %s3324_s12  ;;  %s2846_s12 = scalar_lea.sflag [#allocation4], %s215_s30 }
 0x157   : > { %v633_v21 = vadd.f32 %v627_v19, %v581_v52 }
 0x159   : > { %v685_v28 = vadd.f32 %v679_v23, %v633_v21 }
 0x15a   : > { %v529_v33 = vpop.f32.mrf.mxu1 }
 0x15b   : > { %3075 = vmatmul.msk.f32.vlgmr.msra.gmra.mxu0 %vm265_vm0, %v3669_v1  ;;  %v3776_v1 = vld [vmem:[%s4068_s2] ss:$0 sm:$0xff] }
 0x15c   : > { %2140 = vmatpush.msra.mxu0 %v3605_v9  ;;  %v429_v9 = vadd.f32 %v425_v13, %v380_v57  ;;  %v3780_v29 = vadd.f32 %v3776_v1, %v685_v28 }
 0x15e   : > { %2170 = vrot.lane.b32.xlu2 %v2167_v55, %s3323_s11  ;;  %v481_v31 = vadd.f32 %v477_v14, %v429_v9 }
 0x163   : > { %3076 = vmatmul.msk.f32.gmra.mxu0 %vm265_vm0, %v3663_v49  ;;  %v3785_v49 = vmul.f32 0.70710677, %v3780_v29 }
 0x165   : > { %v1581_v27 = vpop.permute.xlu1 %1580  ;;  %v696_v17 = vmul.f32 %v3785_v49, %v3785_v49  ;;  %v835_v41 = vpop.f32.mrf.mxu1 }
 0x166   : > { %3068 = vmatmul.msk.f32.vlgmr.msrb.gmra.mxu3 %vm265_vm0, %v1581_v27 }
 0x167   : > { %2093 = vmatpush.msrb.mxu3 %v3579_v59  ;;  %v697_v32 = vmin.f32 %v696_v17, 16.0  ;;  %v533_v59 = vadd.f32 %v529_v33, %v481_v31 }
 0x168   : > { %v1731_v30 = vpop.permute.xlu2 %1730 }
 0x169   : > { %3089 = vmatmul.msk.f32.vlgmr.msra.gmra.mxu2 %vm265_vm0, %v1731_v30  ;;  %v698_v37 = vmul.f32 2.1237322e-06, %v697_v32  ;;  %v709_v40 = vmul.f32 3.8918573e-05, %v697_v32  ;;  %v582_v44 = vadd.f32 %v578_v15, %v533_v59 }
 0x16a   : > { %2242 = vmatpush.msra.mxu2 %v3600_v6  ;;  %v630_v6 = vpop.f32.mrf.mxu3 }
 0x16b   : > { %v699_v43 = vadd.f32 0.00028619796, %v698_v37  ;;  %v710_v3 = vadd.f32 0.001143296, %v709_v40  ;;  %v634_v48 = vadd.f32 %v630_v6, %v582_v44 }
 0x16d   : > { %v1583_v35 = vpop.permute.xlu1 %1582  ;;  %v700_v45 = vmul.f32 %v699_v43, %v697_v32  ;;  %v711_v46 = vmul.f32 %v710_v3, %v697_v32  ;;  %v686_v53 = vadd.f32 %v682_v51, %v634_v48  ;;  %v3809_v58 = vpop.f32.mrf.mxu1 }
 0x16e   : > { %3069 = vmatmul.msk.f32.gmra.mxu3 %vm265_vm0, %v1583_v35 }
 0x16f   : > { %v701_v11 = vadd.f32 0.0036580483, %v700_v45  ;;  %v712_v20 = vadd.f32 0.014752088, %v711_v46  ;;  %v3793_v25 = vadd.f32 %v3776_v1, %v686_v53 }
 0x170   : > { %v1733_v42 = vpop.permute.xlu2 %1732 }
 0x171   : > { %3090 = vmatmul.msk.f32.gmra.mxu2 %vm265_vm0, %v1733_v42  ;;  %v702_v55 = vmul.f32 %v701_v11, %v697_v32  ;;  %v713_v56 = vmul.f32 %v712_v20, %v697_v32  ;;  %v3797_v60 = vmul.f32 0.70710677, %v3793_v25 }
 0x173   : > { %v714_v8 = vadd.f32 0.112945676, %v713_v56  ;;  %v703_v61 = vadd.f32 0.05243302, %v702_v55  ;;  %v736_v0 = vmul.f32 %v3797_v60, %v3797_v60 }
 0x174   : > { %v875_v27 = vpop.f32.mrf.mxu2 }
 0x175   : > { %v715_v63 = vmul.f32 %v714_v8, %v697_v32  ;;  %v3802_v4 = vmin.f32 %v736_v0, 16.0  ;;  %v704_v5 = vmul.f32 %v703_v61, %v697_v32  ;;  %v876_v20 = vadd.f32 %v875_v27, %v835_v41 }
 0x176   : > { %v692_v8 = vmul.f32 0.5, %v3780_v29 }
 0x177   : > { %v1680_v54 = vpop.permute.xlu1 %1679  ;;  %v716_v2 = vadd.f32 0.4994258, %v715_v63  ;;  %v749_v22 = vmul.f32 3.8918573e-05, %v3802_v4  ;;  %v705_v12 = vadd.f32 0.18741608, %v704_v5 }
 0x178   : > { %3082 = vmatmul.msk.f32.vlgmr.msrb.gmra.mxu1 %vm265_vm0, %v1680_v54  ;;  %v738_v13 = vmul.f32 2.1237322e-06, %v3802_v4 }
 0x179   : > { %2191 = vmatpush.msrb.mxu1 %v3585_v62  ;;  %v717_v7 = vmul.f32 %v716_v2, %v697_v32  ;;  %v750_v10 = vadd.f32 0.001143296, %v749_v22  ;;  %v706_v16 = vmul.f32 %v705_v12, %v697_v32  ;;  %v920_v32 = vpop.f32.mrf.mxu3  ;;  %v3144_v2 = vld [vmem:[%s3411_s9 + $0x9] sm:$0xf] }
 0x17a   : > { %v739_v39 = vadd.f32 0.00028619796, %v738_v13  ;;  %v926_v56 = vadd.f32 %v920_v32, %v876_v20  ;;  %2261 = vst [vmem:[#allocation1] ss:$2 sm:$0xff] %v3144_v2 }
 0x17b   : > { %v718_v38 = vadd.f32 1.0, %v717_v7  ;;  %v751_v62 = vmul.f32 %v750_v10, %v3802_v4  ;;  %v707_v28 = vadd.f32 1.1283791, %v706_v16  ;;  %v3145_v7 = vld [vmem:[%s3411_s9 + $0x11] sm:$0xf] }
 0x17c   : > { %v740_v19 = vmul.f32 %v739_v39, %v3802_v4  ;;  %v3832_v11 = vpop.f32.mrf.mxu2  ;;  %2263 = vst [vmem:[#allocation1 + $0x1] ss:$2 sm:$0xff] %v3145_v7 }
 0x17d   : > { %3242 = vrcp.f32 %v718_v38  ;;  %v752_v14 = vadd.f32 0.014752088, %v751_v62  ;;  %vm724_vm1 = vweird.f32 %v718_v38  ;;  %v730_v9 = vand.u32 2147483648, %v718_v38 }
 0x17e   : > { %v741_v30 = vadd.f32 0.0036580483, %v740_v19  ;;  %v728_v17 = vand.u32 2147483647, %v718_v38  ;;  %v708_v43 = vmul.f32 %v707_v28, %v3785_v49 }
 0x17f   : > { %v1682_v36 = vpop.permute.xlu1 %1681  ;;  %v753_v34 = vmul.f32 %v752_v14, %v3802_v4 }
 0x180   : > { %3083 = vmatmul.msk.f32.gmra.mxu1 %vm265_vm0, %v1682_v36  ;;  %v742_v33 = vmul.f32 %v741_v30, %v3802_v4  ;;  %v971_v59 = vpop.f32.mrf.mxu0  ;;  %vm729_vm4 = vcmp.eq.f32.partialorder %v728_v17, 8.507059e+37 }
 0x181   : > { %v754_v23 = vadd.f32 0.112945676, %v753_v34  ;;  %v3834_v55 = vpop.f32.mrf.mxu3  ;;  %v977_v0 = vadd.f32 %v971_v59, %v926_v56  ;;  %v693_v59 = vmul.f32 0.5, %v3793_v25 }
 0x182   : > { %v743_v15 = vadd.f32 0.05243302, %v742_v33 }
 0x183   : > { %v3243_v52 = vpop.eup %3242 }
 0x184   : > { %v720_v57 = vmul.f32 %v3243_v52, %v718_v38  ;;  %vm725_vm2 = vweird.f32 %v3243_v52  ;;  %v744_v45 = vmul.f32 %v743_v15, %v3802_v4  ;;  %v1069_v29 = vpop.f32.mrf.mxu2 }
 0x185   : > { %vm3820_vm3 = vmor %vm724_vm1, %vm725_vm2 }
 0x186   : > { %v721_v31 = vsub.f32 1.0, %v720_v57 }
 0x188   : > { %3107 = vmatmul.msk.f32.vlgmr.msra.gmra.mxu1 %vm265_vm0, %v3722_v26  ;;  %v755_v26 = vmul.f32 %v754_v23, %v3802_v4  ;;  %v722_v37 = vmul.f32 %v3243_v52, %v721_v31  ;;  %v3838_v63 = vpop.f32.mrf.mxu0 }
 0x189   : > { %v1884_v21 = vpop.permute.xlu0 %1883  ;;  %v1022_v6 = vpop.f32.mrf.mxu1 }
 0x18a   : > { %3098 = vmatmul.msk.f32.vlgmr.msra.gmra.mxu3 %vm265_vm0, %v1884_v21  ;;  %v756_v40 = vadd.f32 0.4994258, %v755_v26  ;;  %v723_v3 = vadd.f32 %v3243_v52, %v722_v37  ;;  %v1028_v38 = vadd.f32 %v1022_v6, %v977_v0  ;;  %v1120_v34 = vpop.f32.mrf.mxu3  ;;  %v3147_v6 = vld [vmem:[%s3411_s9 + $0x21] sm:$0xf] }
 0x18b   : > { %2289 = vmatpush.msra.mxu3 %v3632_v18  ;;  %v731_v18 = vor.u32 1.1754944e-38, %v730_v9  ;;  %v3325_v9 = vmov 0.0   ;;  %2267 = vst [vmem:[#allocation1 + $0x11] ss:$2 sm:$0xff] %v3147_v6 }
 0x18c   : > { %v2020_v35 = vpop.permute.xlu2 %2019  ;;  %v757_v44 = vmul.f32 %v756_v40, %v3802_v4  ;;  %v727_v48 = vsel %vm3820_vm3, %v3243_v52, %v723_v3  ;;  %v1075_v13 = vadd.f32 %v1069_v29, %v1028_v38  ;;  %225 = vst.msk [vmem:[#allocation2 + $0x50] sm:$0x1f] %vm224_vm8, %v3325_v9  ;;  %v3146_v3 = vld [vmem:[%s3411_s9 + $0x19] sm:$0xf]  ;;  %v1072_v0 = vpop.f32.mrf.mxu2  ;;  %s3272_s9 = sshra.s32 %s2861_s10, 4  ;;  %s3273_s9 = int_to_ptr.hbm [resolvable:$true] %s3272_s9 }
 0x18d   : > { %3114 = vmatmul.msk.f32.vlgmr.msrb.gmra.mxu2 %vm265_vm0, %v2020_v35  ;;  %v732_v49 = vsel %vm729_vm4, %v731_v18, %v727_v48  ;;  %227 = vst.msk [vmem:[#allocation2 + $0x78] sm:$0x1f] %vm224_vm8, %v3325_v9  ;;  %v879_v18 = vadd.f32 %v3832_v11, %v3809_v58  ;;  %s3274_s22 = scalar_lea.hbm %s3273_s9, 16  ;;  %p3279_p0 = scmp.lt.s32.totalorder %s3273_s9, %s4071_s5 }
 0x18e   : > { %v758_v51 = vadd.f32 1.0, %v757_v44  ;;  %v733_v53 = vmul.f32 %v732_v49, %v708_v43  ;;  %v1126_v19 = vadd.f32 %v1120_v34, %v1075_v13  ;;  %230 = vst.msk [vmem:[#allocation2 + $0x28] sm:$0x1] %vm229_vm10, %v3325_v9  ;;  %p3275_p11 = scmp.ne.s32.totalorder %s3273_s9, %s3274_s22  ;;  %p3280_p1 = scmp.lt.s32.totalorder %s3278_s26, %s3274_s22 }
 0x18f   : > { %231 = vst.msk [vmem:[#allocation2 + $0x30] sm:$0x1] %vm229_vm10, %v3325_v9  ;;  %v927_v58 = vadd.f32 %v3834_v55, %v879_v18 }
 0x190   : > { %3108 = vmatmul.msk.f32.gmra.mxu1 %vm265_vm0, %v3718_v24  ;;  %3244 = vrcp.f32 %v758_v51  ;;  %v745_v24 = vadd.f32 0.18741608, %v744_v45  ;;  %v2979_v61 = vclamps-f32 %v733_v53, 1.0  ;;  %vm764_vm6 = vweird.f32 %v758_v51  ;;  %235 = vst.msk [vmem:[#allocation2 + $0x78] sm:$0x1] %vm229_vm10, %v3325_v9  ;;  %p3276_p12 = pnand %p3275_p11, %p3396_p5  ;;  %p3281_p2 = por %p3280_p1, %p3279_p0 }
 0x191   : > { %v1886_v46 = vpop.permute.xlu0 %1885  ;;  %v3841_v5 = vpop.f32.mrf.mxu1  ;;  %v768_v16 = vand.u32 2147483647, %v758_v51  ;;  %v770_v39 = vand.u32 2147483648, %v758_v51  ;;  %232 = vst.msk [vmem:[#allocation2 + $0x38] sm:$0x1] %vm229_vm10, %v3325_v9  ;;  %v978_v49 = vadd.f32 %v3838_v63, %v927_v58 }
 0x192   : > { %3099 = vmatmul.msk.f32.gmra.mxu3 %vm265_vm0, %v1886_v46  ;;  %v776_v36 = vadd.f32 1.0, %v2979_v61  ;;  %v746_v22 = vmul.f32 %v745_v24, %v3802_v4  ;;  %233 = vst.msk [vmem:[#allocation2 + $0x40] sm:$0x1] %vm229_vm10, %v3325_v9  ;;  %p3277_p13 = pneg %p3276_p12 }
 0x193   : > { %v771_v28 = vor.u32 1.1754944e-38, %v770_v39  ;;  %vm769_vm11 = vcmp.eq.f32.partialorder %v768_v16, 8.507059e+37  ;;  %236 = vst.msk [vmem:[#allocation2 + $0x80] sm:$0x1] %vm229_vm10, %v3325_v9  ;;  %v1029_v56 = vadd.f32 %v3841_v5, %v978_v49 }
 0x194   : > { %v2022_v54 = vpop.permute.xlu2 %2021  ;;  %v778_v12 = vmul.f32 %v776_v36, %v692_v8  ;;  %v747_v52 = vadd.f32 1.1283791, %v746_v22  ;;  %237 = vst.msk [vmem:[#allocation2 + $0x88] sm:$0x1] %vm229_vm10, %v3325_v9  ;;  %p3282_p3 = pnand %p3281_p2, %p3277_p13 }
 0x195   : > { %3115 = vmatmul.msk.f32.gmra.mxu2 %vm265_vm0, %v2022_v54  ;;  %v1171_v21 = vpop.f32.mrf.mxu0  ;;  %238 = vst.msk [vmem:[#allocation2 + $0x90] sm:$0x1] %vm229_vm10, %v3325_v9  ;;  %v1076_v63 = vadd.f32 %v1072_v0, %v1029_v56 }
 0x196   : > { %v3245_v10 = vpop.eup %3244  ;;  %v782_v14 = vrot.slane %v778_v12, 4  ;;  %787 = vst.msk [vmem:[#allocation2] sm:$0xf] %vm786_vm5, %v778_v12  ;;  %v1177_v23 = vadd.f32 %v1171_v21, %v1126_v19  ;;  %v748_v31 = vmul.f32 %v747_v52, %v3797_v60  ;;  %v2268_v12 = vld.sshfl [vmem:[#allocation1] sm:$0xff pattern:$0x75316420] }
 0x197   : > { %v760_v62 = vmul.f32 %v3245_v10, %v758_v51  ;;  %vm765_vm7 = vweird.f32 %v3245_v10  ;;  %239 = vst.msk [vmem:[#allocation2 + $0x98] sm:$0x1] %vm229_vm10, %v3325_v9 }
 0x198   : > { %788 = vst.msk [vmem:[#allocation2 + $0x8] sm:$0xf] %vm786_vm5, %v782_v14  ;;  %vm3848_vm9 = vmor %vm764_vm6, %vm765_vm7 }
 0x199   : > { %v1924_v41 = vpop.permute.xlu0 %1923  ;;  %v761_v4 = vsub.f32 1.0, %v760_v62  ;;  %v1218_v30 = vpop.f32.mrf.mxu1  ;;  %2265 = vst [vmem:[#allocation1 + $0x10] ss:$2 sm:$0xff] %v3146_v3 }
 0x19a   : > { %3100 = vmatmul.msk.f32.vlgmr.msrb.gmra.mxu0 %vm265_vm0, %v1924_v41  ;;  %v1224_v35 = vadd.f32 %v1218_v30, %v1177_v23  ;;  %v1123_v41 = vpop.f32.mrf.mxu3 }
 0x19b   : > { %v762_v57 = vmul.f32 %v3245_v10, %v761_v4  ;;  %v1127_v29 = vadd.f32 %v1123_v41, %v1076_v63 }
 0x19c   : > { %v3859_v33 = vadd.f32 %v3776_v1, %v1224_v35 }
 0x19d   : > { %v763_v17 = vadd.f32 %v3245_v10, %v762_v57 }
 0x19e   : > { %v3863_v40 = vmul.f32 0.70710677, %v3859_v33 }
 0x19f   : > { %v767_v32 = vsel %vm3848_vm9, %v3245_v10, %v763_v17  ;;  %v2406_v10 = vld [vmem:[#allocation2 + $0x50] sm:$0xf] }
 0x1a0   : > { %v772_v37 = vsel %vm769_vm11, %v771_v28, %v767_v32  ;;  %v1232_v15 = vmul.f32 %v3863_v40, %v3863_v40  ;;  %2417 = vst [vmem:[#allocation1] ss:$2 sm:$0xff] %v2406_v10  ;;  %v2269_v4 = vld.sshfl [vmem:[#allocation1 + $0x10] sm:$0xff pattern:$0x75316420] }
 0x1a1   : > { %v1926_v26 = vpop.permute.xlu0 %1925  ;;  %v773_v60 = vmul.f32 %v772_v37, %v748_v31  ;;  %v1221_v14 = vpop.f32.mrf.mxu1 }
 0x1a2   : > { %3101 = vmatmul.msk.f32.gmra.mxu0 %vm265_vm0, %v1926_v26  ;;  %v1233_v44 = vmin.f32 %v1232_v15, 16.0 }
 0x1a3   : > { %v2980_v42 = vclamps-f32 %v773_v60, 1.0 }
 0x1a4   : > { %v1234_v45 = vmul.f32 2.1237322e-06, %v1233_v44  ;;  %v1245_v46 = vmul.f32 3.8918573e-05, %v1233_v44 }
 0x1a5   : > { %v777_v43 = vadd.f32 1.0, %v2980_v42 }
 0x1a6   : > { %v1235_v11 = vadd.f32 0.00028619796, %v1234_v45 }
 0x1a7   : > { %v779_v25 = vmul.f32 %v777_v43, %v693_v59 }
 0x1a8   : > { %v1236_v53 = vmul.f32 %v1235_v11, %v1233_v44  ;;  %v1228_v11 = vmul.f32 0.5, %v3859_v33 }
 0x1a9   : > { %v783_v48 = vrot.slane %v779_v25, 4  ;;  %789 = vst.msk [vmem:[#allocation2 + $0x10] sm:$0xf] %vm786_vm5, %v779_v25  ;;  %v1503_v10 = vpop.f32.mrf.mxu1 }
 0x1aa   : > { %3128 = vmatmul.msk.f32.vlgmr.msra.gmra.mxu0 %vm265_vm0, %v3752_v50  ;;  %v1246_v50 = vadd.f32 0.001143296, %v1245_v46  ;;  %v1237_v55 = vadd.f32 0.0036580483, %v1236_v53 }
 0x1ab   : > { %790 = vst.msk [vmem:[#allocation2 + $0x18] sm:$0xf] %vm786_vm5, %v783_v48 }
 0x1ac   : > { %v1247_v54 = vmul.f32 %v1246_v50, %v1233_v44  ;;  %v1238_v8 = vmul.f32 %v1237_v55, %v1233_v44  ;;  %v1406_v55 = vpop.f32.mrf.mxu3 }
 0x1ad   : > { %v2071_v51 = vpop.permute.xlu1 %2070 }
 0x1ae   : > { %3121 = vmatmul.msk.f32.vlgmr.msrb.gmra.mxu3 %vm265_vm0, %v2071_v51  ;;  %v1248_v24 = vadd.f32 0.014752088, %v1247_v54  ;;  %v1239_v7 = vadd.f32 0.05243302, %v1238_v8 }
 0x1b0   : > { %v2220_v20 = vpop.permute.xlu2 %2219  ;;  %v1249_v61 = vmul.f32 %v1248_v24, %v1233_v44  ;;  %v1240_v62 = vmul.f32 %v1239_v7, %v1233_v44 }
 0x1b1   : > { %3142 = vmatmul.msk.f32.vlgmr.msra.gmra.mxu2 %vm265_vm0, %v2220_v20 }
 0x1b2   : > { %3129 = vmatmul.msk.f32.gmra.mxu0 %vm265_vm0, %v3747_v47  ;;  %v1250_v36 = vadd.f32 0.112945676, %v1249_v61  ;;  %v1241_v34 = vadd.f32 0.18741608, %v1240_v62 }
 0x1b4   : > { %v1251_v22 = vmul.f32 %v1250_v36, %v1233_v44  ;;  %v1242_v21 = vmul.f32 %v1241_v34, %v1233_v44  ;;  %v1409_v41 = vpop.f32.mrf.mxu3 }
 0x1b5   : > { %v2073_v2 = vpop.permute.xlu1 %2072 }
 0x1b6   : > { %3122 = vmatmul.msk.f32.gmra.mxu3 %vm265_vm0, %v2073_v2  ;;  %v1252_v38 = vadd.f32 0.4994258, %v1251_v22  ;;  %v1243_v31 = vadd.f32 1.1283791, %v1242_v21 }
 0x1b8   : > { %v1253_v13 = vmul.f32 %v1252_v38, %v1233_v44  ;;  %v2171_v57 = vpop.permute.xlu2 %2170  ;;  %v1244_v18 = vmul.f32 %v1243_v31, %v3863_v40 }
 0x1ba   : > { %v1254_v47 = vadd.f32 1.0, %v1253_v13 }
 0x1bc   : > { %3246 = vrcp.f32 %v1254_v47  ;;  %vm1260_vm12 = vweird.f32 %v1254_v47  ;;  %v1266_v17 = vand.u32 2147483648, %v1254_v47  ;;  %v1264_v35 = vand.u32 2147483647, %v1254_v47  ;;  %v1370_v42 = vpop.f32.mrf.mxu2 }
 0x1bd   : > { %v1407_v7 = vadd.f32 %v1406_v55, %v1370_v42 }
 0x1be   : > { %3149 = vmatmul.msk.f32.vlgmr.msra.gmra.mxu3 %vm265_vm0, %v2268_v12  ;;  %v1174_v5 = vpop.f32.mrf.mxu0  ;;  %v1267_v15 = vor.u32 1.1754944e-38, %v1266_v17  ;;  %vm1265_vm15 = vcmp.eq.f32.partialorder %v1264_v35, 8.507059e+37 }
 0x1bf   : > { %v2169_v16 = vpop.permute.xlu0 %2168  ;;  %v1178_v39 = vadd.f32 %v1174_v5, %v1127_v29 }
 0x1c0   : > { %3135 = vmatmul.msk.f32.vlgmr.msrb.gmra.mxu1 %vm265_vm0, %v2169_v16 }
 0x1c1   : > { %v1225_v52 = vadd.f32 %v1221_v14, %v1178_v39 }
 0x1c2   : > { %v3247_v27 = vpop.eup %3246 }
 0x1c3   : > { %v3893_v19 = vadd.f32 %v3776_v1, %v1225_v52  ;;  %v1256_v9 = vmul.f32 %v3247_v27, %v1254_v47  ;;  %vm1261_vm13 = vweird.f32 %v3247_v27 }
 0x1c4   : > { %vm1262_vm14 = vmor %vm1260_vm12, %vm1261_vm13  ;;  %v1373_v54 = vpop.f32.mrf.mxu2  ;;  %vm2426_vm13 = vcmask 130048  }
 0x1c5   : > { %v3896_v23 = vmul.f32 0.70710677, %v3893_v19  ;;  %v1257_v26 = vsub.f32 1.0, %v1256_v9  ;;  %v1410_v5 = vadd.f32 %v1409_v41, %v1373_v54  ;;  %v1506_v9 = vpop.f32.mrf.mxu1 }
 0x1c6   : > { %v2222_v28 = vpop.permute.xlu1 %2221  ;;  %3150 = vmatmul.msk.f32.gmra.mxu3 %vm265_vm0, %v2269_v4 }
 0x1c7   : > { %3143 = vmatmul.msk.f32.gmra.mxu2 %vm265_vm0, %v2222_v28  ;;  %v1272_v30 = vmul.f32 %v3896_v23, %v3896_v23  ;;  %v1258_v37 = vmul.f32 %v3247_v27, %v1257_v26 }
 0x1c8   : > { %3136 = vmatmul.msk.f32.gmra.mxu1 %vm265_vm0, %v2171_v57  ;;  %v1455_v0 = vpop.f32.mrf.mxu0 }
 0x1c9   : > { %v1273_v32 = vmin.f32 %v1272_v30, 16.0  ;;  %v1259_v43 = vadd.f32 %v3247_v27, %v1258_v37  ;;  %v1461_v12 = vadd.f32 %v1455_v0, %v1407_v7 }
 0x1cb   : > { %v1274_v60 = vmul.f32 2.1237322e-06, %v1273_v32  ;;  %v1285_v59 = vmul.f32 3.8918573e-05, %v1273_v32  ;;  %v1263_v25 = vsel %vm1262_vm14, %v3247_v27, %v1259_v43  ;;  %v1509_v47 = vadd.f32 %v1503_v10, %v1461_v12 }
 0x1cc   : > { %v1268_v45 = vsel %vm1265_vm15, %v1267_v15, %v1263_v25  ;;  %v1554_v22 = vpop.f32.mrf.mxu2 }
 0x1cd   : > { %v1275_v3 = vadd.f32 0.00028619796, %v1274_v60  ;;  %v1286_v44 = vadd.f32 0.001143296, %v1285_v59  ;;  %v1269_v46 = vmul.f32 %v1268_v45, %v1244_v18  ;;  %v1560_v57 = vadd.f32 %v1554_v22, %v1509_v47 }
 0x1cf   : > { %v1276_v58 = vmul.f32 %v1275_v3, %v1273_v32  ;;  %v1287_v6 = vmul.f32 %v1286_v44, %v1273_v32  ;;  %v3031_v50 = vclamps-f32 %v1269_v46, 1.0  ;;  %v1229_v44 = vmul.f32 0.5, %v3893_v19 }
 0x1d0   : > { %v1458_v29 = vpop.f32.mrf.mxu0 }
 0x1d1   : > { %v1277_v48 = vadd.f32 0.0036580483, %v1276_v58  ;;  %v1288_v51 = vadd.f32 0.014752088, %v1287_v6  ;;  %v1312_v53 = vadd.f32 1.0, %v3031_v50  ;;  %v1462_v27 = vadd.f32 %v1458_v29, %v1410_v5 }
 0x1d3   : > { %v1289_v49 = vmul.f32 %v1288_v51, %v1273_v32  ;;  %v1278_v20 = vmul.f32 %v1277_v48, %v1273_v32  ;;  %v1314_v24 = vmul.f32 %v1312_v53, %v1228_v11  ;;  %v1510_v35 = vadd.f32 %v1506_v9, %v1462_v27 }
 0x1d4   : > { %v1557_v4 = vpop.f32.mrf.mxu2 }
 0x1d5   : > { %v1290_v40 = vadd.f32 0.112945676, %v1289_v49  ;;  %v1279_v8 = vadd.f32 0.05243302, %v1278_v20  ;;  %v1318_v61 = vrot.slane %v1314_v24, 4  ;;  %v1561_v42 = vadd.f32 %v1557_v4, %v1510_v35 }
 0x1d6   : > { %1322 = vst.msk [vmem:[#allocation2 + $0x29] sm:$0xf] %vm786_vm5, %v1314_v24 }
 0x1d7   : > { %v1291_v56 = vmul.f32 %v1290_v40, %v1273_v32  ;;  %1323 = vst.msk [vmem:[#allocation2 + $0x31] sm:$0xf] %vm786_vm5, %v1318_v61  ;;  %v1280_v36 = vmul.f32 %v1279_v8, %v1273_v32 }
 0x1d8   : > { %v1653_v26 = vpop.f32.mrf.mxu0 }
 0x1d9   : > { %v1292_v2 = vadd.f32 0.4994258, %v1291_v56  ;;  %v1281_v38 = vadd.f32 0.18741608, %v1280_v36 }
 0x1db   : > { %v1293_v63 = vmul.f32 %v1292_v2, %v1273_v32  ;;  %v1282_v62 = vmul.f32 %v1281_v38, %v1273_v32 }
 0x1dd   : > { %v1294_v33 = vadd.f32 1.0, %v1293_v63  ;;  %v1283_v16 = vadd.f32 1.1283791, %v1282_v62 }
 0x1df   : > { %3248 = vrcp.f32 %v1294_v33  ;;  %v1306_v39 = vand.u32 2147483648, %v1294_v33  ;;  %vm1300_vm0 = vweird.f32 %v1294_v33  ;;  %v1304_v52 = vand.u32 2147483647, %v1294_v33 }
 0x1e0   : > { %v1284_v31 = vmul.f32 %v1283_v16, %v3896_v23  ;;  %v1656_v46 = vpop.f32.mrf.mxu0 }
 0x1e1   : > { %v1307_v30 = vor.u32 1.1754944e-38, %v1306_v39  ;;  %vm1305_vm3 = vcmp.eq.f32.partialorder %v1304_v52, 8.507059e+37 }
 0x1e5   : > { %v3249_v13 = vpop.eup %3248 }
 0x1e6   : > { %v1296_v14 = vmul.f32 %v3249_v13, %v1294_v33  ;;  %vm1301_vm1 = vweird.f32 %v3249_v13 }
 0x1e7   : > { %vm1302_vm2 = vmor %vm1300_vm0, %vm1301_vm1 }
 0x1e8   : > { %v1297_v34 = vsub.f32 1.0, %v1296_v14 }
 0x1e9   : > { %v1605_v21 = vpop.f32.mrf.mxu3 }
 0x1ea   : > { %v1298_v28 = vmul.f32 %v3249_v13, %v1297_v34  ;;  %v1611_v32 = vadd.f32 %v1605_v21, %v1560_v57 }
 0x1ec   : > { %v1299_v17 = vadd.f32 %v3249_v13, %v1298_v28  ;;  %v1659_v18 = vadd.f32 %v1653_v26, %v1611_v32  ;;  %v1755_v43 = vpop.f32.mrf.mxu2 }
 0x1ee   : > { %v1303_v37 = vsel %vm1302_vm2, %v3249_v13, %v1299_v17 }
 0x1ef   : > { %v1308_v60 = vsel %vm1305_vm3, %v1307_v30, %v1303_v37 }
 0x1f0   : > { %v1309_v59 = vmul.f32 %v1308_v60, %v1284_v31 }
 0x1f1   : > { %v1608_v3 = vpop.f32.mrf.mxu3 }
 0x1f2   : > { %v3032_v15 = vclamps-f32 %v1309_v59, 1.0  ;;  %v1612_v45 = vadd.f32 %v1608_v3, %v1561_v42 }
 0x1f4   : > { %v1313_v25 = vadd.f32 1.0, %v3032_v15  ;;  %v1660_v50 = vadd.f32 %v1656_v46, %v1612_v45  ;;  %v1758_v20 = vpop.f32.mrf.mxu2  ;;  %v3154_v45 = vld [vmem:[%s4069_s3 + $0x18] sm:$0xff] }
 0x1f5   : > { %v1704_v58 = vpop.f32.mrf.mxu1  ;;  %2445 = vmatpush.msrb.mxu0 %v3154_v45 }
 0x1f6   : > { %v1710_v6 = vadd.f32 %v1704_v58, %v1659_v18  ;;  %v1315_v23 = vmul.f32 %v1313_v25, %v1229_v44 }
 0x1f8   : > { %v1761_v48 = vadd.f32 %v1755_v43, %v1710_v6  ;;  %v1319_v51 = vrot.slane %v1315_v23, 4  ;;  %1324 = vst.msk [vmem:[#allocation2 + $0x39] sm:$0xf] %vm786_vm5, %v1315_v23 }
 0x1fa   : > { %v3911_v11 = vadd.f32 %v3776_v1, %v1761_v48  ;;  %1325 = vst.msk [vmem:[#allocation2 + $0x41] sm:$0xf] %vm786_vm5, %v1319_v51 }
 0x1fc   : > { %v3915_v49 = vmul.f32 0.70710677, %v3911_v11 }
 0x1fd   : > { %v1707_v19 = vpop.f32.mrf.mxu1 }
 0x1fe   : > { %v1769_v53 = vmul.f32 %v3915_v49, %v3915_v49  ;;  %v1711_v40 = vadd.f32 %v1707_v19, %v1660_v50 }
 0x200   : > { %v1770_v54 = vmin.f32 %v1769_v53, 16.0  ;;  %v1762_v55 = vadd.f32 %v1758_v20, %v1711_v40  ;;  %v3153_v20 = vld [vmem:[%s4069_s3 + $0x10] sm:$0xff] }
 0x201   : > { %2446 = vmatpush.msrb.mxu0 %v3153_v20 }
 0x202   : > { %v1771_v24 = vmul.f32 2.1237322e-06, %v1770_v54  ;;  %v3920_v56 = vadd.f32 %v3776_v1, %v1762_v55  ;;  %v1782_v8 = vmul.f32 3.8918573e-05, %v1770_v54 }
 0x204   : > { %v1772_v61 = vadd.f32 0.00028619796, %v1771_v24  ;;  %v3923_v0 = vmul.f32 0.70710677, %v3920_v56  ;;  %v1783_v2 = vadd.f32 0.001143296, %v1782_v8 }
 0x206   : > { %v1773_v36 = vmul.f32 %v1772_v61, %v1770_v54  ;;  %v1809_v63 = vmul.f32 %v3923_v0, %v3923_v0  ;;  %v1784_v33 = vmul.f32 %v1783_v2, %v1770_v54 }
 0x208   : > { %v1810_v7 = vmin.f32 %v1809_v63, 16.0  ;;  %v1785_v22 = vadd.f32 0.014752088, %v1784_v33  ;;  %v1774_v41 = vadd.f32 0.0036580483, %v1773_v36 }
 0x20a   : > { %v1811_v38 = vmul.f32 2.1237322e-06, %v1810_v7  ;;  %v1822_v10 = vmul.f32 3.8918573e-05, %v1810_v7  ;;  %v1786_v12 = vmul.f32 %v1785_v22, %v1770_v54  ;;  %v1775_v47 = vmul.f32 %v1774_v41, %v1770_v54  ;;  %v1993_v22 = vpop.f32.mrf.mxu1 }
 0x20c   : > { %v1812_v29 = vadd.f32 0.00028619796, %v1811_v38  ;;  %v1823_v62 = vadd.f32 0.001143296, %v1822_v10  ;;  %v1787_v13 = vadd.f32 0.112945676, %v1786_v12 }
 0x20d   : > { %v1776_v4 = vadd.f32 0.05243302, %v1775_v47  ;;  %v1908_v42 = vpop.f32.mrf.mxu3  ;;  %v1765_v38 = vmul.f32 0.5, %v3911_v11 }
 0x20e   : > { %v1813_v5 = vmul.f32 %v1812_v29, %v1810_v7  ;;  %v1824_v14 = vmul.f32 %v1823_v62, %v1810_v7  ;;  %v1788_v16 = vmul.f32 %v1787_v13, %v1770_v54 }
 0x20f   : > { %v1777_v30 = vmul.f32 %v1776_v4, %v1770_v54 }
 0x210   : > { %v1825_v39 = vadd.f32 0.014752088, %v1824_v14  ;;  %v1789_v34 = vadd.f32 0.4994258, %v1788_v16  ;;  %v1814_v52 = vadd.f32 0.0036580483, %v1813_v5  ;;  %v2044_v41 = vpop.f32.mrf.mxu2 }
 0x211   : > { %v1778_v35 = vadd.f32 0.18741608, %v1777_v30 }
 0x212   : > { %v1826_v21 = vmul.f32 %v1825_v39, %v1810_v7  ;;  %v1790_v57 = vmul.f32 %v1789_v34, %v1770_v54  ;;  %v1815_v9 = vmul.f32 %v1814_v52, %v1810_v7  ;;  %v1766_v52 = vmul.f32 0.5, %v3920_v56  ;;  %v2400_v56 = vld [vmem:[#allocation2 + $0x78] sm:$0xf] }
 0x213   : > { %v1779_v18 = vmul.f32 %v1778_v35, %v1770_v54 }
 0x214   : > { %v1827_v27 = vadd.f32 0.112945676, %v1826_v21  ;;  %v1791_v28 = vadd.f32 1.0, %v1790_v57  ;;  %v1816_v26 = vadd.f32 0.05243302, %v1815_v9 }
 0x215   : > { %v1780_v25 = vadd.f32 1.1283791, %v1779_v18  ;;  %v1911_v24 = vpop.f32.mrf.mxu3 }
 0x216   : > { %v1828_v31 = vmul.f32 %v1827_v27, %v1810_v7  ;;  %3250 = vrcp.f32 %v1791_v28  ;;  %v1817_v59 = vmul.f32 %v1816_v26, %v1810_v7  ;;  %v1803_v3 = vand.u32 2147483648, %v1791_v28 }
 0x217   : > { %v1801_v6 = vand.u32 2147483647, %v1791_v28  ;;  %vm1797_vm6 = vweird.f32 %v1791_v28  ;;  %v1948_v19 = vpop.f32.mrf.mxu0  ;;  %v1781_v53 = vmul.f32 %v1780_v25, %v3915_v49 }
 0x218   : > { %v1829_v17 = vadd.f32 0.4994258, %v1828_v31  ;;  %v1818_v44 = vadd.f32 0.18741608, %v1817_v59  ;;  %v1804_v48 = vor.u32 1.1754944e-38, %v1803_v3  ;;  %v1949_v47 = vadd.f32 %v1948_v19, %v1908_v42  ;;  %v2047_v57 = vpop.f32.mrf.mxu2 }
 0x219   : > { %vm1802_vm8 = vcmp.eq.f32.partialorder %v1801_v6, 8.507059e+37 }
 0x21a   : > { %v1830_v32 = vmul.f32 %v1829_v17, %v1810_v7  ;;  %v1819_v51 = vmul.f32 %v1818_v44, %v1810_v7  ;;  %v1999_v11 = vadd.f32 %v1993_v22, %v1949_v47 }
 0x21c   : > { %v1831_v37 = vadd.f32 1.0, %v1830_v32  ;;  %v3251_v60 = vpop.eup %3250  ;;  %v1820_v2 = vadd.f32 1.1283791, %v1819_v51  ;;  %v2050_v27 = vadd.f32 %v2044_v41, %v1999_v11 }
 0x21d   : > { %v1793_v15 = vmul.f32 %v3251_v60, %v1791_v28  ;;  %vm1798_vm4 = vweird.f32 %v3251_v60 }
 0x21e   : > { %3252 = vrcp.f32 %v1831_v37  ;;  %vm1799_vm7 = vmor %vm1797_vm6, %vm1798_vm4  ;;  %v1843_v61 = vand.u32 2147483648, %v1831_v37  ;;  %v1841_v63 = vand.u32 2147483647, %v1831_v37  ;;  %vm1837_vm10 = vweird.f32 %v1831_v37 }
 0x21f   : > { %v1794_v43 = vsub.f32 1.0, %v1793_v15  ;;  %v1821_v12 = vmul.f32 %v1820_v2, %v3923_v0  ;;  %v1951_v14 = vpop.f32.mrf.mxu0  ;;  %v1996_v0 = vpop.f32.mrf.mxu1 }
 0x220   : > { %v1844_v10 = vor.u32 1.1754944e-38, %v1843_v61  ;;  %vm1842_vm12 = vcmp.eq.f32.partialorder %v1841_v63, 8.507059e+37  ;;  %v1952_v17 = vadd.f32 %v1951_v14, %v1911_v24 }
 0x221   : > { %v1795_v58 = vmul.f32 %v3251_v60, %v1794_v43 }
 0x223   : > { %v1796_v46 = vadd.f32 %v3251_v60, %v1795_v58 }
 0x224   : > { %v3253_v23 = vpop.eup %3252 }
 0x225   : > { %v1833_v50 = vmul.f32 %v3253_v23, %v1831_v37  ;;  %v1800_v40 = vsel %vm1799_vm7, %v3251_v60, %v1796_v46  ;;  %vm1838_vm9 = vweird.f32 %v3253_v23  ;;  %v2000_v37 = vadd.f32 %v1996_v0, %v1952_v17 }
 0x226   : > { %v1805_v54 = vsel %vm1802_vm8, %v1804_v48, %v1800_v40  ;;  %vm1839_vm11 = vmor %vm1837_vm10, %vm1838_vm9 }
 0x227   : > { %v1834_v55 = vsub.f32 1.0, %v1833_v50  ;;  %v1806_v8 = vmul.f32 %v1805_v54, %v1781_v53  ;;  %v2142_v26 = vpop.f32.mrf.mxu0  ;;  %v2051_v3 = vadd.f32 %v2047_v57, %v2000_v37  ;;  %v2405_v37 = vld [vmem:[%s4069_s3 + $0x8] sm:$0xff] }
 0x228   : > { %2485 = vmatpush.msra.mxu1 %v2405_v37 }
 0x229   : > { %v1835_v36 = vmul.f32 %v3253_v23, %v1834_v55  ;;  %v3091_v33 = vclamps-f32 %v1806_v8, 1.0 }
 0x22b   : > { %v1836_v7 = vadd.f32 %v3253_v23, %v1835_v36  ;;  %v1849_v49 = vadd.f32 1.0, %v3091_v33 }
 0x22d   : > { %v1840_v29 = vsel %vm1839_vm11, %v3253_v23, %v1836_v7  ;;  %v1851_v62 = vmul.f32 %v1849_v49, %v1765_v38 }
 0x22e   : > { %v1845_v13 = vsel %vm1842_vm12, %v1844_v10, %v1840_v29 }
 0x22f   : > { %v1846_v5 = vmul.f32 %v1845_v13, %v1821_v12  ;;  %v1855_v16 = vrot.slane %v1851_v62, 4  ;;  %1860 = vst.msk [vmem:[#allocation2 + $0x58] sm:$0xf] %vm786_vm5, %v1851_v62  ;;  %v2145_v6 = vpop.f32.mrf.mxu0 }
 0x231   : > { %v3092_v39 = vclamps-f32 %v1846_v5, 1.0  ;;  %v2095_v34 = vpop.f32.mrf.mxu3  ;;  %1861 = vst.msk [vmem:[#allocation2 + $0x60] sm:$0xf] %vm786_vm5, %v1855_v16 }
 0x232   : > { %v2101_v30 = vadd.f32 %v2095_v34, %v2050_v27 }
 0x233   : > { %v1850_v4 = vadd.f32 1.0, %v3092_v39 }
 0x234   : > { %v2148_v32 = vadd.f32 %v2142_v26, %v2101_v30  ;;  %v2244_v59 = vpop.f32.mrf.mxu2 }
 0x235   : > { %v1852_v21 = vmul.f32 %v1850_v4, %v1766_v52 }
 0x236   : > { %v2407_v28 = vld [vmem:[#allocation2 + $0x58] sm:$0xf] }
 0x237   : > { %v1856_v9 = vrot.slane %v1852_v21, 4  ;;  %2419 = vst [vmem:[#allocation1 + $0x1] ss:$2 sm:$0xff] %v2407_v28 }
 0x238   : > { %v2408_v31 = vld [vmem:[#allocation2 + $0x60] sm:$0xf]  ;;  %1862 = vst.msk [vmem:[#allocation2 + $0x68] sm:$0xf] %vm786_vm5, %v1852_v21 }
 0x239   : > { %v2098_v35 = vpop.f32.mrf.mxu3  ;;  %2421 = vst [vmem:[#allocation1 + $0x10] ss:$2 sm:$0xff] %v2408_v31 }
 0x23a   : > { %1863 = vst.msk [vmem:[#allocation2 + $0x70] sm:$0xf] %vm786_vm5, %v1856_v9  ;;  %v2102_v58 = vadd.f32 %v2098_v35, %v2051_v3 }
 0x23c   : > { %v2149_v48 = vadd.f32 %v2145_v6, %v2102_v58 }
 0x23d   : > { %v2193_v60 = vpop.f32.mrf.mxu1 }
 0x23e   : > { %v2199_v42 = vadd.f32 %v2193_v60, %v2148_v32  ;;  %v2424_v18 = vld.sshfl [vmem:[#allocation1] sm:$0xff pattern:$0x75316420] }
 0x23f   : > { %v2409_v15 = vld [vmem:[#allocation2 + $0x68] sm:$0xf]  ;;  %3155 = vmatmul.msk.f32.vlgmr.msrb.gmra.mxu0 %vm2426_vm13, %v2424_v18  ;;  %2458 = vst [vmem:[#allocation1] ss:$2 sm:$0xff] %v2400_v56 }
 0x240   : > { %v2250_v43 = vadd.f32 %v2244_v59, %v2199_v42  ;;  %2423 = vst [vmem:[#allocation1 + $0x11] ss:$2 sm:$0xff] %v2409_v15 }
 0x241   : > { %v2291_v44 = vpop.f32.mrf.mxu3 }
 0x242   : > { %v2297_v25 = vadd.f32 %v2291_v44, %v2250_v43  ;;  %v2404_v43 = vld [vmem:[%s4069_s3] sm:$0xff] }
 0x243   : > { %2486 = vmatpush.msra.mxu1 %v2404_v43  ;;  %v2546_v43 = vld [vmem:[#allocation2 + $0x40] sm:$0xf] }
 0x244   : > { %v3943_v45 = vadd.f32 %v3776_v1, %v2297_v25 }
 0x245   : > { %v2196_v46 = vpop.f32.mrf.mxu1 }
 0x246   : > { %v3946_v23 = vmul.f32 0.70710677, %v3943_v45  ;;  %v2200_v19 = vadd.f32 %v2196_v46, %v2149_v48  ;;  %v3160_v46 = vld [vmem:[%s4069_s3 + $0x28] sm:$0xff]  ;;  %v3159_v48 = vld [vmem:[%s4069_s3 + $0x20] sm:$0xff] }
 0x247   : > { %v2425_v50 = vld.sshfl [vmem:[#allocation1 + $0x10] sm:$0xff pattern:$0x75316420]  ;;  %2532 = vmatpush.msrb.mxu2 %v3160_v46 }
 0x248   : > { %v2305_v51 = vmul.f32 %v3946_v23, %v3946_v23  ;;  %3156 = vmatmul.msk.f32.gmra.mxu0 %vm2426_vm13, %v2425_v50 }
 0x249   : > { %v2294_v40 = vpop.f32.mrf.mxu3  ;;  %2533 = vmatpush.msrb.mxu2 %v3159_v48  ;;  %v2595_v48 = vld [vmem:[#allocation2 + $0x18] sm:$0xf] }
 0x24a   : > { %v2306_v20 = vmin.f32 %v2305_v51, 16.0  ;;  %v2247_v53 = vpop.f32.mrf.mxu2 }
 0x24b   : > { %v2251_v54 = vadd.f32 %v2247_v53, %v2200_v19 }
 0x24c   : > { %v2307_v55 = vmul.f32 2.1237322e-06, %v2306_v20  ;;  %v2318_v24 = vmul.f32 3.8918573e-05, %v2306_v20 }
 0x24d   : > { %v2298_v8 = vadd.f32 %v2294_v40, %v2251_v54 }
 0x24e   : > { %v2308_v61 = vadd.f32 0.00028619796, %v2307_v55  ;;  %v2319_v2 = vadd.f32 0.001143296, %v2318_v24 }
 0x24f   : > { %v3952_v36 = vadd.f32 %v3776_v1, %v2298_v8  ;;  %v2301_v8 = vmul.f32 0.5, %v3943_v45 }
 0x250   : > { %v2309_v63 = vmul.f32 %v2308_v61, %v2306_v20  ;;  %v2320_v33 = vmul.f32 %v2319_v2, %v2306_v20 }
 0x251   : > { %v3955_v7 = vmul.f32 0.70710677, %v3952_v36 }
 0x252   : > { %v2310_v22 = vadd.f32 0.0036580483, %v2309_v63  ;;  %v2321_v41 = vadd.f32 0.014752088, %v2320_v33 }
 0x253   : > { %v2345_v38 = vmul.f32 %v3955_v7, %v3955_v7 }
 0x254   : > { %v2322_v49 = vmul.f32 %v2321_v41, %v2306_v20  ;;  %v2311_v12 = vmul.f32 %v2310_v22, %v2306_v20  ;;  %v3163_v41 = vld [vmem:[%s4069_s3 + $0x30] sm:$0xff] }
 0x255   : > { %v2346_v10 = vmin.f32 %v2345_v38, 16.0 }
 0x256   : > { %v2323_v29 = vadd.f32 0.112945676, %v2322_v49  ;;  %v2312_v14 = vadd.f32 0.05243302, %v2311_v12 }
 0x257   : > { %v2347_v62 = vmul.f32 2.1237322e-06, %v2346_v10  ;;  %v2358_v13 = vmul.f32 3.8918573e-05, %v2346_v10 }
 0x258   : > { %v2324_v47 = vmul.f32 %v2323_v29, %v2306_v20  ;;  %v2313_v4 = vmul.f32 %v2312_v14, %v2306_v20 }
 0x259   : > { %v2348_v5 = vadd.f32 0.00028619796, %v2347_v62  ;;  %v2359_v1 = vadd.f32 0.001143296, %v2358_v13 }
 0x25a   : > { %v2325_v16 = vadd.f32 0.4994258, %v2324_v47  ;;  %v2314_v28 = vadd.f32 0.18741608, %v2313_v4 }
 0x25b   : > { %v2349_v39 = vmul.f32 %v2348_v5, %v2346_v10  ;;  %v2360_v34 = vmul.f32 %v2359_v1, %v2346_v10  ;;  %v3168_v5 = vld [vmem:[%s4069_s3 + $0x48] sm:$0xff]  ;;  %v3167_v1 = vld [vmem:[%s4069_s3 + $0x40] sm:$0xff] }
 0x25c   : > { %v2326_v11 = vmul.f32 %v2325_v16, %v2306_v20  ;;  %v2315_v26 = vmul.f32 %v2314_v28, %v2306_v20  ;;  %2630 = vmatpush.msra.mxu0 %v3168_v5  ;;  %v2543_v28 = vld [vmem:[#allocation2 + $0x28] sm:$0xf] }
 0x25d   : > { %v2361_v52 = vadd.f32 0.014752088, %v2360_v34  ;;  %v2350_v0 = vadd.f32 0.0036580483, %v2349_v39 }
 0x25e   : > { %v2327_v21 = vadd.f32 1.0, %v2326_v11  ;;  %v2316_v42 = vadd.f32 1.1283791, %v2315_v26  ;;  %2631 = vmatpush.msra.mxu0 %v3167_v1 }
 0x25f   : > { %v2362_v57 = vmul.f32 %v2361_v52, %v2346_v10  ;;  %v2351_v9 = vmul.f32 %v2350_v0, %v2346_v10  ;;  %v2494_v52 = vld [vmem:[#allocation2 + $0x79] sm:$0xf] }
 0x260   : > { %3254 = vrcp.f32 %v2327_v21  ;;  %v2339_v18 = vand.u32 2147483648, %v2327_v21  ;;  %v2337_v44 = vand.u32 2147483647, %v2327_v21  ;;  %vm2333_vm15 = vweird.f32 %v2327_v21 }
 0x261   : > { %v2363_v27 = vadd.f32 0.112945676, %v2362_v57  ;;  %v2352_v35 = vadd.f32 0.05243302, %v2351_v9  ;;  %v2317_v51 = vmul.f32 %v2316_v42, %v3946_v23  ;;  %v3164_v23 = vld [vmem:[%s4069_s3 + $0x38] sm:$0xff] }
 0x262   : > { %v2340_v58 = vor.u32 1.1754944e-38, %v2339_v18  ;;  %vm2338_vm1 = vcmp.eq.f32.partialorder %v2337_v44, 8.507059e+37  ;;  %2581 = vmatpush.msrb.mxu3 %v3164_v23  ;;  %v2593_v42 = vld [vmem:[#allocation2 + $0x8] sm:$0xf]  ;;  %v2545_v18 = vld [vmem:[#allocation2 + $0x38] sm:$0xf] }
 0x263   : > { %v2364_v30 = vmul.f32 %v2363_v27, %v2346_v10  ;;  %v2353_v15 = vmul.f32 %v2352_v35, %v2346_v10  ;;  %v3176_v27 = vld [vmem:[%s4069_s3 + $0x68] sm:$0xff]  ;;  %v2741_v23 = vld [vmem:[#allocation2 + $0x68] sm:$0xf] }
 0x264   : > { %2582 = vmatpush.msrb.mxu3 %v3163_v41  ;;  %2728 = vmatpush.msra.mxu2 %v3176_v27 }
 0x265   : > { %v2365_v31 = vadd.f32 0.4994258, %v2364_v30  ;;  %v2354_v6 = vadd.f32 0.18741608, %v2353_v15  ;;  %v3180_v30 = vld [vmem:[%s4069_s3 + $0x78] sm:$0xff] }
 0x266   : > { %v3255_v17 = vpop.eup %3254  ;;  %2777 = vmatpush.msra.mxu3 %v3180_v30 }
 0x267   : > { %v2329_v32 = vmul.f32 %v3255_v17, %v2327_v21  ;;  %v2366_v56 = vmul.f32 %v2365_v31, %v2346_v10  ;;  %vm2334_vm14 = vweird.f32 %v3255_v17  ;;  %v2355_v40 = vmul.f32 %v2354_v6, %v2346_v10  ;;  %v3172_v21 = vld [vmem:[%s4069_s3 + $0x58] sm:$0xff]  ;;  %v3175_v31 = vld [vmem:[%s4069_s3 + $0x60] sm:$0xff] }
 0x268   : > { %vm2335_vm0 = vmor %vm2333_vm15, %vm2334_vm14  ;;  %2679 = vmatpush.msrb.mxu1 %v3172_v21  ;;  %2729 = vmatpush.msra.mxu2 %v3175_v31  ;;  %v2594_v6 = vld [vmem:[#allocation2 + $0x10] sm:$0xf] }
 0x269   : > { %v2330_v60 = vsub.f32 1.0, %v2329_v32  ;;  %v2367_v59 = vadd.f32 1.0, %v2366_v56  ;;  %v2356_v63 = vadd.f32 1.1283791, %v2355_v40  ;;  %v2592_v56 = vld [vmem:[#allocation2] sm:$0xf] }
 0x26a   : > { %v2644_v40 = vld [vmem:[#allocation2 + $0x41] sm:$0xf] }
 0x26b   : > { %v2331_v3 = vmul.f32 %v3255_v17, %v2330_v60  ;;  %3256 = vrcp.f32 %v2367_v59  ;;  %v2379_v2 = vand.u32 2147483648, %v2367_v59  ;;  %v2377_v22 = vand.u32 2147483647, %v2367_v59  ;;  %v3179_v60 = vld [vmem:[%s4069_s3 + $0x70] sm:$0xff] }
 0x26c   : > { %vm2373_vm3 = vweird.f32 %v2367_v59  ;;  %v2357_v12 = vmul.f32 %v2356_v63, %v3955_v7  ;;  %v2302_v7 = vmul.f32 0.5, %v3952_v36  ;;  %v3171_v36 = vld [vmem:[%s4069_s3 + $0x50] sm:$0xff]  ;;  %2778 = vmatpush.msra.mxu3 %v3179_v60 }
 0x26d   : > { %v2332_v25 = vadd.f32 %v3255_v17, %v2331_v3  ;;  %v2380_v45 = vor.u32 1.1754944e-38, %v2379_v2  ;;  %vm2378_vm6 = vcmp.eq.f32.partialorder %v2377_v22, 8.507059e+37  ;;  %2680 = vmatpush.msrb.mxu1 %v3171_v36  ;;  %v2641_v3 = vld [vmem:[#allocation2 + $0x29] sm:$0xf] }
 0x26f   : > { %v2336_v50 = vsel %vm2335_vm0, %v3255_v17, %v2332_v25  ;;  %v2544_v17 = vld [vmem:[#allocation2 + $0x30] sm:$0xf]  ;;  %v3183_v25 = vld [vmem:[%s4069_s3 + $0x80] sm:$0xff] }
 0x270   : > { %v2341_v19 = vsel %vm2338_vm1, %v2340_v58, %v2336_v50  ;;  %v2642_v58 = vld [vmem:[#allocation2 + $0x31] sm:$0xf] }
 0x271   : > { %v3257_v20 = vpop.eup %3256  ;;  %v2342_v53 = vmul.f32 %v2341_v19, %v2317_v51 }
 0x272   : > { %v2369_v54 = vmul.f32 %v3257_v20, %v2367_v59  ;;  %vm2374_vm2 = vweird.f32 %v3257_v20  ;;  %v3184_v59 = vld [vmem:[%s4069_s3 + $0x88] sm:$0xff] }
 0x273   : > { %v3151_v55 = vclamps-f32 %v2342_v53, 1.0  ;;  %vm2375_vm4 = vmor %vm2373_vm3, %vm2374_vm2  ;;  %2826 = vmatpush.msrb.mxu0 %v3184_v59 }
 0x274   : > { %v2370_v24 = vsub.f32 1.0, %v2369_v54  ;;  %v2739_v54 = vld [vmem:[#allocation2 + $0x58] sm:$0xf] }
 0x275   : > { %v2385_v61 = vadd.f32 1.0, %v3151_v55  ;;  %2827 = vmatpush.msrb.mxu0 %v3183_v25 }
 0x276   : > { %v2371_v33 = vmul.f32 %v3257_v20, %v2370_v24  ;;  %v2740_v24 = vld [vmem:[#allocation2 + $0x60] sm:$0xf] }
 0x277   : > { %v2387_v38 = vmul.f32 %v2385_v61, %v2301_v8 }
 0x278   : > { %v2372_v49 = vadd.f32 %v3257_v20, %v2371_v33 }
 0x279   : > { %v2391_v10 = vrot.slane %v2387_v38, 4  ;;  %2396 = vst.msk [vmem:[#allocation2 + $0x81] sm:$0xf] %vm786_vm5, %v2387_v38  ;;  %v2742_v38 = vld [vmem:[#allocation2 + $0x70] sm:$0xf] }
 0x27a   : > { %v2376_v29 = vsel %vm2375_vm4, %v3257_v20, %v2372_v49  ;;  %v2643_v20 = vld [vmem:[#allocation2 + $0x39] sm:$0xf] }
 0x27b   : > { %2397 = vst.msk [vmem:[#allocation2 + $0x89] sm:$0xf] %vm786_vm5, %v2391_v10  ;;  %v2381_v62 = vsel %vm2378_vm6, %v2380_v45, %v2376_v29 }
 0x27c   : > { %v2382_v13 = vmul.f32 %v2381_v62, %v2357_v12 }
 0x27e   : > { %v3152_v47 = vclamps-f32 %v2382_v13, 1.0 }
 0x280   : > { %v2401_v14 = vld [vmem:[#allocation2 + $0x80] sm:$0xf]  ;;  %v2386_v16 = vadd.f32 1.0, %v3152_v47 }
 0x281   : > { %2460 = vst [vmem:[#allocation1 + $0x1] ss:$2 sm:$0xff] %v2401_v14  ;;  %v2495_v0 = vld [vmem:[#allocation2 + $0x81] sm:$0xf] }
 0x282   : > { %v2402_v39 = vld [vmem:[#allocation2 + $0x88] sm:$0xf]  ;;  %v2388_v34 = vmul.f32 %v2386_v16, %v2302_v7  ;;  %v2690_v51 = vld [vmem:[#allocation2 + $0x80] sm:$0xf] }
 0x283   : > { %2462 = vst [vmem:[#allocation1 + $0x10] ss:$2 sm:$0xff] %v2402_v39  ;;  %v2496_v26 = vld [vmem:[#allocation2 + $0x89] sm:$0xf]  ;;  %v2788_v63 = vld [vmem:[#allocation2 + $0x81] sm:$0xf] }
 0x284   : > { %v2392_v11 = vrot.slane %v2388_v34, 4  ;;  %2398 = vst.msk [vmem:[#allocation2 + $0x91] sm:$0xf] %vm786_vm5, %v2388_v34  ;;  %v2691_v19 = vld [vmem:[#allocation2 + $0x88] sm:$0xf] }
 0x285   : > { %v2789_v22 = vld [vmem:[#allocation2 + $0x89] sm:$0xf] }
 0x286   : > { %2399 = vst.msk [vmem:[#allocation2 + $0x99] sm:$0xf] %vm786_vm5, %v2392_v11 }
 0x288   : > { %v2465_v4 = vld.sshfl [vmem:[#allocation1] sm:$0xff pattern:$0x75316420] }
 0x289   : > { %3157 = vmatmul.msk.f32.vlgmr.msra.gmra.mxu1 %vm2426_vm13, %v2465_v4  ;;  %2505 = vst [vmem:[#allocation1] ss:$2 sm:$0xff] %v2494_v52 }
 0x28a   : > { %2507 = vst [vmem:[#allocation1 + $0x1] ss:$2 sm:$0xff] %v2495_v0 }
 0x28b   : > { %v2403_v57 = vld [vmem:[#allocation2 + $0x90] sm:$0xf] }
 0x28c   : > { %2464 = vst [vmem:[#allocation1 + $0x11] ss:$2 sm:$0xff] %v2403_v57  ;;  %v2497_v32 = vld [vmem:[#allocation2 + $0x91] sm:$0xf] }
 0x28d   : > { %v2692_v8 = vld [vmem:[#allocation2 + $0x90] sm:$0xf]  ;;  %v2693_v2 = vld [vmem:[#allocation2 + $0x98] sm:$0xf] }
 0x28e   : > { %v2790_v10 = vld [vmem:[#allocation2 + $0x91] sm:$0xf]  ;;  %v2791_v12 = vld [vmem:[#allocation2 + $0x99] sm:$0xf] }
 0x291   : > { %v2512_v9 = vld.sshfl [vmem:[#allocation1] sm:$0xff pattern:$0x75316420] }
 0x292   : > { %3161 = vmatmul.msk.f32.vlgmr.msrb.gmra.mxu2 %vm2426_vm13, %v2512_v9  ;;  %2554 = vst [vmem:[#allocation1] ss:$2 sm:$0xff] %v2543_v28 }
 0x293   : > { %2556 = vst [vmem:[#allocation1 + $0x1] ss:$2 sm:$0xff] %v2544_v17  ;;  %v2466_v35 = vld.sshfl [vmem:[#allocation1 + $0x10] sm:$0xff pattern:$0x75316420] }
 0x294   : > { %3158 = vmatmul.msk.f32.gmra.mxu1 %vm2426_vm13, %v2466_v35  ;;  %2509 = vst [vmem:[#allocation1 + $0x10] ss:$2 sm:$0xff] %v2496_v26  ;;  %v3241_v17 = vld [vmem:[%s4070_s4] ss:$0 sm:$0xff] }
 0x295   : > { %2511 = vst [vmem:[#allocation1 + $0x11] ss:$2 sm:$0xff] %v2497_v32 }
 0x29a   : > { %v2561_v37 = vld.sshfl [vmem:[#allocation1] sm:$0xff pattern:$0x75316420] }
 0x29b   : > { %3165 = vmatmul.msk.f32.vlgmr.msrb.gmra.mxu3 %vm2426_vm13, %v2561_v37  ;;  %2603 = vst [vmem:[#allocation1] ss:$2 sm:$0xff] %v2592_v56 }
 0x29c   : > { %2605 = vst [vmem:[#allocation1 + $0x1] ss:$2 sm:$0xff] %v2593_v42  ;;  %v2513_v15 = vld.sshfl [vmem:[#allocation1 + $0x10] sm:$0xff pattern:$0x75316420] }
 0x29d   : > { %3162 = vmatmul.msk.f32.gmra.mxu2 %vm2426_vm13, %v2513_v15  ;;  %2558 = vst [vmem:[#allocation1 + $0x10] ss:$2 sm:$0xff] %v2545_v18 }
 0x29e   : > { %2560 = vst [vmem:[#allocation1 + $0x11] ss:$2 sm:$0xff] %v2546_v43 }
 0x2a3   : > { %v2610_v44 = vld.sshfl [vmem:[#allocation1] sm:$0xff pattern:$0x75316420] }
 0x2a4   : > { %3169 = vmatmul.msk.f32.vlgmr.msra.gmra.mxu0 %vm2426_vm13, %v2610_v44  ;;  %2652 = vst [vmem:[#allocation1] ss:$2 sm:$0xff] %v2641_v3 }
 0x2a5   : > { %2654 = vst [vmem:[#allocation1 + $0x1] ss:$2 sm:$0xff] %v2642_v58  ;;  %v2562_v46 = vld.sshfl [vmem:[#allocation1 + $0x10] sm:$0xff pattern:$0x75316420] }
 0x2a6   : > { %3166 = vmatmul.msk.f32.gmra.mxu3 %vm2426_vm13, %v2562_v46  ;;  %2607 = vst [vmem:[#allocation1 + $0x10] ss:$2 sm:$0xff] %v2594_v6 }
 0x2a7   : > { %2609 = vst [vmem:[#allocation1 + $0x11] ss:$2 sm:$0xff] %v2595_v48 }
 0x2ac   : > { %v2659_v50 = vld.sshfl [vmem:[#allocation1] sm:$0xff pattern:$0x75316420] }
 0x2ad   : > { %3173 = vmatmul.msk.f32.vlgmr.msrb.gmra.mxu1 %vm2426_vm13, %v2659_v50  ;;  %2701 = vst [vmem:[#allocation1] ss:$2 sm:$0xff] %v2690_v51 }
 0x2ae   : > { %2703 = vst [vmem:[#allocation1 + $0x1] ss:$2 sm:$0xff] %v2691_v19  ;;  %v2611_v53 = vld.sshfl [vmem:[#allocation1 + $0x10] sm:$0xff pattern:$0x75316420] }
 0x2af   : > { %3170 = vmatmul.msk.f32.gmra.mxu0 %vm2426_vm13, %v2611_v53  ;;  %2656 = vst [vmem:[#allocation1 + $0x10] ss:$2 sm:$0xff] %v2643_v20 }
 0x2b0   : > { %2658 = vst [vmem:[#allocation1 + $0x11] ss:$2 sm:$0xff] %v2644_v40 }
 0x2b5   : > { %v2708_v55 = vld.sshfl [vmem:[#allocation1] sm:$0xff pattern:$0x75316420] }
 0x2b6   : > { %3177 = vmatmul.msk.f32.vlgmr.msra.gmra.mxu2 %vm2426_vm13, %v2708_v55  ;;  %2750 = vst [vmem:[#allocation1] ss:$2 sm:$0xff] %v2739_v54 }
 0x2b7   : > { %2752 = vst [vmem:[#allocation1 + $0x1] ss:$2 sm:$0xff] %v2740_v24  ;;  %v2660_v61 = vld.sshfl [vmem:[#allocation1 + $0x10] sm:$0xff pattern:$0x75316420] }
 0x2b8   : > { %3174 = vmatmul.msk.f32.gmra.mxu1 %vm2426_vm13, %v2660_v61  ;;  %2705 = vst [vmem:[#allocation1 + $0x10] ss:$2 sm:$0xff] %v2692_v8 }
 0x2b9   : > { %2707 = vst [vmem:[#allocation1 + $0x11] ss:$2 sm:$0xff] %v2693_v2 }
 0x2bc   : > { %v2448_v62 = vpop.f32.mrf.mxu0 }
 0x2be   : > { %v2757_v33 = vld.sshfl [vmem:[#allocation1] sm:$0xff pattern:$0x75316420] }
 0x2bf   : > { %3181 = vmatmul.msk.f32.vlgmr.msra.gmra.mxu3 %vm2426_vm13, %v2757_v33  ;;  %2799 = vst [vmem:[#allocation1] ss:$2 sm:$0xff] %v2788_v63 }
 0x2c0   : > { %2801 = vst [vmem:[#allocation1 + $0x1] ss:$2 sm:$0xff] %v2789_v22  ;;  %v2709_v41 = vld.sshfl [vmem:[#allocation1 + $0x10] sm:$0xff pattern:$0x75316420] }
 0x2c1   : > { %3178 = vmatmul.msk.f32.gmra.mxu2 %vm2426_vm13, %v2709_v41  ;;  %2754 = vst [vmem:[#allocation1 + $0x10] ss:$2 sm:$0xff] %v2741_v23 }
 0x2c2   : > { %2756 = vst [vmem:[#allocation1 + $0x11] ss:$2 sm:$0xff] %v2742_v38 }
 0x2c5   : > { %v2451_v47 = vpop.f32.mrf.mxu0 }
 0x2c7   : > { %v2806_v49 = vld.sshfl [vmem:[#allocation1] sm:$0xff pattern:$0x75316420] }
 0x2c8   : > { %3185 = vmatmul.msk.f32.vlgmr.msrb.gmra.mxu0 %vm2426_vm13, %v2806_v49 }
 0x2c9   : > { %v2758_v45 = vld.sshfl [vmem:[#allocation1 + $0x10] sm:$0xff pattern:$0x75316420] }
 0x2ca   : > { %3182 = vmatmul.msk.f32.gmra.mxu3 %vm2426_vm13, %v2758_v45  ;;  %2803 = vst [vmem:[#allocation1 + $0x10] ss:$2 sm:$0xff] %v2790_v10 }
 0x2cb   : > { %2805 = vst [vmem:[#allocation1 + $0x11] ss:$2 sm:$0xff] %v2791_v12 }
 0x2d2   : > { %v2807_v29 = vld.sshfl [vmem:[#allocation1 + $0x10] sm:$0xff pattern:$0x75316420] }
 0x2d3   : > { %3186 = vmatmul.msk.f32.gmra.mxu0 %vm2426_vm13, %v2807_v29 }
 0x306   : > { %v2488_v13 = vpop.f32.mrf.mxu1 }
 0x307   : > { %v2489_v7 = vadd.f32 %v2488_v13, %v2448_v62 }
 0x311   : > { %v2491_v14 = vpop.f32.mrf.mxu1 }
 0x312   : > { %v2492_v27 = vadd.f32 %v2491_v14, %v2451_v47 }
 0x315   : > { %v2535_v5 = vpop.f32.mrf.mxu2 }
 0x316   : > { %v2541_v34 = vadd.f32 %v2535_v5, %v2489_v7 }
 0x31e   : > { %v2584_v1 = vpop.f32.mrf.mxu3 }
 0x31f   : > { %v2590_v11 = vadd.f32 %v2584_v1, %v2541_v34 }
 0x320   : > { %v2538_v39 = vpop.f32.mrf.mxu2 }
 0x321   : > { %v2633_v16 = vpop.f32.mrf.mxu0  ;;  %v2542_v30 = vadd.f32 %v2538_v39, %v2492_v27 }
 0x322   : > { %v2639_v21 = vadd.f32 %v2633_v16, %v2590_v11 }
 0x329   : > { %v2587_v52 = vpop.f32.mrf.mxu3 }
 0x32a   : > { %v2682_v4 = vpop.f32.mrf.mxu1  ;;  %v2591_v26 = vadd.f32 %v2587_v52, %v2542_v30 }
 0x32b   : > { %v2688_v57 = vadd.f32 %v2682_v4, %v2639_v21 }
 0x32c   : > { %v2636_v0 = vpop.f32.mrf.mxu0 }
 0x32d   : > { %v2640_v60 = vadd.f32 %v2636_v0, %v2591_v26 }
 0x335   : > { %v2685_v56 = vpop.f32.mrf.mxu1 }
 0x336   : > { %v2689_v42 = vadd.f32 %v2685_v56, %v2640_v60 }
 0x339   : > { %v2731_v36 = vpop.f32.mrf.mxu2 }
 0x33a   : > { %v2737_v28 = vadd.f32 %v2731_v36, %v2688_v57 }
 0x342   : > { %v2780_v9 = vpop.f32.mrf.mxu3 }
 0x343   : > { %v2786_v31 = vadd.f32 %v2780_v9, %v2737_v28 }
 0x344   : > { %v2734_v59 = vpop.f32.mrf.mxu2 }
 0x345   : > { %v2829_v35 = vpop.f32.mrf.mxu0  ;;  %v2738_v18 = vadd.f32 %v2734_v59, %v2689_v42 }
 0x346   : > { %v2835_v32 = vadd.f32 %v2829_v35, %v2786_v31 }
 0x348   : > { %v2841_v37 = vadd.f32 %v3241_v17, %v2835_v32 }
 0x34a   : > { %2843 = vst [vmem:[%s217_s13] sm:$0xff] %v2841_v37 }
 0x34d   : > { %v2783_v15 = vpop.f32.mrf.mxu3 }
 0x34e   : > { %v2787_v43 = vadd.f32 %v2783_v15, %v2738_v18 }
 0x350   : > { %v2832_v3 = vpop.f32.mrf.mxu0 }
 0x351   : > { %v2836_v44 = vadd.f32 %v2832_v3, %v2787_v43 }
 0x353   : > { %v2842_v25 = vadd.f32 %v3241_v17, %v2836_v44 }
 0x355   : > { %2844 = vst [vmem:[%s217_s13 + $0x8] sm:$0xff] %v2842_v25 }
 0x356   : > { %3285 = shalt.err (!%p3282_p3)
}
 0x357   : > { %s3326_s30 = smov 128   ;;  %s3327_s8 = smov 8  }
 0x358   : > { %3195 = dma.vmem_to_hbm [thread:$0]  (%p3396_p5), %s2859_s23, 256, %s2861_s10, %s2846_s12, %s3326_s30, %s3326_s30, %s3327_s8  }
 0x359 PF: > { %p3201_p4 = scmp.ge.s32.totalorder %s3320_s21, 2  ;;  %s2875_s13 = sand.u32 1, %s3308_s18  }
 0x35a   : > { %s2876_s14 = scalar_lea.sflag [#allocation4], %s2875_s13 }
 0x35b   : > { %p3198_p7 = pnand %p3201_p4, %p3400_p6 }
 0x35d   : > { %p3199_p8 = pneg %p3198_p7 }
 0x35f   : > { %3303 = dma.done.wait (%p3199_p8), %s2876_s14, 256  }
 0x360   : > { %3305 = vsyncadd (%p3199_p8), %s2876_s14, 4294967040  ;;  %p15_p9 = scmp.ge.s32.totalorder %s3383_s24, 4   ;;  %s4078_s18 = smov %s3312_s19 }
 0x361   : > { %s4079_s19 = smov %s3316_s20  ;;  %s4080_s20 = smov %s3394_s27 }
 0x362   : > { %s4081_s21 = smov %s3383_s24  ;;  %17 = sbr.rel (!%p15_p9) target bundleno = 3 (0x3), region = 235 }
 0x367   :  { %2882 = vsyncpa [#allocation4], 1 }
 0x368   :  { %2884 = vsyncpa [#allocation4 + $0x1], 1 }

</bundles_post_ra>
